<compile_context>
chip_gen: v6e
topology: v6e:2x2x1
jax: 0.10.0
libtpu: 0.0.40
codegen_flags: <defaults>
</compile_context>

<pallas_src>
import functools

import jax
import jax.numpy as jnp
from jax.experimental import pallas as pl
from jax.experimental.pallas import tpu as pltpu

C_IN, C_OUT, KH, KW, STRIDE = 3, 5, 3, 3, 2


def conv_silu_kernel(xp_ref, w_ref, b_ref, o_ref, *, oh, ow):
    """Fused stride-2 3x3 conv + bias + SiLU for one batch element.

    xp_ref: (1, 4*C_IN, H//2, W//2) f32 VMEM -- parity-de-interleaved input:
            xp[0, (hp*2 + wp)*C_IN + ci, i, j] == x[ci, 2*i + hp, 2*j + wp]
    w_ref:  (C_OUT*C_IN*KH*KW,) f32 SMEM -- torch OIHW weights, row-major flat
    b_ref:  (C_OUT,) f32 SMEM
    o_ref:  (1, C_OUT, OH, OW) f32 VMEM -- NCHW output block
    """
    # 27 tap views; each stride-2 tap is a contiguous static slice of a parity
    # slab (no strided / gathered access inside the kernel).
    patches = []
    for ci in range(C_IN):
        for kh in range(KH):
            hp, dh = kh % 2, kh // 2
            for kw in range(KW):
                wp, dw = kw % 2, kw // 2
                slab = (hp * 2 + wp) * C_IN + ci
                patches.append(xp_ref[0, slab, dh:dh + oh, dw:dw + ow])

    # (5 x 27) contraction as scalar-broadcast FMAs on the VPU.
    for co in range(C_OUT):
        acc = b_ref[co] + jnp.zeros((oh, ow), jnp.float32)
        t = 0
        for ci in range(C_IN):
            for kh in range(KH):
                for kw in range(KW):
                    widx = ((co * C_IN + ci) * KH + kh) * KW + kw
                    acc = acc + w_ref[widx] * patches[t]
                    t += 1
        # SiLU: v1 * sigmoid(v1)  (explicit exp form; EUP handles the exp)
        o_ref[0, co] = acc * (1.0 / (1.0 + jnp.exp(-acc)))


@jax.jit
def model1_forward(x, weight, bias):
    """x: (N, 3, H, W) f32 (H, W even); weight: (5, 3, 3, 3); bias: (5,).

    Returns SiLU(Conv2d(x; stride=2, pad=0)) in NCHW, matching the torch model.
    """
    n, _, h, w = x.shape
    assert h % 2 == 0 and w % 2 == 0, "kernel assumes even H, W"
    oh = (h - KH) // STRIDE + 1
    ow = (w - KW) // STRIDE + 1
    hh, wh = h // 2, w // 2

    # Single cheap parity de-interleave (one XLA fusion, same bytes as input):
    # xp[:, (hp*2+wp)*C_IN + ci, i, j] = x[:, ci, 2*i + hp, 2*j + wp]
    xp = jnp.stack(
        [x[:, :, 0::2, 0::2], x[:, :, 0::2, 1::2],
         x[:, :, 1::2, 0::2], x[:, :, 1::2, 1::2]],
        axis=1)                                   # (N, 4, C_IN, HH, WH)
    xp = xp.reshape(n, 4 * C_IN, hh, wh)

    kernel = functools.partial(conv_silu_kernel, oh=oh, ow=ow)
    return pl.pallas_call(
        kernel,
        out_shape=jax.ShapeDtypeStruct((n, C_OUT, oh, ow), jnp.float32),
        grid=(n,),                                # N=1 -> single grid step
        in_specs=[
            pl.BlockSpec((1, 4 * C_IN, hh, wh), lambda b: (b, 0, 0, 0)),
            pl.BlockSpec(memory_space=pltpu.MemorySpace.SMEM),   # flat weights
            pl.BlockSpec(memory_space=pltpu.MemorySpace.SMEM),   # bias
        ],
        out_specs=pl.BlockSpec((1, C_OUT, oh, ow), lambda b: (b, 0, 0, 0)),
        compiler_params=pltpu.CompilerParams(
            dimension_semantics=("parallel",)),   # batch -> 2 TCs on v7x (N>1)
    )(xp, weight.reshape(-1), bias)


def _reference(x, weight, bias):
    v1 = jax.lax.conv_general_dilated(
        x, weight, window_strides=(STRIDE, STRIDE), padding="VALID",
        dimension_numbers=("NCHW", "OIHW", "NCHW"))
    v1 = v1 + bias.reshape(1, C_OUT, 1, 1)
    return v1 * jax.nn.sigmoid(v1)


if __name__ == "__main__":
    key = jax.random.PRNGKey(0)
    kx, kw_, kb = jax.random.split(key, 3)

    # Spec input shape: (1, 3, 64, 64) -> output (1, 5, 31, 31).
    x = jax.random.normal(kx, (1, 3, 64, 64), dtype=jnp.float32)

    # Deterministic PyTorch-like uniform(-1/sqrt(fan_in), 1/sqrt(fan_in)) init.
    fan_in = C_IN * KH * KW
    bound = 1.0 / (fan_in ** 0.5)
    weight = jax.random.uniform(kw_, (C_OUT, C_IN, KH, KW),
                                minval=-bound, maxval=bound, dtype=jnp.float32)
    bias = jax.random.uniform(kb, (C_OUT,),
                              minval=-bound, maxval=bound, dtype=jnp.float32)

    out = model1_forward(x, weight, bias)
    jax.block_until_ready(out)
    assert out.shape == (1, 5, 31, 31), out.shape

    ref = _reference(x, weight, bias)
    assert jnp.allclose(out, ref, rtol=1e-3, atol=1e-3), \
        float(jnp.max(jnp.abs(out - ref)))

    print("KERNEL_OK")
</pallas_src>

<mosaic_0001>
module attributes {stable_mosaic.version = 11 : i64} {
  func.func @conv_silu_kernel(%arg0: i32, %arg1: memref<1x12x32x32xf32, #tpu.memory_space<vmem>>, %arg2: memref<135xf32, #tpu.memory_space<smem>>, %arg3: memref<5xf32, #tpu.memory_space<smem>>, %arg4: memref<1x5x31x31xf32, #tpu.memory_space<vmem>>) attributes {dimension_semantics = [#tpu.dimension_semantics<parallel>], iteration_bounds = array<i64: 1>, scalar_prefetch = 0 : i64, scratch_operands = 0 : i64, tpu.core_type = #tpu.core_type<tc>, window_params = [{transform_indices = @transform_0, window_bounds = array<i64: 1, 12, 32, 32>}, {transform_indices = @transform_1, window_bounds = array<i64: 135>}, {transform_indices = @transform_2, window_bounds = array<i64: 5>}, {transform_indices = @transform_3, window_bounds = array<i64: 1, 5, 31, 31>}]} {
    %c0 = arith.constant 0 : index
    %c0_0 = arith.constant 0 : index
    %c0_1 = arith.constant 0 : index
    %c0_2 = arith.constant 0 : index
    %0 = vector.load %arg1[%c0, %c0_0, %c0_1, %c0_2] : memref<1x12x32x32xf32, #tpu.memory_space<vmem>>, vector<1x1x31x31xf32>
    %1 = vector.shape_cast %0 : vector<1x1x31x31xf32> to vector<31x31xf32>
    %c0_3 = arith.constant 0 : index
    %c3 = arith.constant 3 : index
    %c0_4 = arith.constant 0 : index
    %c0_5 = arith.constant 0 : index
    %2 = vector.load %arg1[%c0_3, %c3, %c0_4, %c0_5] : memref<1x12x32x32xf32, #tpu.memory_space<vmem>>, vector<1x1x31x31xf32>
    %3 = vector.shape_cast %2 : vector<1x1x31x31xf32> to vector<31x31xf32>
    %c0_6 = arith.constant 0 : index
    %c0_7 = arith.constant 0 : index
    %c0_8 = arith.constant 0 : index
    %c1 = arith.constant 1 : index
    %4 = vector.load %arg1[%c0_6, %c0_7, %c0_8, %c1] : memref<1x12x32x32xf32, #tpu.memory_space<vmem>>, vector<1x1x31x31xf32>
    %5 = vector.shape_cast %4 : vector<1x1x31x31xf32> to vector<31x31xf32>
    %c0_9 = arith.constant 0 : index
    %c6 = arith.constant 6 : index
    %c0_10 = arith.constant 0 : index
    %c0_11 = arith.constant 0 : index
    %6 = vector.load %arg1[%c0_9, %c6, %c0_10, %c0_11] : memref<1x12x32x32xf32, #tpu.memory_space<vmem>>, vector<1x1x31x31xf32>
    %7 = vector.shape_cast %6 : vector<1x1x31x31xf32> to vector<31x31xf32>
    %c0_12 = arith.constant 0 : index
    %c9 = arith.constant 9 : index
    %c0_13 = arith.constant 0 : index
    %c0_14 = arith.constant 0 : index
    %8 = vector.load %arg1[%c0_12, %c9, %c0_13, %c0_14] : memref<1x12x32x32xf32, #tpu.memory_space<vmem>>, vector<1x1x31x31xf32>
    %9 = vector.shape_cast %8 : vector<1x1x31x31xf32> to vector<31x31xf32>
    %c0_15 = arith.constant 0 : index
    %c6_16 = arith.constant 6 : index
    %c0_17 = arith.constant 0 : index
    %c1_18 = arith.constant 1 : index
    %10 = vector.load %arg1[%c0_15, %c6_16, %c0_17, %c1_18] : memref<1x12x32x32xf32, #tpu.memory_space<vmem>>, vector<1x1x31x31xf32>
    %11 = vector.shape_cast %10 : vector<1x1x31x31xf32> to vector<31x31xf32>
    %c0_19 = arith.constant 0 : index
    %c0_20 = arith.constant 0 : index
    %c1_21 = arith.constant 1 : index
    %c0_22 = arith.constant 0 : index
    %12 = vector.load %arg1[%c0_19, %c0_20, %c1_21, %c0_22] : memref<1x12x32x32xf32, #tpu.memory_space<vmem>>, vector<1x1x31x31xf32>
    %13 = vector.shape_cast %12 : vector<1x1x31x31xf32> to vector<31x31xf32>
    %c0_23 = arith.constant 0 : index
    %c3_24 = arith.constant 3 : index
    %c1_25 = arith.constant 1 : index
    %c0_26 = arith.constant 0 : index
    %14 = vector.load %arg1[%c0_23, %c3_24, %c1_25, %c0_26] : memref<1x12x32x32xf32, #tpu.memory_space<vmem>>, vector<1x1x31x31xf32>
    %15 = vector.shape_cast %14 : vector<1x1x31x31xf32> to vector<31x31xf32>
    %c0_27 = arith.constant 0 : index
    %c0_28 = arith.constant 0 : index
    %c1_29 = arith.constant 1 : index
    %c1_30 = arith.constant 1 : index
    %16 = vector.load %arg1[%c0_27, %c0_28, %c1_29, %c1_30] : memref<1x12x32x32xf32, #tpu.memory_space<vmem>>, vector<1x1x31x31xf32>
    %17 = vector.shape_cast %16 : vector<1x1x31x31xf32> to vector<31x31xf32>
    %c0_31 = arith.constant 0 : index
    %c1_32 = arith.constant 1 : index
    %c0_33 = arith.constant 0 : index
    %c0_34 = arith.constant 0 : index
    %18 = vector.load %arg1[%c0_31, %c1_32, %c0_33, %c0_34] : memref<1x12x32x32xf32, #tpu.memory_space<vmem>>, vector<1x1x31x31xf32>
    %19 = vector.shape_cast %18 : vector<1x1x31x31xf32> to vector<31x31xf32>
    %c0_35 = arith.constant 0 : index
    %c4 = arith.constant 4 : index
    %c0_36 = arith.constant 0 : index
    %c0_37 = arith.constant 0 : index
    %20 = vector.load %arg1[%c0_35, %c4, %c0_36, %c0_37] : memref<1x12x32x32xf32, #tpu.memory_space<vmem>>, vector<1x1x31x31xf32>
    %21 = vector.shape_cast %20 : vector<1x1x31x31xf32> to vector<31x31xf32>
    %c0_38 = arith.constant 0 : index
    %c1_39 = arith.constant 1 : index
    %c0_40 = arith.constant 0 : index
    %c1_41 = arith.constant 1 : index
    %22 = vector.load %arg1[%c0_38, %c1_39, %c0_40, %c1_41] : memref<1x12x32x32xf32, #tpu.memory_space<vmem>>, vector<1x1x31x31xf32>
    %23 = vector.shape_cast %22 : vector<1x1x31x31xf32> to vector<31x31xf32>
    %c0_42 = arith.constant 0 : index
    %c7 = arith.constant 7 : index
    %c0_43 = arith.constant 0 : index
    %c0_44 = arith.constant 0 : index
    %24 = vector.load %arg1[%c0_42, %c7, %c0_43, %c0_44] : memref<1x12x32x32xf32, #tpu.memory_space<vmem>>, vector<1x1x31x31xf32>
    %25 = vector.shape_cast %24 : vector<1x1x31x31xf32> to vector<31x31xf32>
    %c0_45 = arith.constant 0 : index
    %c10 = arith.constant 10 : index
    %c0_46 = arith.constant 0 : index
    %c0_47 = arith.constant 0 : index
    %26 = vector.load %arg1[%c0_45, %c10, %c0_46, %c0_47] : memref<1x12x32x32xf32, #tpu.memory_space<vmem>>, vector<1x1x31x31xf32>
    %27 = vector.shape_cast %26 : vector<1x1x31x31xf32> to vector<31x31xf32>
    %c0_48 = arith.constant 0 : index
    %c7_49 = arith.constant 7 : index
    %c0_50 = arith.constant 0 : index
    %c1_51 = arith.constant 1 : index
    %28 = vector.load %arg1[%c0_48, %c7_49, %c0_50, %c1_51] : memref<1x12x32x32xf32, #tpu.memory_space<vmem>>, vector<1x1x31x31xf32>
    %29 = vector.shape_cast %28 : vector<1x1x31x31xf32> to vector<31x31xf32>
    %c0_52 = arith.constant 0 : index
    %c1_53 = arith.constant 1 : index
    %c1_54 = arith.constant 1 : index
    %c0_55 = arith.constant 0 : index
    %30 = vector.load %arg1[%c0_52, %c1_53, %c1_54, %c0_55] : memref<1x12x32x32xf32, #tpu.memory_space<vmem>>, vector<1x1x31x31xf32>
    %31 = vector.shape_cast %30 : vector<1x1x31x31xf32> to vector<31x31xf32>
    %c0_56 = arith.constant 0 : index
    %c4_57 = arith.constant 4 : index
    %c1_58 = arith.constant 1 : index
    %c0_59 = arith.constant 0 : index
    %32 = vector.load %arg1[%c0_56, %c4_57, %c1_58, %c0_59] : memref<1x12x32x32xf32, #tpu.memory_space<vmem>>, vector<1x1x31x31xf32>
    %33 = vector.shape_cast %32 : vector<1x1x31x31xf32> to vector<31x31xf32>
    %c0_60 = arith.constant 0 : index
    %c1_61 = arith.constant 1 : index
    %c1_62 = arith.constant 1 : index
    %c1_63 = arith.constant 1 : index
    %34 = vector.load %arg1[%c0_60, %c1_61, %c1_62, %c1_63] : memref<1x12x32x32xf32, #tpu.memory_space<vmem>>, vector<1x1x31x31xf32>
    %35 = vector.shape_cast %34 : vector<1x1x31x31xf32> to vector<31x31xf32>
    %c0_64 = arith.constant 0 : index
    %c2 = arith.constant 2 : index
    %c0_65 = arith.constant 0 : index
    %c0_66 = arith.constant 0 : index
    %36 = vector.load %arg1[%c0_64, %c2, %c0_65, %c0_66] : memref<1x12x32x32xf32, #tpu.memory_space<vmem>>, vector<1x1x31x31xf32>
    %37 = vector.shape_cast %36 : vector<1x1x31x31xf32> to vector<31x31xf32>
    %c0_67 = arith.constant 0 : index
    %c5 = arith.constant 5 : index
    %c0_68 = arith.constant 0 : index
    %c0_69 = arith.constant 0 : index
    %38 = vector.load %arg1[%c0_67, %c5, %c0_68, %c0_69] : memref<1x12x32x32xf32, #tpu.memory_space<vmem>>, vector<1x1x31x31xf32>
    %39 = vector.shape_cast %38 : vector<1x1x31x31xf32> to vector<31x31xf32>
    %c0_70 = arith.constant 0 : index
    %c2_71 = arith.constant 2 : index
    %c0_72 = arith.constant 0 : index
    %c1_73 = arith.constant 1 : index
    %40 = vector.load %arg1[%c0_70, %c2_71, %c0_72, %c1_73] : memref<1x12x32x32xf32, #tpu.memory_space<vmem>>, vector<1x1x31x31xf32>
    %41 = vector.shape_cast %40 : vector<1x1x31x31xf32> to vector<31x31xf32>
    %c0_74 = arith.constant 0 : index
    %c8 = arith.constant 8 : index
    %c0_75 = arith.constant 0 : index
    %c0_76 = arith.constant 0 : index
    %42 = vector.load %arg1[%c0_74, %c8, %c0_75, %c0_76] : memref<1x12x32x32xf32, #tpu.memory_space<vmem>>, vector<1x1x31x31xf32>
    %43 = vector.shape_cast %42 : vector<1x1x31x31xf32> to vector<31x31xf32>
    %c0_77 = arith.constant 0 : index
    %c11 = arith.constant 11 : index
    %c0_78 = arith.constant 0 : index
    %c0_79 = arith.constant 0 : index
    %44 = vector.load %arg1[%c0_77, %c11, %c0_78, %c0_79] : memref<1x12x32x32xf32, #tpu.memory_space<vmem>>, vector<1x1x31x31xf32>
    %45 = vector.shape_cast %44 : vector<1x1x31x31xf32> to vector<31x31xf32>
    %c0_80 = arith.constant 0 : index
    %c8_81 = arith.constant 8 : index
    %c0_82 = arith.constant 0 : index
    %c1_83 = arith.constant 1 : index
    %46 = vector.load %arg1[%c0_80, %c8_81, %c0_82, %c1_83] : memref<1x12x32x32xf32, #tpu.memory_space<vmem>>, vector<1x1x31x31xf32>
    %47 = vector.shape_cast %46 : vector<1x1x31x31xf32> to vector<31x31xf32>
    %c0_84 = arith.constant 0 : index
    %c2_85 = arith.constant 2 : index
    %c1_86 = arith.constant 1 : index
    %c0_87 = arith.constant 0 : index
    %48 = vector.load %arg1[%c0_84, %c2_85, %c1_86, %c0_87] : memref<1x12x32x32xf32, #tpu.memory_space<vmem>>, vector<1x1x31x31xf32>
    %49 = vector.shape_cast %48 : vector<1x1x31x31xf32> to vector<31x31xf32>
    %c0_88 = arith.constant 0 : index
    %c5_89 = arith.constant 5 : index
    %c1_90 = arith.constant 1 : index
    %c0_91 = arith.constant 0 : index
    %50 = vector.load %arg1[%c0_88, %c5_89, %c1_90, %c0_91] : memref<1x12x32x32xf32, #tpu.memory_space<vmem>>, vector<1x1x31x31xf32>
    %51 = vector.shape_cast %50 : vector<1x1x31x31xf32> to vector<31x31xf32>
    %c0_92 = arith.constant 0 : index
    %c2_93 = arith.constant 2 : index
    %c1_94 = arith.constant 1 : index
    %c1_95 = arith.constant 1 : index
    %52 = vector.load %arg1[%c0_92, %c2_93, %c1_94, %c1_95] : memref<1x12x32x32xf32, #tpu.memory_space<vmem>>, vector<1x1x31x31xf32>
    %53 = vector.shape_cast %52 : vector<1x1x31x31xf32> to vector<31x31xf32>
    %c0_96 = arith.constant 0 : index
    %54 = memref.load %arg3[%c0_96] : memref<5xf32, #tpu.memory_space<smem>>
    %cst = arith.constant 0.000000e+00 : f32
    %55 = vector.broadcast %cst : f32 to vector<31x31xf32>
    %56 = vector.broadcast %54 : f32 to vector<31x31xf32>
    %57 = arith.addf %56, %55 : vector<31x31xf32>
    %c0_97 = arith.constant 0 : index
    %58 = memref.load %arg2[%c0_97] : memref<135xf32, #tpu.memory_space<smem>>
    %59 = vector.broadcast %58 : f32 to vector<31x31xf32>
    %60 = arith.mulf %59, %1 : vector<31x31xf32>
    %61 = arith.addf %57, %60 : vector<31x31xf32>
    %c1_98 = arith.constant 1 : index
    %62 = memref.load %arg2[%c1_98] : memref<135xf32, #tpu.memory_space<smem>>
    %63 = vector.broadcast %62 : f32 to vector<31x31xf32>
    %64 = arith.mulf %63, %3 : vector<31x31xf32>
    %65 = arith.addf %61, %64 : vector<31x31xf32>
    %c2_99 = arith.constant 2 : index
    %66 = memref.load %arg2[%c2_99] : memref<135xf32, #tpu.memory_space<smem>>
    %67 = vector.broadcast %66 : f32 to vector<31x31xf32>
    %68 = arith.mulf %67, %5 : vector<31x31xf32>
    %69 = arith.addf %65, %68 : vector<31x31xf32>
    %c3_100 = arith.constant 3 : index
    %70 = memref.load %arg2[%c3_100] : memref<135xf32, #tpu.memory_space<smem>>
    %71 = vector.broadcast %70 : f32 to vector<31x31xf32>
    %72 = arith.mulf %71, %7 : vector<31x31xf32>
    %73 = arith.addf %69, %72 : vector<31x31xf32>
    %c4_101 = arith.constant 4 : index
    %74 = memref.load %arg2[%c4_101] : memref<135xf32, #tpu.memory_space<smem>>
    %75 = vector.broadcast %74 : f32 to vector<31x31xf32>
    %76 = arith.mulf %75, %9 : vector<31x31xf32>
    %77 = arith.addf %73, %76 : vector<31x31xf32>
    %c5_102 = arith.constant 5 : index
    %78 = memref.load %arg2[%c5_102] : memref<135xf32, #tpu.memory_space<smem>>
    %79 = vector.broadcast %78 : f32 to vector<31x31xf32>
    %80 = arith.mulf %79, %11 : vector<31x31xf32>
    %81 = arith.addf %77, %80 : vector<31x31xf32>
    %c6_103 = arith.constant 6 : index
    %82 = memref.load %arg2[%c6_103] : memref<135xf32, #tpu.memory_space<smem>>
    %83 = vector.broadcast %82 : f32 to vector<31x31xf32>
    %84 = arith.mulf %83, %13 : vector<31x31xf32>
    %85 = arith.addf %81, %84 : vector<31x31xf32>
    %c7_104 = arith.constant 7 : index
    %86 = memref.load %arg2[%c7_104] : memref<135xf32, #tpu.memory_space<smem>>
    %87 = vector.broadcast %86 : f32 to vector<31x31xf32>
    %88 = arith.mulf %87, %15 : vector<31x31xf32>
    %89 = arith.addf %85, %88 : vector<31x31xf32>
    %c8_105 = arith.constant 8 : index
    %90 = memref.load %arg2[%c8_105] : memref<135xf32, #tpu.memory_space<smem>>
    %91 = vector.broadcast %90 : f32 to vector<31x31xf32>
    %92 = arith.mulf %91, %17 : vector<31x31xf32>
    %93 = arith.addf %89, %92 : vector<31x31xf32>
    %c9_106 = arith.constant 9 : index
    %94 = memref.load %arg2[%c9_106] : memref<135xf32, #tpu.memory_space<smem>>
    %95 = vector.broadcast %94 : f32 to vector<31x31xf32>
    %96 = arith.mulf %95, %19 : vector<31x31xf32>
    %97 = arith.addf %93, %96 : vector<31x31xf32>
    %c10_107 = arith.constant 10 : index
    %98 = memref.load %arg2[%c10_107] : memref<135xf32, #tpu.memory_space<smem>>
    %99 = vector.broadcast %98 : f32 to vector<31x31xf32>
    %100 = arith.mulf %99, %21 : vector<31x31xf32>
    %101 = arith.addf %97, %100 : vector<31x31xf32>
    %c11_108 = arith.constant 11 : index
    %102 = memref.load %arg2[%c11_108] : memref<135xf32, #tpu.memory_space<smem>>
    %103 = vector.broadcast %102 : f32 to vector<31x31xf32>
    %104 = arith.mulf %103, %23 : vector<31x31xf32>
    %105 = arith.addf %101, %104 : vector<31x31xf32>
    %c12 = arith.constant 12 : index
    %106 = memref.load %arg2[%c12] : memref<135xf32, #tpu.memory_space<smem>>
    %107 = vector.broadcast %106 : f32 to vector<31x31xf32>
    %108 = arith.mulf %107, %25 : vector<31x31xf32>
    %109 = arith.addf %105, %108 : vector<31x31xf32>
    %c13 = arith.constant 13 : index
    %110 = memref.load %arg2[%c13] : memref<135xf32, #tpu.memory_space<smem>>
    %111 = vector.broadcast %110 : f32 to vector<31x31xf32>
    %112 = arith.mulf %111, %27 : vector<31x31xf32>
    %113 = arith.addf %109, %112 : vector<31x31xf32>
    %c14 = arith.constant 14 : index
    %114 = memref.load %arg2[%c14] : memref<135xf32, #tpu.memory_space<smem>>
    %115 = vector.broadcast %114 : f32 to vector<31x31xf32>
    %116 = arith.mulf %115, %29 : vector<31x31xf32>
    %117 = arith.addf %113, %116 : vector<31x31xf32>
    %c15 = arith.constant 15 : index
    %118 = memref.load %arg2[%c15] : memref<135xf32, #tpu.memory_space<smem>>
    %119 = vector.broadcast %118 : f32 to vector<31x31xf32>
    %120 = arith.mulf %119, %31 : vector<31x31xf32>
    %121 = arith.addf %117, %120 : vector<31x31xf32>
    %c16 = arith.constant 16 : index
    %122 = memref.load %arg2[%c16] : memref<135xf32, #tpu.memory_space<smem>>
    %123 = vector.broadcast %122 : f32 to vector<31x31xf32>
    %124 = arith.mulf %123, %33 : vector<31x31xf32>
    %125 = arith.addf %121, %124 : vector<31x31xf32>
    %c17 = arith.constant 17 : index
    %126 = memref.load %arg2[%c17] : memref<135xf32, #tpu.memory_space<smem>>
    %127 = vector.broadcast %126 : f32 to vector<31x31xf32>
    %128 = arith.mulf %127, %35 : vector<31x31xf32>
    %129 = arith.addf %125, %128 : vector<31x31xf32>
    %c18 = arith.constant 18 : index
    %130 = memref.load %arg2[%c18] : memref<135xf32, #tpu.memory_space<smem>>
    %131 = vector.broadcast %130 : f32 to vector<31x31xf32>
    %132 = arith.mulf %131, %37 : vector<31x31xf32>
    %133 = arith.addf %129, %132 : vector<31x31xf32>
    %c19 = arith.constant 19 : index
    %134 = memref.load %arg2[%c19] : memref<135xf32, #tpu.memory_space<smem>>
    %135 = vector.broadcast %134 : f32 to vector<31x31xf32>
    %136 = arith.mulf %135, %39 : vector<31x31xf32>
    %137 = arith.addf %133, %136 : vector<31x31xf32>
    %c20 = arith.constant 20 : index
    %138 = memref.load %arg2[%c20] : memref<135xf32, #tpu.memory_space<smem>>
    %139 = vector.broadcast %138 : f32 to vector<31x31xf32>
    %140 = arith.mulf %139, %41 : vector<31x31xf32>
    %141 = arith.addf %137, %140 : vector<31x31xf32>
    %c21 = arith.constant 21 : index
    %142 = memref.load %arg2[%c21] : memref<135xf32, #tpu.memory_space<smem>>
    %143 = vector.broadcast %142 : f32 to vector<31x31xf32>
    %144 = arith.mulf %143, %43 : vector<31x31xf32>
    %145 = arith.addf %141, %144 : vector<31x31xf32>
    %c22 = arith.constant 22 : index
    %146 = memref.load %arg2[%c22] : memref<135xf32, #tpu.memory_space<smem>>
    %147 = vector.broadcast %146 : f32 to vector<31x31xf32>
    %148 = arith.mulf %147, %45 : vector<31x31xf32>
    %149 = arith.addf %145, %148 : vector<31x31xf32>
    %c23 = arith.constant 23 : index
    %150 = memref.load %arg2[%c23] : memref<135xf32, #tpu.memory_space<smem>>
    %151 = vector.broadcast %150 : f32 to vector<31x31xf32>
    %152 = arith.mulf %151, %47 : vector<31x31xf32>
    %153 = arith.addf %149, %152 : vector<31x31xf32>
    %c24 = arith.constant 24 : index
    %154 = memref.load %arg2[%c24] : memref<135xf32, #tpu.memory_space<smem>>
    %155 = vector.broadcast %154 : f32 to vector<31x31xf32>
    %156 = arith.mulf %155, %49 : vector<31x31xf32>
    %157 = arith.addf %153, %156 : vector<31x31xf32>
    %c25 = arith.constant 25 : index
    %158 = memref.load %arg2[%c25] : memref<135xf32, #tpu.memory_space<smem>>
    %159 = vector.broadcast %158 : f32 to vector<31x31xf32>
    %160 = arith.mulf %159, %51 : vector<31x31xf32>
    %161 = arith.addf %157, %160 : vector<31x31xf32>
    %c26 = arith.constant 26 : index
    %162 = memref.load %arg2[%c26] : memref<135xf32, #tpu.memory_space<smem>>
    %163 = vector.broadcast %162 : f32 to vector<31x31xf32>
    %164 = arith.mulf %163, %53 : vector<31x31xf32>
    %165 = arith.addf %161, %164 : vector<31x31xf32>
    %cst_109 = arith.constant 0.000000e+00 : f32
    %166 = vector.broadcast %cst_109 : f32 to vector<31x31xf32>
    %167 = arith.subf %166, %165 : vector<31x31xf32>
    %168 = math.exp %167 : vector<31x31xf32>
    %cst_110 = arith.constant 1.000000e+00 : f32
    %169 = vector.broadcast %cst_110 : f32 to vector<31x31xf32>
    %170 = arith.addf %169, %168 : vector<31x31xf32>
    %cst_111 = arith.constant 1.000000e+00 : f32
    %171 = vector.broadcast %cst_111 : f32 to vector<31x31xf32>
    %172 = arith.divf %171, %170 : vector<31x31xf32>
    %173 = arith.mulf %165, %172 : vector<31x31xf32>
    %c0_112 = arith.constant 0 : index
    %c0_113 = arith.constant 0 : index
    %c0_114 = arith.constant 0 : index
    %c0_115 = arith.constant 0 : index
    %174 = vector.load %arg4[%c0_112, %c0_113, %c0_114, %c0_115] : memref<1x5x31x31xf32, #tpu.memory_space<vmem>>, vector<1x1x31x31xf32>
    %175 = vector.shape_cast %174 : vector<1x1x31x31xf32> to vector<31x31xf32>
    %176 = vector.shape_cast %173 : vector<31x31xf32> to vector<1x1x31x31xf32>
    tpu.vector_store %arg4[%c0_112, %c0_113, %c0_114, %c0_115], %176 {strides = array<i32>} : memref<1x5x31x31xf32, #tpu.memory_space<vmem>>, vector<1x1x31x31xf32>,
    %c1_116 = arith.constant 1 : index
    %177 = memref.load %arg3[%c1_116] : memref<5xf32, #tpu.memory_space<smem>>
    %cst_117 = arith.constant 0.000000e+00 : f32
    %178 = vector.broadcast %cst_117 : f32 to vector<31x31xf32>
    %179 = vector.broadcast %177 : f32 to vector<31x31xf32>
    %180 = arith.addf %179, %178 : vector<31x31xf32>
    %c27 = arith.constant 27 : index
    %181 = memref.load %arg2[%c27] : memref<135xf32, #tpu.memory_space<smem>>
    %182 = vector.broadcast %181 : f32 to vector<31x31xf32>
    %183 = arith.mulf %182, %1 : vector<31x31xf32>
    %184 = arith.addf %180, %183 : vector<31x31xf32>
    %c28 = arith.constant 28 : index
    %185 = memref.load %arg2[%c28] : memref<135xf32, #tpu.memory_space<smem>>
    %186 = vector.broadcast %185 : f32 to vector<31x31xf32>
    %187 = arith.mulf %186, %3 : vector<31x31xf32>
    %188 = arith.addf %184, %187 : vector<31x31xf32>
    %c29 = arith.constant 29 : index
    %189 = memref.load %arg2[%c29] : memref<135xf32, #tpu.memory_space<smem>>
    %190 = vector.broadcast %189 : f32 to vector<31x31xf32>
    %191 = arith.mulf %190, %5 : vector<31x31xf32>
    %192 = arith.addf %188, %191 : vector<31x31xf32>
    %c30 = arith.constant 30 : index
    %193 = memref.load %arg2[%c30] : memref<135xf32, #tpu.memory_space<smem>>
    %194 = vector.broadcast %193 : f32 to vector<31x31xf32>
    %195 = arith.mulf %194, %7 : vector<31x31xf32>
    %196 = arith.addf %192, %195 : vector<31x31xf32>
    %c31 = arith.constant 31 : index
    %197 = memref.load %arg2[%c31] : memref<135xf32, #tpu.memory_space<smem>>
    %198 = vector.broadcast %197 : f32 to vector<31x31xf32>
    %199 = arith.mulf %198, %9 : vector<31x31xf32>
    %200 = arith.addf %196, %199 : vector<31x31xf32>
    %c32 = arith.constant 32 : index
    %201 = memref.load %arg2[%c32] : memref<135xf32, #tpu.memory_space<smem>>
    %202 = vector.broadcast %201 : f32 to vector<31x31xf32>
    %203 = arith.mulf %202, %11 : vector<31x31xf32>
    %204 = arith.addf %200, %203 : vector<31x31xf32>
    %c33 = arith.constant 33 : index
    %205 = memref.load %arg2[%c33] : memref<135xf32, #tpu.memory_space<smem>>
    %206 = vector.broadcast %205 : f32 to vector<31x31xf32>
    %207 = arith.mulf %206, %13 : vector<31x31xf32>
    %208 = arith.addf %204, %207 : vector<31x31xf32>
    %c34 = arith.constant 34 : index
    %209 = memref.load %arg2[%c34] : memref<135xf32, #tpu.memory_space<smem>>
    %210 = vector.broadcast %209 : f32 to vector<31x31xf32>
    %211 = arith.mulf %210, %15 : vector<31x31xf32>
    %212 = arith.addf %208, %211 : vector<31x31xf32>
    %c35 = arith.constant 35 : index
    %213 = memref.load %arg2[%c35] : memref<135xf32, #tpu.memory_space<smem>>
    %214 = vector.broadcast %213 : f32 to vector<31x31xf32>
    %215 = arith.mulf %214, %17 : vector<31x31xf32>
    %216 = arith.addf %212, %215 : vector<31x31xf32>
    %c36 = arith.constant 36 : index
    %217 = memref.load %arg2[%c36] : memref<135xf32, #tpu.memory_space<smem>>
    %218 = vector.broadcast %217 : f32 to vector<31x31xf32>
    %219 = arith.mulf %218, %19 : vector<31x31xf32>
    %220 = arith.addf %216, %219 : vector<31x31xf32>
    %c37 = arith.constant 37 : index
    %221 = memref.load %arg2[%c37] : memref<135xf32, #tpu.memory_space<smem>>
    %222 = vector.broadcast %221 : f32 to vector<31x31xf32>
    %223 = arith.mulf %222, %21 : vector<31x31xf32>
    %224 = arith.addf %220, %223 : vector<31x31xf32>
    %c38 = arith.constant 38 : index
    %225 = memref.load %arg2[%c38] : memref<135xf32, #tpu.memory_space<smem>>
    %226 = vector.broadcast %225 : f32 to vector<31x31xf32>
    %227 = arith.mulf %226, %23 : vector<31x31xf32>
    %228 = arith.addf %224, %227 : vector<31x31xf32>
    %c39 = arith.constant 39 : index
    %229 = memref.load %arg2[%c39] : memref<135xf32, #tpu.memory_space<smem>>
    %230 = vector.broadcast %229 : f32 to vector<31x31xf32>
    %231 = arith.mulf %230, %25 : vector<31x31xf32>
    %232 = arith.addf %228, %231 : vector<31x31xf32>
    %c40 = arith.constant 40 : index
    %233 = memref.load %arg2[%c40] : memref<135xf32, #tpu.memory_space<smem>>
    %234 = vector.broadcast %233 : f32 to vector<31x31xf32>
    %235 = arith.mulf %234, %27 : vector<31x31xf32>
    %236 = arith.addf %232, %235 : vector<31x31xf32>
    %c41 = arith.constant 41 : index
    %237 = memref.load %arg2[%c41] : memref<135xf32, #tpu.memory_space<smem>>
    %238 = vector.broadcast %237 : f32 to vector<31x31xf32>
    %239 = arith.mulf %238, %29 : vector<31x31xf32>
    %240 = arith.addf %236, %239 : vector<31x31xf32>
    %c42 = arith.constant 42 : index
    %241 = memref.load %arg2[%c42] : memref<135xf32, #tpu.memory_space<smem>>
    %242 = vector.broadcast %241 : f32 to vector<31x31xf32>
    %243 = arith.mulf %242, %31 : vector<31x31xf32>
    %244 = arith.addf %240, %243 : vector<31x31xf32>
    %c43 = arith.constant 43 : index
    %245 = memref.load %arg2[%c43] : memref<135xf32, #tpu.memory_space<smem>>
    %246 = vector.broadcast %245 : f32 to vector<31x31xf32>
    %247 = arith.mulf %246, %33 : vector<31x31xf32>
    %248 = arith.addf %244, %247 : vector<31x31xf32>
    %c44 = arith.constant 44 : index
    %249 = memref.load %arg2[%c44] : memref<135xf32, #tpu.memory_space<smem>>
    %250 = vector.broadcast %249 : f32 to vector<31x31xf32>
    %251 = arith.mulf %250, %35 : vector<31x31xf32>
    %252 = arith.addf %248, %251 : vector<31x31xf32>
    %c45 = arith.constant 45 : index
    %253 = memref.load %arg2[%c45] : memref<135xf32, #tpu.memory_space<smem>>
    %254 = vector.broadcast %253 : f32 to vector<31x31xf32>
    %255 = arith.mulf %254, %37 : vector<31x31xf32>
    %256 = arith.addf %252, %255 : vector<31x31xf32>
    %c46 = arith.constant 46 : index
    %257 = memref.load %arg2[%c46] : memref<135xf32, #tpu.memory_space<smem>>
    %258 = vector.broadcast %257 : f32 to vector<31x31xf32>
    %259 = arith.mulf %258, %39 : vector<31x31xf32>
    %260 = arith.addf %256, %259 : vector<31x31xf32>
    %c47 = arith.constant 47 : index
    %261 = memref.load %arg2[%c47] : memref<135xf32, #tpu.memory_space<smem>>
    %262 = vector.broadcast %261 : f32 to vector<31x31xf32>
    %263 = arith.mulf %262, %41 : vector<31x31xf32>
    %264 = arith.addf %260, %263 : vector<31x31xf32>
    %c48 = arith.constant 48 : index
    %265 = memref.load %arg2[%c48] : memref<135xf32, #tpu.memory_space<smem>>
    %266 = vector.broadcast %265 : f32 to vector<31x31xf32>
    %267 = arith.mulf %266, %43 : vector<31x31xf32>
    %268 = arith.addf %264, %267 : vector<31x31xf32>
    %c49 = arith.constant 49 : index
    %269 = memref.load %arg2[%c49] : memref<135xf32, #tpu.memory_space<smem>>
    %270 = vector.broadcast %269 : f32 to vector<31x31xf32>
    %271 = arith.mulf %270, %45 : vector<31x31xf32>
    %272 = arith.addf %268, %271 : vector<31x31xf32>
    %c50 = arith.constant 50 : index
    %273 = memref.load %arg2[%c50] : memref<135xf32, #tpu.memory_space<smem>>
    %274 = vector.broadcast %273 : f32 to vector<31x31xf32>
    %275 = arith.mulf %274, %47 : vector<31x31xf32>
    %276 = arith.addf %272, %275 : vector<31x31xf32>
    %c51 = arith.constant 51 : index
    %277 = memref.load %arg2[%c51] : memref<135xf32, #tpu.memory_space<smem>>
    %278 = vector.broadcast %277 : f32 to vector<31x31xf32>
    %279 = arith.mulf %278, %49 : vector<31x31xf32>
    %280 = arith.addf %276, %279 : vector<31x31xf32>
    %c52 = arith.constant 52 : index
    %281 = memref.load %arg2[%c52] : memref<135xf32, #tpu.memory_space<smem>>
    %282 = vector.broadcast %281 : f32 to vector<31x31xf32>
    %283 = arith.mulf %282, %51 : vector<31x31xf32>
    %284 = arith.addf %280, %283 : vector<31x31xf32>
    %c53 = arith.constant 53 : index
    %285 = memref.load %arg2[%c53] : memref<135xf32, #tpu.memory_space<smem>>
    %286 = vector.broadcast %285 : f32 to vector<31x31xf32>
    %287 = arith.mulf %286, %53 : vector<31x31xf32>
    %288 = arith.addf %284, %287 : vector<31x31xf32>
    %cst_118 = arith.constant 0.000000e+00 : f32
    %289 = vector.broadcast %cst_118 : f32 to vector<31x31xf32>
    %290 = arith.subf %289, %288 : vector<31x31xf32>
    %291 = math.exp %290 : vector<31x31xf32>
    %cst_119 = arith.constant 1.000000e+00 : f32
    %292 = vector.broadcast %cst_119 : f32 to vector<31x31xf32>
    %293 = arith.addf %292, %291 : vector<31x31xf32>
    %cst_120 = arith.constant 1.000000e+00 : f32
    %294 = vector.broadcast %cst_120 : f32 to vector<31x31xf32>
    %295 = arith.divf %294, %293 : vector<31x31xf32>
    %296 = arith.mulf %288, %295 : vector<31x31xf32>
    %c0_121 = arith.constant 0 : index
    %c1_122 = arith.constant 1 : index
    %c0_123 = arith.constant 0 : index
    %c0_124 = arith.constant 0 : index
    %297 = vector.load %arg4[%c0_121, %c1_122, %c0_123, %c0_124] : memref<1x5x31x31xf32, #tpu.memory_space<vmem>>, vector<1x1x31x31xf32>
    %298 = vector.shape_cast %297 : vector<1x1x31x31xf32> to vector<31x31xf32>
    %299 = vector.shape_cast %296 : vector<31x31xf32> to vector<1x1x31x31xf32>
    tpu.vector_store %arg4[%c0_121, %c1_122, %c0_123, %c0_124], %299 {strides = array<i32>} : memref<1x5x31x31xf32, #tpu.memory_space<vmem>>, vector<1x1x31x31xf32>,
    %c2_125 = arith.constant 2 : index
    %300 = memref.load %arg3[%c2_125] : memref<5xf32, #tpu.memory_space<smem>>
    %cst_126 = arith.constant 0.000000e+00 : f32
    %301 = vector.broadcast %cst_126 : f32 to vector<31x31xf32>
    %302 = vector.broadcast %300 : f32 to vector<31x31xf32>
    %303 = arith.addf %302, %301 : vector<31x31xf32>
    %c54 = arith.constant 54 : index
    %304 = memref.load %arg2[%c54] : memref<135xf32, #tpu.memory_space<smem>>
    %305 = vector.broadcast %304 : f32 to vector<31x31xf32>
    %306 = arith.mulf %305, %1 : vector<31x31xf32>
    %307 = arith.addf %303, %306 : vector<31x31xf32>
    %c55 = arith.constant 55 : index
    %308 = memref.load %arg2[%c55] : memref<135xf32, #tpu.memory_space<smem>>
    %309 = vector.broadcast %308 : f32 to vector<31x31xf32>
    %310 = arith.mulf %309, %3 : vector<31x31xf32>
    %311 = arith.addf %307, %310 : vector<31x31xf32>
    %c56 = arith.constant 56 : index
    %312 = memref.load %arg2[%c56] : memref<135xf32, #tpu.memory_space<smem>>
    %313 = vector.broadcast %312 : f32 to vector<31x31xf32>
    %314 = arith.mulf %313, %5 : vector<31x31xf32>
    %315 = arith.addf %311, %314 : vector<31x31xf32>
    %c57 = arith.constant 57 : index
    %316 = memref.load %arg2[%c57] : memref<135xf32, #tpu.memory_space<smem>>
    %317 = vector.broadcast %316 : f32 to vector<31x31xf32>
    %318 = arith.mulf %317, %7 : vector<31x31xf32>
    %319 = arith.addf %315, %318 : vector<31x31xf32>
    %c58 = arith.constant 58 : index
    %320 = memref.load %arg2[%c58] : memref<135xf32, #tpu.memory_space<smem>>
    %321 = vector.broadcast %320 : f32 to vector<31x31xf32>
    %322 = arith.mulf %321, %9 : vector<31x31xf32>
    %323 = arith.addf %319, %322 : vector<31x31xf32>
    %c59 = arith.constant 59 : index
    %324 = memref.load %arg2[%c59] : memref<135xf32, #tpu.memory_space<smem>>
    %325 = vector.broadcast %324 : f32 to vector<31x31xf32>
    %326 = arith.mulf %325, %11 : vector<31x31xf32>
    %327 = arith.addf %323, %326 : vector<31x31xf32>
    %c60 = arith.constant 60 : index
    %328 = memref.load %arg2[%c60] : memref<135xf32, #tpu.memory_space<smem>>
    %329 = vector.broadcast %328 : f32 to vector<31x31xf32>
    %330 = arith.mulf %329, %13 : vector<31x31xf32>
    %331 = arith.addf %327, %330 : vector<31x31xf32>
    %c61 = arith.constant 61 : index
    %332 = memref.load %arg2[%c61] : memref<135xf32, #tpu.memory_space<smem>>
    %333 = vector.broadcast %332 : f32 to vector<31x31xf32>
    %334 = arith.mulf %333, %15 : vector<31x31xf32>
    %335 = arith.addf %331, %334 : vector<31x31xf32>
    %c62 = arith.constant 62 : index
    %336 = memref.load %arg2[%c62] : memref<135xf32, #tpu.memory_space<smem>>
    %337 = vector.broadcast %336 : f32 to vector<31x31xf32>
    %338 = arith.mulf %337, %17 : vector<31x31xf32>
    %339 = arith.addf %335, %338 : vector<31x31xf32>
    %c63 = arith.constant 63 : index
    %340 = memref.load %arg2[%c63] : memref<135xf32, #tpu.memory_space<smem>>
    %341 = vector.broadcast %340 : f32 to vector<31x31xf32>
    %342 = arith.mulf %341, %19 : vector<31x31xf32>
    %343 = arith.addf %339, %342 : vector<31x31xf32>
    %c64 = arith.constant 64 : index
    %344 = memref.load %arg2[%c64] : memref<135xf32, #tpu.memory_space<smem>>
    %345 = vector.broadcast %344 : f32 to vector<31x31xf32>
    %346 = arith.mulf %345, %21 : vector<31x31xf32>
    %347 = arith.addf %343, %346 : vector<31x31xf32>
    %c65 = arith.constant 65 : index
    %348 = memref.load %arg2[%c65] : memref<135xf32, #tpu.memory_space<smem>>
    %349 = vector.broadcast %348 : f32 to vector<31x31xf32>
    %350 = arith.mulf %349, %23 : vector<31x31xf32>
    %351 = arith.addf %347, %350 : vector<31x31xf32>
    %c66 = arith.constant 66 : index
    %352 = memref.load %arg2[%c66] : memref<135xf32, #tpu.memory_space<smem>>
    %353 = vector.broadcast %352 : f32 to vector<31x31xf32>
    %354 = arith.mulf %353, %25 : vector<31x31xf32>
    %355 = arith.addf %351, %354 : vector<31x31xf32>
    %c67 = arith.constant 67 : index
    %356 = memref.load %arg2[%c67] : memref<135xf32, #tpu.memory_space<smem>>
    %357 = vector.broadcast %356 : f32 to vector<31x31xf32>
    %358 = arith.mulf %357, %27 : vector<31x31xf32>
    %359 = arith.addf %355, %358 : vector<31x31xf32>
    %c68 = arith.constant 68 : index
    %360 = memref.load %arg2[%c68] : memref<135xf32, #tpu.memory_space<smem>>
    %361 = vector.broadcast %360 : f32 to vector<31x31xf32>
    %362 = arith.mulf %361, %29 : vector<31x31xf32>
    %363 = arith.addf %359, %362 : vector<31x31xf32>
    %c69 = arith.constant 69 : index
    %364 = memref.load %arg2[%c69] : memref<135xf32, #tpu.memory_space<smem>>
    %365 = vector.broadcast %364 : f32 to vector<31x31xf32>
    %366 = arith.mulf %365, %31 : vector<31x31xf32>
    %367 = arith.addf %363, %366 : vector<31x31xf32>
    %c70 = arith.constant 70 : index
    %368 = memref.load %arg2[%c70] : memref<135xf32, #tpu.memory_space<smem>>
    %369 = vector.broadcast %368 : f32 to vector<31x31xf32>
    %370 = arith.mulf %369, %33 : vector<31x31xf32>
    %371 = arith.addf %367, %370 : vector<31x31xf32>
    %c71 = arith.constant 71 : index
    %372 = memref.load %arg2[%c71] : memref<135xf32, #tpu.memory_space<smem>>
    %373 = vector.broadcast %372 : f32 to vector<31x31xf32>
    %374 = arith.mulf %373, %35 : vector<31x31xf32>
    %375 = arith.addf %371, %374 : vector<31x31xf32>
    %c72 = arith.constant 72 : index
    %376 = memref.load %arg2[%c72] : memref<135xf32, #tpu.memory_space<smem>>
    %377 = vector.broadcast %376 : f32 to vector<31x31xf32>
    %378 = arith.mulf %377, %37 : vector<31x31xf32>
    %379 = arith.addf %375, %378 : vector<31x31xf32>
    %c73 = arith.constant 73 : index
    %380 = memref.load %arg2[%c73] : memref<135xf32, #tpu.memory_space<smem>>
    %381 = vector.broadcast %380 : f32 to vector<31x31xf32>
    %382 = arith.mulf %381, %39 : vector<31x31xf32>
    %383 = arith.addf %379, %382 : vector<31x31xf32>
    %c74 = arith.constant 74 : index
    %384 = memref.load %arg2[%c74] : memref<135xf32, #tpu.memory_space<smem>>
    %385 = vector.broadcast %384 : f32 to vector<31x31xf32>
    %386 = arith.mulf %385, %41 : vector<31x31xf32>
    %387 = arith.addf %383, %386 : vector<31x31xf32>
    %c75 = arith.constant 75 : index
    %388 = memref.load %arg2[%c75] : memref<135xf32, #tpu.memory_space<smem>>
    %389 = vector.broadcast %388 : f32 to vector<31x31xf32>
    %390 = arith.mulf %389, %43 : vector<31x31xf32>
    %391 = arith.addf %387, %390 : vector<31x31xf32>
    %c76 = arith.constant 76 : index
    %392 = memref.load %arg2[%c76] : memref<135xf32, #tpu.memory_space<smem>>
    %393 = vector.broadcast %392 : f32 to vector<31x31xf32>
    %394 = arith.mulf %393, %45 : vector<31x31xf32>
    %395 = arith.addf %391, %394 : vector<31x31xf32>
    %c77 = arith.constant 77 : index
    %396 = memref.load %arg2[%c77] : memref<135xf32, #tpu.memory_space<smem>>
    %397 = vector.broadcast %396 : f32 to vector<31x31xf32>
    %398 = arith.mulf %397, %47 : vector<31x31xf32>
    %399 = arith.addf %395, %398 : vector<31x31xf32>
    %c78 = arith.constant 78 : index
    %400 = memref.load %arg2[%c78] : memref<135xf32, #tpu.memory_space<smem>>
    %401 = vector.broadcast %400 : f32 to vector<31x31xf32>
    %402 = arith.mulf %401, %49 : vector<31x31xf32>
    %403 = arith.addf %399, %402 : vector<31x31xf32>
    %c79 = arith.constant 79 : index
    %404 = memref.load %arg2[%c79] : memref<135xf32, #tpu.memory_space<smem>>
    %405 = vector.broadcast %404 : f32 to vector<31x31xf32>
    %406 = arith.mulf %405, %51 : vector<31x31xf32>
    %407 = arith.addf %403, %406 : vector<31x31xf32>
    %c80 = arith.constant 80 : index
    %408 = memref.load %arg2[%c80] : memref<135xf32, #tpu.memory_space<smem>>
    %409 = vector.broadcast %408 : f32 to vector<31x31xf32>
    %410 = arith.mulf %409, %53 : vector<31x31xf32>
    %411 = arith.addf %407, %410 : vector<31x31xf32>
    %cst_127 = arith.constant 0.000000e+00 : f32
    %412 = vector.broadcast %cst_127 : f32 to vector<31x31xf32>
    %413 = arith.subf %412, %411 : vector<31x31xf32>
    %414 = math.exp %413 : vector<31x31xf32>
    %cst_128 = arith.constant 1.000000e+00 : f32
    %415 = vector.broadcast %cst_128 : f32 to vector<31x31xf32>
    %416 = arith.addf %415, %414 : vector<31x31xf32>
    %cst_129 = arith.constant 1.000000e+00 : f32
    %417 = vector.broadcast %cst_129 : f32 to vector<31x31xf32>
    %418 = arith.divf %417, %416 : vector<31x31xf32>
    %419 = arith.mulf %411, %418 : vector<31x31xf32>
    %c0_130 = arith.constant 0 : index
    %c2_131 = arith.constant 2 : index
    %c0_132 = arith.constant 0 : index
    %c0_133 = arith.constant 0 : index
    %420 = vector.load %arg4[%c0_130, %c2_131, %c0_132, %c0_133] : memref<1x5x31x31xf32, #tpu.memory_space<vmem>>, vector<1x1x31x31xf32>
    %421 = vector.shape_cast %420 : vector<1x1x31x31xf32> to vector<31x31xf32>
    %422 = vector.shape_cast %419 : vector<31x31xf32> to vector<1x1x31x31xf32>
    tpu.vector_store %arg4[%c0_130, %c2_131, %c0_132, %c0_133], %422 {strides = array<i32>} : memref<1x5x31x31xf32, #tpu.memory_space<vmem>>, vector<1x1x31x31xf32>,
    %c3_134 = arith.constant 3 : index
    %423 = memref.load %arg3[%c3_134] : memref<5xf32, #tpu.memory_space<smem>>
    %cst_135 = arith.constant 0.000000e+00 : f32
    %424 = vector.broadcast %cst_135 : f32 to vector<31x31xf32>
    %425 = vector.broadcast %423 : f32 to vector<31x31xf32>
    %426 = arith.addf %425, %424 : vector<31x31xf32>
    %c81 = arith.constant 81 : index
    %427 = memref.load %arg2[%c81] : memref<135xf32, #tpu.memory_space<smem>>
    %428 = vector.broadcast %427 : f32 to vector<31x31xf32>
    %429 = arith.mulf %428, %1 : vector<31x31xf32>
    %430 = arith.addf %426, %429 : vector<31x31xf32>
    %c82 = arith.constant 82 : index
    %431 = memref.load %arg2[%c82] : memref<135xf32, #tpu.memory_space<smem>>
    %432 = vector.broadcast %431 : f32 to vector<31x31xf32>
    %433 = arith.mulf %432, %3 : vector<31x31xf32>
    %434 = arith.addf %430, %433 : vector<31x31xf32>
    %c83 = arith.constant 83 : index
    %435 = memref.load %arg2[%c83] : memref<135xf32, #tpu.memory_space<smem>>
    %436 = vector.broadcast %435 : f32 to vector<31x31xf32>
    %437 = arith.mulf %436, %5 : vector<31x31xf32>
    %438 = arith.addf %434, %437 : vector<31x31xf32>
    %c84 = arith.constant 84 : index
    %439 = memref.load %arg2[%c84] : memref<135xf32, #tpu.memory_space<smem>>
    %440 = vector.broadcast %439 : f32 to vector<31x31xf32>
    %441 = arith.mulf %440, %7 : vector<31x31xf32>
    %442 = arith.addf %438, %441 : vector<31x31xf32>
    %c85 = arith.constant 85 : index
    %443 = memref.load %arg2[%c85] : memref<135xf32, #tpu.memory_space<smem>>
    %444 = vector.broadcast %443 : f32 to vector<31x31xf32>
    %445 = arith.mulf %444, %9 : vector<31x31xf32>
    %446 = arith.addf %442, %445 : vector<31x31xf32>
    %c86 = arith.constant 86 : index
    %447 = memref.load %arg2[%c86] : memref<135xf32, #tpu.memory_space<smem>>
    %448 = vector.broadcast %447 : f32 to vector<31x31xf32>
    %449 = arith.mulf %448, %11 : vector<31x31xf32>
    %450 = arith.addf %446, %449 : vector<31x31xf32>
    %c87 = arith.constant 87 : index
    %451 = memref.load %arg2[%c87] : memref<135xf32, #tpu.memory_space<smem>>
    %452 = vector.broadcast %451 : f32 to vector<31x31xf32>
    %453 = arith.mulf %452, %13 : vector<31x31xf32>
    %454 = arith.addf %450, %453 : vector<31x31xf32>
    %c88 = arith.constant 88 : index
    %455 = memref.load %arg2[%c88] : memref<135xf32, #tpu.memory_space<smem>>
    %456 = vector.broadcast %455 : f32 to vector<31x31xf32>
    %457 = arith.mulf %456, %15 : vector<31x31xf32>
    %458 = arith.addf %454, %457 : vector<31x31xf32>
    %c89 = arith.constant 89 : index
    %459 = memref.load %arg2[%c89] : memref<135xf32, #tpu.memory_space<smem>>
    %460 = vector.broadcast %459 : f32 to vector<31x31xf32>
    %461 = arith.mulf %460, %17 : vector<31x31xf32>
    %462 = arith.addf %458, %461 : vector<31x31xf32>
    %c90 = arith.constant 90 : index
    %463 = memref.load %arg2[%c90] : memref<135xf32, #tpu.memory_space<smem>>
    %464 = vector.broadcast %463 : f32 to vector<31x31xf32>
    %465 = arith.mulf %464, %19 : vector<31x31xf32>
    %466 = arith.addf %462, %465 : vector<31x31xf32>
    %c91 = arith.constant 91 : index
    %467 = memref.load %arg2[%c91] : memref<135xf32, #tpu.memory_space<smem>>
    %468 = vector.broadcast %467 : f32 to vector<31x31xf32>
    %469 = arith.mulf %468, %21 : vector<31x31xf32>
    %470 = arith.addf %466, %469 : vector<31x31xf32>
    %c92 = arith.constant 92 : index
    %471 = memref.load %arg2[%c92] : memref<135xf32, #tpu.memory_space<smem>>
    %472 = vector.broadcast %471 : f32 to vector<31x31xf32>
    %473 = arith.mulf %472, %23 : vector<31x31xf32>
    %474 = arith.addf %470, %473 : vector<31x31xf32>
    %c93 = arith.constant 93 : index
    %475 = memref.load %arg2[%c93] : memref<135xf32, #tpu.memory_space<smem>>
    %476 = vector.broadcast %475 : f32 to vector<31x31xf32>
    %477 = arith.mulf %476, %25 : vector<31x31xf32>
    %478 = arith.addf %474, %477 : vector<31x31xf32>
    %c94 = arith.constant 94 : index
    %479 = memref.load %arg2[%c94] : memref<135xf32, #tpu.memory_space<smem>>
    %480 = vector.broadcast %479 : f32 to vector<31x31xf32>
    %481 = arith.mulf %480, %27 : vector<31x31xf32>
    %482 = arith.addf %478, %481 : vector<31x31xf32>
    %c95 = arith.constant 95 : index
    %483 = memref.load %arg2[%c95] : memref<135xf32, #tpu.memory_space<smem>>
    %484 = vector.broadcast %483 : f32 to vector<31x31xf32>
    %485 = arith.mulf %484, %29 : vector<31x31xf32>
    %486 = arith.addf %482, %485 : vector<31x31xf32>
    %c96 = arith.constant 96 : index
    %487 = memref.load %arg2[%c96] : memref<135xf32, #tpu.memory_space<smem>>
    %488 = vector.broadcast %487 : f32 to vector<31x31xf32>
    %489 = arith.mulf %488, %31 : vector<31x31xf32>
    %490 = arith.addf %486, %489 : vector<31x31xf32>
    %c97 = arith.constant 97 : index
    %491 = memref.load %arg2[%c97] : memref<135xf32, #tpu.memory_space<smem>>
    %492 = vector.broadcast %491 : f32 to vector<31x31xf32>
    %493 = arith.mulf %492, %33 : vector<31x31xf32>
    %494 = arith.addf %490, %493 : vector<31x31xf32>
    %c98 = arith.constant 98 : index
    %495 = memref.load %arg2[%c98] : memref<135xf32, #tpu.memory_space<smem>>
    %496 = vector.broadcast %495 : f32 to vector<31x31xf32>
    %497 = arith.mulf %496, %35 : vector<31x31xf32>
    %498 = arith.addf %494, %497 : vector<31x31xf32>
    %c99 = arith.constant 99 : index
    %499 = memref.load %arg2[%c99] : memref<135xf32, #tpu.memory_space<smem>>
    %500 = vector.broadcast %499 : f32 to vector<31x31xf32>
    %501 = arith.mulf %500, %37 : vector<31x31xf32>
    %502 = arith.addf %498, %501 : vector<31x31xf32>
    %c100 = arith.constant 100 : index
    %503 = memref.load %arg2[%c100] : memref<135xf32, #tpu.memory_space<smem>>
    %504 = vector.broadcast %503 : f32 to vector<31x31xf32>
    %505 = arith.mulf %504, %39 : vector<31x31xf32>
    %506 = arith.addf %502, %505 : vector<31x31xf32>
    %c101 = arith.constant 101 : index
    %507 = memref.load %arg2[%c101] : memref<135xf32, #tpu.memory_space<smem>>
    %508 = vector.broadcast %507 : f32 to vector<31x31xf32>
    %509 = arith.mulf %508, %41 : vector<31x31xf32>
    %510 = arith.addf %506, %509 : vector<31x31xf32>
    %c102 = arith.constant 102 : index
    %511 = memref.load %arg2[%c102] : memref<135xf32, #tpu.memory_space<smem>>
    %512 = vector.broadcast %511 : f32 to vector<31x31xf32>
    %513 = arith.mulf %512, %43 : vector<31x31xf32>
    %514 = arith.addf %510, %513 : vector<31x31xf32>
    %c103 = arith.constant 103 : index
    %515 = memref.load %arg2[%c103] : memref<135xf32, #tpu.memory_space<smem>>
    %516 = vector.broadcast %515 : f32 to vector<31x31xf32>
    %517 = arith.mulf %516, %45 : vector<31x31xf32>
    %518 = arith.addf %514, %517 : vector<31x31xf32>
    %c104 = arith.constant 104 : index
    %519 = memref.load %arg2[%c104] : memref<135xf32, #tpu.memory_space<smem>>
    %520 = vector.broadcast %519 : f32 to vector<31x31xf32>
    %521 = arith.mulf %520, %47 : vector<31x31xf32>
    %522 = arith.addf %518, %521 : vector<31x31xf32>
    %c105 = arith.constant 105 : index
    %523 = memref.load %arg2[%c105] : memref<135xf32, #tpu.memory_space<smem>>
    %524 = vector.broadcast %523 : f32 to vector<31x31xf32>
    %525 = arith.mulf %524, %49 : vector<31x31xf32>
    %526 = arith.addf %522, %525 : vector<31x31xf32>
    %c106 = arith.constant 106 : index
    %527 = memref.load %arg2[%c106] : memref<135xf32, #tpu.memory_space<smem>>
    %528 = vector.broadcast %527 : f32 to vector<31x31xf32>
    %529 = arith.mulf %528, %51 : vector<31x31xf32>
    %530 = arith.addf %526, %529 : vector<31x31xf32>
    %c107 = arith.constant 107 : index
    %531 = memref.load %arg2[%c107] : memref<135xf32, #tpu.memory_space<smem>>
    %532 = vector.broadcast %531 : f32 to vector<31x31xf32>
    %533 = arith.mulf %532, %53 : vector<31x31xf32>
    %534 = arith.addf %530, %533 : vector<31x31xf32>
    %cst_136 = arith.constant 0.000000e+00 : f32
    %535 = vector.broadcast %cst_136 : f32 to vector<31x31xf32>
    %536 = arith.subf %535, %534 : vector<31x31xf32>
    %537 = math.exp %536 : vector<31x31xf32>
    %cst_137 = arith.constant 1.000000e+00 : f32
    %538 = vector.broadcast %cst_137 : f32 to vector<31x31xf32>
    %539 = arith.addf %538, %537 : vector<31x31xf32>
    %cst_138 = arith.constant 1.000000e+00 : f32
    %540 = vector.broadcast %cst_138 : f32 to vector<31x31xf32>
    %541 = arith.divf %540, %539 : vector<31x31xf32>
    %542 = arith.mulf %534, %541 : vector<31x31xf32>
    %c0_139 = arith.constant 0 : index
    %c3_140 = arith.constant 3 : index
    %c0_141 = arith.constant 0 : index
    %c0_142 = arith.constant 0 : index
    %543 = vector.load %arg4[%c0_139, %c3_140, %c0_141, %c0_142] : memref<1x5x31x31xf32, #tpu.memory_space<vmem>>, vector<1x1x31x31xf32>
    %544 = vector.shape_cast %543 : vector<1x1x31x31xf32> to vector<31x31xf32>
    %545 = vector.shape_cast %542 : vector<31x31xf32> to vector<1x1x31x31xf32>
    tpu.vector_store %arg4[%c0_139, %c3_140, %c0_141, %c0_142], %545 {strides = array<i32>} : memref<1x5x31x31xf32, #tpu.memory_space<vmem>>, vector<1x1x31x31xf32>,
    %c4_143 = arith.constant 4 : index
    %546 = memref.load %arg3[%c4_143] : memref<5xf32, #tpu.memory_space<smem>>
    %cst_144 = arith.constant 0.000000e+00 : f32
    %547 = vector.broadcast %cst_144 : f32 to vector<31x31xf32>
    %548 = vector.broadcast %546 : f32 to vector<31x31xf32>
    %549 = arith.addf %548, %547 : vector<31x31xf32>
    %c108 = arith.constant 108 : index
    %550 = memref.load %arg2[%c108] : memref<135xf32, #tpu.memory_space<smem>>
    %551 = vector.broadcast %550 : f32 to vector<31x31xf32>
    %552 = arith.mulf %551, %1 : vector<31x31xf32>
    %553 = arith.addf %549, %552 : vector<31x31xf32>
    %c109 = arith.constant 109 : index
    %554 = memref.load %arg2[%c109] : memref<135xf32, #tpu.memory_space<smem>>
    %555 = vector.broadcast %554 : f32 to vector<31x31xf32>
    %556 = arith.mulf %555, %3 : vector<31x31xf32>
    %557 = arith.addf %553, %556 : vector<31x31xf32>
    %c110 = arith.constant 110 : index
    %558 = memref.load %arg2[%c110] : memref<135xf32, #tpu.memory_space<smem>>
    %559 = vector.broadcast %558 : f32 to vector<31x31xf32>
    %560 = arith.mulf %559, %5 : vector<31x31xf32>
    %561 = arith.addf %557, %560 : vector<31x31xf32>
    %c111 = arith.constant 111 : index
    %562 = memref.load %arg2[%c111] : memref<135xf32, #tpu.memory_space<smem>>
    %563 = vector.broadcast %562 : f32 to vector<31x31xf32>
    %564 = arith.mulf %563, %7 : vector<31x31xf32>
    %565 = arith.addf %561, %564 : vector<31x31xf32>
    %c112 = arith.constant 112 : index
    %566 = memref.load %arg2[%c112] : memref<135xf32, #tpu.memory_space<smem>>
    %567 = vector.broadcast %566 : f32 to vector<31x31xf32>
    %568 = arith.mulf %567, %9 : vector<31x31xf32>
    %569 = arith.addf %565, %568 : vector<31x31xf32>
    %c113 = arith.constant 113 : index
    %570 = memref.load %arg2[%c113] : memref<135xf32, #tpu.memory_space<smem>>
    %571 = vector.broadcast %570 : f32 to vector<31x31xf32>
    %572 = arith.mulf %571, %11 : vector<31x31xf32>
    %573 = arith.addf %569, %572 : vector<31x31xf32>
    %c114 = arith.constant 114 : index
    %574 = memref.load %arg2[%c114] : memref<135xf32, #tpu.memory_space<smem>>
    %575 = vector.broadcast %574 : f32 to vector<31x31xf32>
    %576 = arith.mulf %575, %13 : vector<31x31xf32>
    %577 = arith.addf %573, %576 : vector<31x31xf32>
    %c115 = arith.constant 115 : index
    %578 = memref.load %arg2[%c115] : memref<135xf32, #tpu.memory_space<smem>>
    %579 = vector.broadcast %578 : f32 to vector<31x31xf32>
    %580 = arith.mulf %579, %15 : vector<31x31xf32>
    %581 = arith.addf %577, %580 : vector<31x31xf32>
    %c116 = arith.constant 116 : index
    %582 = memref.load %arg2[%c116] : memref<135xf32, #tpu.memory_space<smem>>
    %583 = vector.broadcast %582 : f32 to vector<31x31xf32>
    %584 = arith.mulf %583, %17 : vector<31x31xf32>
    %585 = arith.addf %581, %584 : vector<31x31xf32>
    %c117 = arith.constant 117 : index
    %586 = memref.load %arg2[%c117] : memref<135xf32, #tpu.memory_space<smem>>
    %587 = vector.broadcast %586 : f32 to vector<31x31xf32>
    %588 = arith.mulf %587, %19 : vector<31x31xf32>
    %589 = arith.addf %585, %588 : vector<31x31xf32>
    %c118 = arith.constant 118 : index
    %590 = memref.load %arg2[%c118] : memref<135xf32, #tpu.memory_space<smem>>
    %591 = vector.broadcast %590 : f32 to vector<31x31xf32>
    %592 = arith.mulf %591, %21 : vector<31x31xf32>
    %593 = arith.addf %589, %592 : vector<31x31xf32>
    %c119 = arith.constant 119 : index
    %594 = memref.load %arg2[%c119] : memref<135xf32, #tpu.memory_space<smem>>
    %595 = vector.broadcast %594 : f32 to vector<31x31xf32>
    %596 = arith.mulf %595, %23 : vector<31x31xf32>
    %597 = arith.addf %593, %596 : vector<31x31xf32>
    %c120 = arith.constant 120 : index
    %598 = memref.load %arg2[%c120] : memref<135xf32, #tpu.memory_space<smem>>
    %599 = vector.broadcast %598 : f32 to vector<31x31xf32>
    %600 = arith.mulf %599, %25 : vector<31x31xf32>
    %601 = arith.addf %597, %600 : vector<31x31xf32>
    %c121 = arith.constant 121 : index
    %602 = memref.load %arg2[%c121] : memref<135xf32, #tpu.memory_space<smem>>
    %603 = vector.broadcast %602 : f32 to vector<31x31xf32>
    %604 = arith.mulf %603, %27 : vector<31x31xf32>
    %605 = arith.addf %601, %604 : vector<31x31xf32>
    %c122 = arith.constant 122 : index
    %606 = memref.load %arg2[%c122] : memref<135xf32, #tpu.memory_space<smem>>
    %607 = vector.broadcast %606 : f32 to vector<31x31xf32>
    %608 = arith.mulf %607, %29 : vector<31x31xf32>
    %609 = arith.addf %605, %608 : vector<31x31xf32>
    %c123 = arith.constant 123 : index
    %610 = memref.load %arg2[%c123] : memref<135xf32, #tpu.memory_space<smem>>
    %611 = vector.broadcast %610 : f32 to vector<31x31xf32>
    %612 = arith.mulf %611, %31 : vector<31x31xf32>
    %613 = arith.addf %609, %612 : vector<31x31xf32>
    %c124 = arith.constant 124 : index
    %614 = memref.load %arg2[%c124] : memref<135xf32, #tpu.memory_space<smem>>
    %615 = vector.broadcast %614 : f32 to vector<31x31xf32>
    %616 = arith.mulf %615, %33 : vector<31x31xf32>
    %617 = arith.addf %613, %616 : vector<31x31xf32>
    %c125 = arith.constant 125 : index
    %618 = memref.load %arg2[%c125] : memref<135xf32, #tpu.memory_space<smem>>
    %619 = vector.broadcast %618 : f32 to vector<31x31xf32>
    %620 = arith.mulf %619, %35 : vector<31x31xf32>
    %621 = arith.addf %617, %620 : vector<31x31xf32>
    %c126 = arith.constant 126 : index
    %622 = memref.load %arg2[%c126] : memref<135xf32, #tpu.memory_space<smem>>
    %623 = vector.broadcast %622 : f32 to vector<31x31xf32>
    %624 = arith.mulf %623, %37 : vector<31x31xf32>
    %625 = arith.addf %621, %624 : vector<31x31xf32>
    %c127 = arith.constant 127 : index
    %626 = memref.load %arg2[%c127] : memref<135xf32, #tpu.memory_space<smem>>
    %627 = vector.broadcast %626 : f32 to vector<31x31xf32>
    %628 = arith.mulf %627, %39 : vector<31x31xf32>
    %629 = arith.addf %625, %628 : vector<31x31xf32>
    %c128 = arith.constant 128 : index
    %630 = memref.load %arg2[%c128] : memref<135xf32, #tpu.memory_space<smem>>
    %631 = vector.broadcast %630 : f32 to vector<31x31xf32>
    %632 = arith.mulf %631, %41 : vector<31x31xf32>
    %633 = arith.addf %629, %632 : vector<31x31xf32>
    %c129 = arith.constant 129 : index
    %634 = memref.load %arg2[%c129] : memref<135xf32, #tpu.memory_space<smem>>
    %635 = vector.broadcast %634 : f32 to vector<31x31xf32>
    %636 = arith.mulf %635, %43 : vector<31x31xf32>
    %637 = arith.addf %633, %636 : vector<31x31xf32>
    %c130 = arith.constant 130 : index
    %638 = memref.load %arg2[%c130] : memref<135xf32, #tpu.memory_space<smem>>
    %639 = vector.broadcast %638 : f32 to vector<31x31xf32>
    %640 = arith.mulf %639, %45 : vector<31x31xf32>
    %641 = arith.addf %637, %640 : vector<31x31xf32>
    %c131 = arith.constant 131 : index
    %642 = memref.load %arg2[%c131] : memref<135xf32, #tpu.memory_space<smem>>
    %643 = vector.broadcast %642 : f32 to vector<31x31xf32>
    %644 = arith.mulf %643, %47 : vector<31x31xf32>
    %645 = arith.addf %641, %644 : vector<31x31xf32>
    %c132 = arith.constant 132 : index
    %646 = memref.load %arg2[%c132] : memref<135xf32, #tpu.memory_space<smem>>
    %647 = vector.broadcast %646 : f32 to vector<31x31xf32>
    %648 = arith.mulf %647, %49 : vector<31x31xf32>
    %649 = arith.addf %645, %648 : vector<31x31xf32>
    %c133 = arith.constant 133 : index
    %650 = memref.load %arg2[%c133] : memref<135xf32, #tpu.memory_space<smem>>
    %651 = vector.broadcast %650 : f32 to vector<31x31xf32>
    %652 = arith.mulf %651, %51 : vector<31x31xf32>
    %653 = arith.addf %649, %652 : vector<31x31xf32>
    %c134 = arith.constant 134 : index
    %654 = memref.load %arg2[%c134] : memref<135xf32, #tpu.memory_space<smem>>
    %655 = vector.broadcast %654 : f32 to vector<31x31xf32>
    %656 = arith.mulf %655, %53 : vector<31x31xf32>
    %657 = arith.addf %653, %656 : vector<31x31xf32>
    %cst_145 = arith.constant 0.000000e+00 : f32
    %658 = vector.broadcast %cst_145 : f32 to vector<31x31xf32>
    %659 = arith.subf %658, %657 : vector<31x31xf32>
    %660 = math.exp %659 : vector<31x31xf32>
    %cst_146 = arith.constant 1.000000e+00 : f32
    %661 = vector.broadcast %cst_146 : f32 to vector<31x31xf32>
    %662 = arith.addf %661, %660 : vector<31x31xf32>
    %cst_147 = arith.constant 1.000000e+00 : f32
    %663 = vector.broadcast %cst_147 : f32 to vector<31x31xf32>
    %664 = arith.divf %663, %662 : vector<31x31xf32>
    %665 = arith.mulf %657, %664 : vector<31x31xf32>
    %c0_148 = arith.constant 0 : index
    %c4_149 = arith.constant 4 : index
    %c0_150 = arith.constant 0 : index
    %c0_151 = arith.constant 0 : index
    %666 = vector.load %arg4[%c0_148, %c4_149, %c0_150, %c0_151] : memref<1x5x31x31xf32, #tpu.memory_space<vmem>>, vector<1x1x31x31xf32>
    %667 = vector.shape_cast %666 : vector<1x1x31x31xf32> to vector<31x31xf32>
    %668 = vector.shape_cast %665 : vector<31x31xf32> to vector<1x1x31x31xf32>
    tpu.vector_store %arg4[%c0_148, %c4_149, %c0_150, %c0_151], %668 {strides = array<i32>} : memref<1x5x31x31xf32, #tpu.memory_space<vmem>>, vector<1x1x31x31xf32>,
    return
  }
  func.func @transform_0(%arg0: i32) -> (i32, i32, i32, i32) {
    %c0_i32 = arith.constant 0 : i32
    %c0_i32_0 = arith.constant 0 : i32
    %c0_i32_1 = arith.constant 0 : i32
    %c0_i32_2 = arith.constant 0 : i32
    return %arg0, %c0_i32, %c0_i32_0, %c0_i32_1 : i32, i32, i32, i32
  }
  func.func @transform_1(%arg0: i32) -> i32 {
    %c0_i32 = arith.constant 0 : i32
    %c0_i32_0 = arith.constant 0 : i32
    return %c0_i32 : i32
  }
  func.func @transform_2(%arg0: i32) -> i32 {
    %c0_i32 = arith.constant 0 : i32
    %c0_i32_0 = arith.constant 0 : i32
    return %c0_i32 : i32
  }
  func.func @transform_3(%arg0: i32) -> (i32, i32, i32, i32) {
    %c0_i32 = arith.constant 0 : i32
    %c0_i32_0 = arith.constant 0 : i32
    %c0_i32_1 = arith.constant 0 : i32
    %c0_i32_2 = arith.constant 0 : i32
    return %arg0, %c0_i32, %c0_i32_0, %c0_i32_1 : i32, i32, i32, i32
  }
}

</mosaic_0001>

<bundles_post_ra>
// kernel: model1_forward.1
= control target key start
LH: loop header
LB: loop body
LE: loop exit
PB: predicated region body
PF: predicated region fallthrough
CT: control target
= control target key end

     0   :  { %8 = vsyncpa [#allocation3], 0  ;;  %s5260_s0 = inlined_call_operand.vmem [shape: f32[1,12,32,32], index: 0, kind: input, shape index: {}]   ;;  %s5261_s1 = inlined_call_operand.vmem [shape: f32[135], index: 1, kind: input, shape index: {}]   ;;  %s5262_s2 = inlined_call_operand.vmem [shape: f32[5], index: 2, kind: input, shape index: {}]   ;;  %s5263_s3 = inlined_call_operand.vmem [shape: f32[1,5,31,31], index: 3, kind: output, shape index: {}]  }
   0x1   :  { %s18_s14 = sshll.u32 %s5261_s1, 4  ;;  %s19_s14 = int_to_ptr.vmem [resolvable:$true] %s18_s14 }
   0x2   :  { %9 = vsyncpa [#allocation5], 0  ;;  %s28_s17 = sshll.u32 %s5262_s2, 4  ;;  %s2822_s18 = scalar_lea.vmem %s19_s14, 32  ;;  %s29_s17 = int_to_ptr.vmem [resolvable:$true] %s28_s17 }
   0x3   :  { %p2823_p0 = scmp.ne.s32.totalorder %s19_s14, %s2822_s18  ;;  %p2827_p1 = scmp.lt.s32.totalorder %s19_s14, %s19_s14 }
   0x4   :  { %p2828_p2 = scmp.lt.s32.totalorder %s2822_s18, %s2822_s18 }
   0x6   :  { %p2829_p3 = por %p2828_p2, %p2827_p1 }
   0x8   :  { %p2830_p4 = pnand %p2829_p3, %p2823_p0 }
   0xa   :  { %2833 = shalt.err (!%p2830_p4)
}
   0xb   :  { %s2850_s19 = smov [#allocation2]   ;;  %s2834_s20 = scalar_lea.vmem %s29_s17, 16 }
   0xc   :  { %21 = dma.vmem_to_smem %s19_s14, 32, %s2850_s19, [#allocation3]  }
   0xd   :  { %p2835_p5 = scmp.ne.s32.totalorder %s29_s17, %s2834_s20  ;;  %p2839_p6 = scmp.lt.s32.totalorder %s29_s17, %s29_s17 }
   0xe   :  { %p2840_p7 = scmp.lt.s32.totalorder %s2834_s20, %s2834_s20 }
  0x10   :  { %p2841_p8 = por %p2840_p7, %p2839_p6 }
  0x12   :  { %p2842_p9 = pnand %p2841_p8, %p2835_p5 }
  0x14   :  { %2845 = shalt.err (!%p2842_p9)
}
  0x15   :  { %s2851_s1 = smov [#allocation4]  }
  0x16   :  { %31 = dma.vmem_to_smem %s29_s17, 16, %s2851_s1, [#allocation5]  }
  0x17   :  { %2846 = dma.done.wait [#allocation3], 32  }
  0x18   :  { %2847 = vsyncadd [#allocation3], 4294967264 }
  0x19   :  { %2848 = dma.done.wait [#allocation5], 16  }
  0x1a   :  { %2849 = vsyncadd [#allocation5], 4294967280 }
  0x1b   :  { %38 = sfence }
  0x1c   :  { %s2444_s2 = sld [smem:[#allocation2 + $0x2]]  ;;  %v2882_v0 = vld [vmem:[%s5260_s0 + $0x10] sm:$0xff]  ;;  %v2887_v1 = vld [vmem:[%s5260_s0] sm:$0xff]  ;;  %v2892_v3 = vld [vmem:[%s5260_s0 + $0x18] sm:$0x7f]  ;;  %s2852_s30 = smov 127  }
  0x1d   :  { %s2447_s21 = sld [smem:[#allocation2 + $0x5]]  ;;  %v2897_v4 = vld [vmem:[%s5260_s0 + $0x8] sm:$0xff]  ;;  %v2913_v11 = vld [vmem:[%s5260_s0 + $0xc0] sm:$0xff]  ;;  %v2922_v14 = vld [vmem:[%s5260_s0 + $0xd8] sm:$0x7f]  ;;  %vm567_vm0 = vcmask 252928  }
  0x1e   :  { %v2908_v9 = vld [vmem:[%s5260_s0 + $0xc8] sm:$0xff]  ;;  %s2450_s8 = sld [smem:[#allocation2 + $0x8]]  ;;  %v2927_v15 = vld [vmem:[%s5260_s0 + $0xd0] sm:$0xff]  ;;  %v2950_v23 = vld [vmem:[%s5260_s0 + $0x19] sm:$0x7f]  ;;  %vm571_vm1 = vcmask 251904  }
  0x1f   :  { %v2936_v18 = vld [vmem:[%s5260_s0 + $0x9] sm:$0xff]  ;;  %v2941_v20 = vld [vmem:[%s5260_s0 + $0x1] sm:$0xff]  ;;  %s2453_s17 = sld [smem:[#allocation2 + $0xb]]  ;;  %v2955_v24 = vld [vmem:[%s5260_s0 + $0x11] sm:$0xff] }
  0x20   :  { %v2964_v27 = vld [vmem:[%s5260_s0 + $0x28] sm:$0xff]  ;;  %v2969_v29 = vld [vmem:[%s5260_s0 + $0x20] sm:$0xff]  ;;  %s2456_s24 = sld [smem:[#allocation2 + $0xe]]  ;;  %v2978_v32 = vld [vmem:[%s5260_s0 + $0x38] sm:$0x7f] }
  0x21   :  { %5324 = vst [vmem:[#allocation8_spill] sm:$0xff] %v2964_v27  ;;  %v2983_v33 = vld [vmem:[%s5260_s0 + $0x30] sm:$0xff]  ;;  %v2992_v36 = vld [vmem:[%s5260_s0 + $0xe8] sm:$0xff]  ;;  %v2997_v38 = vld [vmem:[%s5260_s0 + $0xe0] sm:$0xff]  ;;  %s2459_s7 = sld [smem:[#allocation2 + $0x11]] }
  0x22   :  { %v146_v2 = vstv %s2444_s2  ;;  %v3006_v41 = vld [vmem:[%s5260_s0 + $0xf8] sm:$0x7f]  ;;  %v3011_v42 = vld [vmem:[%s5260_s0 + $0xf0] sm:$0xff]  ;;  %v3025_v47 = vld [vmem:[%s5260_s0 + $0x21] sm:$0xff]  ;;  %s2462_s16 = sld [smem:[#allocation2 + $0x14]] }
  0x23   :  { %v149_v5 = vmul.f32 %v146_v2, %v2882_v0  ;;  %v147_v6 = vmul.f32 %v146_v2, %v2887_v1  ;;  %v150_v7 = vmul.f32 %v146_v2, %v2892_v3  ;;  %v148_v8 = vmul.f32 %v146_v2, %v2897_v4  ;;  %v3020_v45 = vld [vmem:[%s5260_s0 + $0x29] sm:$0xff]  ;;  %v3034_v50 = vld [vmem:[%s5260_s0 + $0x39] sm:$0x7f]  ;;  %v3039_v51 = vld [vmem:[%s5260_s0 + $0x31] sm:$0xff]  ;;  %s2465_s23 = sld [smem:[#allocation2 + $0x17]] }
  0x24   :  { %v192_v10 = vstv %s2447_s21  ;;  %v238_v19 = vstv %s2450_s8  ;;  %v3048_v54 = vld [vmem:[%s5260_s0 + $0x48] sm:$0xff]  ;;  %v3053_v56 = vld [vmem:[%s5260_s0 + $0x40] sm:$0xff]  ;;  %s2468_s6 = sld [smem:[#allocation2 + $0x1a]] }
  0x25   :  { %159 = vrot.lane.b32.xlu1 %v149_v5, %s2852_s30  ;;  %155 = vrot.lane.b32.xlu0 %v147_v6, %s2852_s30  ;;  %v194_v12 = vmul.f32 %v2908_v9, %v192_v10  ;;  %v193_v13 = vmul.f32 %v2913_v11, %v192_v10  ;;  %v196_v16 = vmul.f32 %v2922_v14, %v192_v10  ;;  %v284_v28 = vstv %s2453_s17  ;;  %v3062_v59 = vld [vmem:[%s5260_s0 + $0x58] sm:$0x7f]  ;;  %s2472_s15 = sld [smem:[#allocation2 + $0x1d]] }
  0x26   :  { %v195_v17 = vmul.f32 %v2927_v15, %v192_v10  ;;  %v240_v21 = vmul.f32 %v238_v19, %v2936_v18  ;;  %v239_v22 = vmul.f32 %v238_v19, %v2941_v20  ;;  %v242_v25 = vmul.f32 %v238_v19, %v2950_v23  ;;  %v3067_v60 = vld [vmem:[%s5260_s0 + $0x50] sm:$0xff]  ;;  %v3076_v63 = vld [vmem:[%s5260_s0 + $0x108] sm:$0xff]  ;;  %v3081_v5 = vld [vmem:[%s5260_s0 + $0x100] sm:$0xff]  ;;  %s2475_s20 = sld [smem:[#allocation2 + $0x20]] }
  0x27   :  { %v241_v26 = vmul.f32 %v238_v19, %v2955_v24  ;;  %v286_v30 = vmul.f32 %v2964_v27, %v284_v28  ;;  %v285_v31 = vmul.f32 %v2969_v29, %v284_v28  ;;  %v288_v34 = vmul.f32 %v2978_v32, %v284_v28  ;;  %v3095_v10 = vld [vmem:[%s5260_s0 + $0x110] sm:$0xff]  ;;  %v3109_v19 = vld [vmem:[%s5260_s0 + $0x41] sm:$0xff]  ;;  %s2478_s1 = sld [smem:[#allocation2 + $0x23]] }
  0x28   :  { %v287_v35 = vmul.f32 %v2983_v33, %v284_v28  ;;  %v330_v37 = vstv %s2456_s24  ;;  %v376_v46 = vstv %s2459_s7  ;;  %v422_v55 = vstv %s2462_s16  ;;  %s2481_s2 = sld [smem:[#allocation2 + $0x26]] }
  0x29   :  { %161 = vrot.lane.b32.xlu1 %v150_v7, %s2852_s30  ;;  %157 = vrot.lane.b32.xlu0 %v148_v8, %s2852_s30  ;;  %v332_v39 = vmul.f32 %v2992_v36, %v330_v37  ;;  %v331_v40 = vmul.f32 %v2997_v38, %v330_v37  ;;  %v334_v43 = vmul.f32 %v3006_v41, %v330_v37  ;;  %v468_v2 = vstv %s2465_s23  ;;  %v3090_v8 = vld [vmem:[%s5260_s0 + $0x118] sm:$0x7f]  ;;  %s2484_s21 = sld [smem:[#allocation2 + $0x29]] }
  0x2a   :  { %v333_v44 = vmul.f32 %v3011_v42, %v330_v37  ;;  %v378_v48 = vmul.f32 %v3020_v45, %v376_v46  ;;  %v377_v49 = vmul.f32 %v3025_v47, %v376_v46  ;;  %v380_v52 = vmul.f32 %v3034_v50, %v376_v46  ;;  %s125_s22 = sld [smem:[#allocation2]] }
  0x2b   :  { %v379_v53 = vmul.f32 %v3039_v51, %v376_v46  ;;  %v424_v57 = vmul.f32 %v3048_v54, %v422_v55  ;;  %v423_v58 = vmul.f32 %v3053_v56, %v422_v55  ;;  %v426_v61 = vmul.f32 %v3062_v59, %v422_v55  ;;  %s122_s23 = sld [smem:[#allocation4]] }
  0x2c   :  { %v425_v62 = vmul.f32 %v3067_v60, %v422_v55  ;;  %v470_v6 = vmul.f32 %v3076_v63, %v468_v2  ;;  %v469_v7 = vmul.f32 %v3081_v5, %v468_v2  ;;  %s2443_s24 = sld [smem:[#allocation2 + $0x1]] }
  0x2d   :  { %203 = vrot.lane.b32.xlu1 %v194_v12, %s2852_s30  ;;  %201 = vrot.lane.b32.xlu0 %v193_v13, %s2852_s30  ;;  %v472_v12 = vmul.f32 %v3090_v8, %v468_v2  ;;  %v471_v13 = vmul.f32 %v3095_v10, %v468_v2  ;;  %s2487_s25 = sld [smem:[#allocation2 + $0x2c]] }
  0x2e   :  { %s2445_s26 = sld [smem:[#allocation2 + $0x3]] }
  0x2f   :  { %s2490_s29 = sld [smem:[#allocation2 + $0x2f]] }
  0x30   :  { %s3200_s11 = sld [smem:[#allocation2 + $0x6]] }
  0x31   :  { %207 = vrot.lane.b32.xlu1 %v196_v16, %s2852_s30  ;;  %205 = vrot.lane.b32.xlu0 %v195_v17, %s2852_s30  ;;  %v3104_v16 = vld [vmem:[%s5260_s0 + $0x49] sm:$0xff]  ;;  %v514_v17 = vstv %s2468_s6  ;;  %s3181_s6 = sld [smem:[#allocation2 + $0x4]] }
  0x32   :  { %s3205_s12 = sld [smem:[#allocation2 + $0x32]] }
  0x33   :  { %s3211_s13 = sld [smem:[#allocation2 + $0x7]] }
  0x34   :  { %s3226_s18 = sld [smem:[#allocation2 + $0x9]] }
  0x35   :  { %249 = vrot.lane.b32.xlu1 %v240_v21, %s2852_s30  ;;  %247 = vrot.lane.b32.xlu0 %v239_v22, %s2852_s30  ;;  %v516_v21 = vmul.f32 %v3104_v16, %v514_v17  ;;  %v515_v22 = vmul.f32 %v3109_v19, %v514_v17  ;;  %s3280_s27 = sld [smem:[#allocation2 + $0xc]] }
  0x36   :  { %s3304_s7 = sld [smem:[#allocation2 + $0xd]] }
  0x37   :  { %s3341_s17 = sld [smem:[#allocation2 + $0x3b]] }
  0x38   :  { %s3504_s28 = sld [smem:[#allocation4 + $0x1]] }
  0x39   :  { %253 = vrot.lane.b32.xlu1 %v242_v25, %s2852_s30  ;;  %251 = vrot.lane.b32.xlu0 %v241_v26, %s2852_s30  ;;  %v3118_v25 = vld [vmem:[%s5260_s0 + $0x59] sm:$0x7f]  ;;  %v3123_v26 = vld [vmem:[%s5260_s0 + $0x51] sm:$0xff]  ;;  %s3679_s14 = sld [smem:[#allocation2 + $0x24]] }
  0x3a   :  { %v518_v28 = vmul.f32 %v3118_v25, %v514_v17  ;;  %s3862_s8 = sld [smem:[#allocation2 + $0x6e]] }
  0x3b   :  { %s3909_s19 = sld [smem:[#allocation2 + $0x56]] }
  0x3c   :  { %s3957_s4 = sld [smem:[#allocation2 + $0x71]] }
  0x3d   :  { %295 = vrot.lane.b32.xlu1 %v286_v30, %s2852_s30  ;;  %293 = vrot.lane.b32.xlu0 %v285_v31, %s2852_s30  ;;  %v517_v30 = vmul.f32 %v3123_v26, %v514_v17  ;;  %v597_v31 = vstv %s2472_s15  ;;  %v126_v17 = vstv %s125_s22  ;;  %s3258_s22 = sld [smem:[#allocation2 + $0xa]] }
  0x3e   :  { %v601_v37 = vmul.f32 %v597_v31, %v2892_v3  ;;  %s3962_s5 = sld [smem:[#allocation2 + $0x33]] }
  0x3f   :  { %s3988_s9 = sld [smem:[#allocation4 + $0x2]] }
  0x40   :  { %s3992_s10 = sld [smem:[#allocation2 + $0x37]] }
  0x41   :  { %299 = vrot.lane.b32.xlu1 %v288_v34, %s2852_s30  ;;  %297 = vrot.lane.b32.xlu0 %v287_v35, %s2852_s30  ;;  %v599_v34 = vmul.f32 %v597_v31, %v2897_v4  ;;  %v598_v35 = vmul.f32 %v597_v31, %v2887_v1  ;;  %s4540_s16 = sld [smem:[#allocation2 + $0x6d]] }
  0x42   :  { %s2573_s15 = sld [smem:[#allocation2 + $0x73]] }
  0x45   :  { %341 = vrot.lane.b32.xlu1 %v332_v39, %s2852_s30  ;;  %339 = vrot.lane.b32.xlu0 %v331_v40, %s2852_s30  ;;  %v600_v39 = vmul.f32 %v597_v31, %v2882_v0  ;;  %v643_v40 = vstv %s2475_s20  ;;  %v123_v31 = vstv %s122_s23  ;;  %s3705_s20 = sld [smem:[#allocation2 + $0x50]] }
  0x46   :  { %v647_v46 = vmul.f32 %v2922_v14, %v643_v40  ;;  %s4090_s23 = sld [smem:[#allocation2 + $0x3d]] }
  0x49   :  { %345 = vrot.lane.b32.xlu1 %v334_v43, %s2852_s30  ;;  %343 = vrot.lane.b32.xlu0 %v333_v44, %s2852_s30  ;;  %v645_v43 = vmul.f32 %v2908_v9, %v643_v40  ;;  %v644_v44 = vmul.f32 %v2913_v11, %v643_v40 }
  0x4d   :  { %387 = vrot.lane.b32.xlu1 %v378_v48, %s2852_s30  ;;  %385 = vrot.lane.b32.xlu0 %v377_v49, %s2852_s30  ;;  %v646_v48 = vmul.f32 %v2927_v15, %v643_v40  ;;  %v689_v49 = vstv %s2478_s1  ;;  %s3584_s1 = sld [smem:[#allocation2 + $0x4a]] }
  0x4e   :  { %v693_v55 = vmul.f32 %v689_v49, %v2950_v23 }
  0x51   :  { %391 = vrot.lane.b32.xlu1 %v380_v52, %s2852_s30  ;;  %389 = vrot.lane.b32.xlu0 %v379_v53, %s2852_s30  ;;  %v691_v52 = vmul.f32 %v689_v49, %v2936_v18  ;;  %v690_v53 = vmul.f32 %v689_v49, %v2941_v20 }
  0x55   :  { %433 = vrot.lane.b32.xlu1 %v424_v57, %s2852_s30  ;;  %431 = vrot.lane.b32.xlu0 %v423_v58, %s2852_s30  ;;  %v692_v57 = vmul.f32 %v689_v49, %v2955_v24  ;;  %v735_v58 = vstv %s2481_s2  ;;  %s3474_s2 = sld [smem:[#allocation2 + $0x44]] }
  0x56   :  { %v739_v2 = vmul.f32 %v2978_v32, %v735_v58 }
  0x59   :  { %437 = vrot.lane.b32.xlu1 %v426_v61, %s2852_s30  ;;  %435 = vrot.lane.b32.xlu0 %v425_v62, %s2852_s30  ;;  %v737_v61 = vmul.f32 %v2964_v27, %v735_v58  ;;  %v736_v62 = vmul.f32 %v2969_v29, %v735_v58 }
  0x5d   :  { %479 = vrot.lane.b32.xlu1 %v470_v6, %s2852_s30  ;;  %477 = vrot.lane.b32.xlu0 %v469_v7, %s2852_s30  ;;  %v738_v6 = vmul.f32 %v2983_v33, %v735_v58  ;;  %v781_v7 = vstv %s2484_s21  ;;  %v172_v58 = vstv %s2445_s26  ;;  %s3248_s21 = sld [smem:[#allocation2 + $0x35]] }
  0x5e   :  { %s3386_s26 = sld [smem:[#allocation2 + $0x3e]] }
  0x61   :  { %483 = vrot.lane.b32.xlu1 %v472_v12, %s2852_s30  ;;  %481 = vrot.lane.b32.xlu0 %v471_v13, %s2852_s30  ;;  %v783_v12 = vmul.f32 %v2992_v36, %v781_v7  ;;  %v782_v13 = vmul.f32 %v2997_v38, %v781_v7 }
  0x65   :  { %525 = vrot.lane.b32.xlu1 %v516_v21, %s2852_s30  ;;  %523 = vrot.lane.b32.xlu0 %v515_v22, %s2852_s30  ;;  %v3168_v21 = vld [vmem:[%s5260_s0 + $0x60] sm:$0xff]  ;;  %v127_v22 = vmul.f32 %v126_v17, %v2887_v1 }
  0x66   :  { %5325 = vst [vmem:[#allocation9_spill] sm:$0xff] %v3168_v21 }
  0x69   :  { %529 = vrot.lane.b32.xlu1 %v518_v28, %s2852_s30  ;;  %527 = vrot.lane.b32.xlu0 %v517_v30, %s2852_s30  ;;  %v785_v28 = vmul.f32 %v3006_v41, %v781_v7  ;;  %v784_v30 = vmul.f32 %v3011_v42, %v781_v7 }
  0x6d   :  { %608 = vrot.lane.b32.xlu1 %v599_v34, %s2852_s30  ;;  %606 = vrot.lane.b32.xlu0 %v598_v35, %s2852_s30  ;;  %v136_v34 = vstv %s2443_s24  ;;  %v827_v35 = vstv %s2487_s25  ;;  %s3604_s24 = sld [smem:[#allocation2 + $0x1f]] }
  0x6e   :  { %v137_v40 = vmul.f32 %v3168_v21, %v136_v34  ;;  %v829_v49 = vmul.f32 %v3020_v45, %v827_v35  ;;  %v919_v21 = vstv %s3205_s12  ;;  %s3319_s12 = sld [smem:[#allocation2 + $0xf]] }
  0x6f   :  { %s3620_s25 = sld [smem:[#allocation2 + $0x21]] }
  0x71   :  { %612 = vrot.lane.b32.xlu1 %v601_v37, %s2852_s30  ;;  %610 = vrot.lane.b32.xlu0 %v600_v39, %s2852_s30  ;;  %v129_v37 = vmul.f32 %v126_v17, %v2882_v0  ;;  %v3179_v39 = vld [vmem:[%s5260_s0 + $0x70] sm:$0xff] }
  0x72   :  { %5326 = vst [vmem:[#allocation10_spill] sm:$0xff] %v3179_v39 }
  0x75   :  { %654 = vrot.lane.b32.xlu1 %v645_v43, %s2852_s30  ;;  %652 = vrot.lane.b32.xlu0 %v644_v44, %s2852_s30  ;;  %v131_v43 = vadd.f32 %v127_v22, %v123_v31  ;;  %v3187_v44 = vld [vmem:[%s5260_s0 + $0x78] sm:$0x7f]  ;;  %v173_v22 = vmul.f32 %v2913_v11, %v172_v58 }
  0x76   :  { %5327 = vst [vmem:[#allocation11_spill] sm:$0xff] %v3187_v44 }
  0x79   :  { %658 = vrot.lane.b32.xlu1 %v647_v46, %s2852_s30  ;;  %656 = vrot.lane.b32.xlu0 %v646_v48, %s2852_s30  ;;  %v130_v46 = vmul.f32 %v126_v17, %v2892_v3  ;;  %v128_v48 = vmul.f32 %v126_v17, %v2897_v4 }
  0x7d   :  { %700 = vrot.lane.b32.xlu1 %v691_v52, %s2852_s30  ;;  %698 = vrot.lane.b32.xlu0 %v690_v53, %s2852_s30  ;;  %v828_v52 = vmul.f32 %v3025_v47, %v827_v35  ;;  %v3198_v53 = vld [vmem:[%s5260_s0 + $0x68] sm:$0xff] }
  0x7e   :  { %5328 = vst [vmem:[#allocation12_spill] sm:$0xff] %v3198_v53  ;;  %v138_v7 = vmul.f32 %v3198_v53, %v136_v34 }
  0x81   :  { %704 = vrot.lane.b32.xlu1 %v693_v55, %s2852_s30  ;;  %702 = vrot.lane.b32.xlu0 %v692_v57, %s2852_s30  ;;  %v139_v55 = vmul.f32 %v3179_v39, %v136_v34  ;;  %v133_v57 = vadd.f32 %v129_v37, %v123_v31  ;;  %v3218_v37 = vld [vmem:[%s5260_s0 + $0x120] sm:$0xff] }
  0x82   :  { %5329 = vst [vmem:[#allocation13_spill] sm:$0xff] %v3218_v37 }
  0x83   :  { %v143_v17 = vadd.f32 %v139_v55, %v133_v57  ;;  %v218_v57 = vstv %s3200_s11  ;;  %s3431_s11 = sld [smem:[#allocation2 + $0x16]] }
  0x85   :  { %746 = vrot.lane.b32.xlu1 %v737_v61, %s2852_s30  ;;  %744 = vrot.lane.b32.xlu0 %v736_v62, %s2852_s30  ;;  %v140_v61 = vmul.f32 %v3187_v44, %v136_v34  ;;  %v141_v62 = vadd.f32 %v137_v40, %v131_v43  ;;  %v182_v34 = vstv %s3181_s6  ;;  %v175_v40 = vmul.f32 %v2927_v15, %v172_v58  ;;  %s3296_s6 = sld [smem:[#allocation2 + $0x38]] }
  0x89   :  { %750 = vrot.lane.b32.xlu1 %v739_v2, %s2852_s30  ;;  %748 = vrot.lane.b32.xlu0 %v738_v6, %s2852_s30  ;;  %v134_v2 = vadd.f32 %v130_v46, %v123_v31  ;;  %v132_v6 = vadd.f32 %v128_v48, %v123_v31  ;;  %v3224_v48 = vld [vmem:[%s5260_s0 + $0x128] sm:$0xff] }
  0x8a   :  { %5330 = vst [vmem:[#allocation14_spill] sm:$0xff] %v3224_v48 }
  0x8b   :  { %v144_v46 = vadd.f32 %v140_v61, %v134_v2  ;;  %v174_v2 = vmul.f32 %v2908_v9, %v172_v58 }
  0x8d   :  { %792 = vrot.lane.b32.xlu1 %v783_v12, %s2852_s30  ;;  %790 = vrot.lane.b32.xlu0 %v782_v13, %s2852_s30  ;;  %v831_v12 = vmul.f32 %v3034_v50, %v827_v35  ;;  %v830_v13 = vmul.f32 %v3039_v51, %v827_v35  ;;  %v142_v35 = vadd.f32 %v138_v7, %v132_v6  ;;  %v3239_v7 = vld [vmem:[%s5260_s0 + $0x138] sm:$0x7f] }
  0x8e   :  { %v183_v6 = vmul.f32 %v3218_v37, %v182_v34  ;;  %5331 = vst [vmem:[#allocation15_spill] sm:$0xff] %v3239_v7  ;;  %v186_v39 = vmul.f32 %v3239_v7, %v182_v34 }
  0x91   :  { %796 = vrot.lane.b32.xlu1 %v785_v28, %s2852_s30  ;;  %794 = vrot.lane.b32.xlu0 %v784_v30, %s2852_s30  ;;  %v873_v28 = vstv %s2490_s29  ;;  %s3511_s29 = sld [smem:[#allocation2 + $0x1c]] }
  0x92   :  { %v874_v55 = vmul.f32 %v3053_v56, %v873_v28  ;;  %v876_v37 = vmul.f32 %v3067_v60, %v873_v28 }
  0x95   :  { %838 = vrot.lane.b32.xlu1 %v829_v49, %s2852_s30  ;;  %836 = vrot.lane.b32.xlu0 %v828_v52, %s2852_s30  ;;  %v176_v49 = vmul.f32 %v2922_v14, %v172_v58  ;;  %v875_v52 = vmul.f32 %v3048_v54, %v873_v28  ;;  %v877_v58 = vmul.f32 %v3062_v59, %v873_v28  ;;  %v3263_v28 = vld [vmem:[%s5260_s0 + $0x69] sm:$0xff] }
  0x96   :  { %5333 = vst [vmem:[#allocation17_spill] sm:$0xff] %v3263_v28 }
  0x97   :  { %v160_v30 = vpop.permute.xlu1 %159  ;;  %v156_v31 = vpop.permute.xlu0 %155 }
  0x98   :  { %v167_v43 = vadd.f32 %v156_v31, %v141_v62  ;;  %v169_v61 = vadd.f32 %v160_v30, %v143_v17  ;;  %v184_v17 = vmul.f32 %v3224_v48, %v182_v34  ;;  %v228_v48 = vstv %s3211_s13  ;;  %s3883_s13 = sld [smem:[#allocation2 + $0x2d]] }
  0x99   :  { %842 = vrot.lane.b32.xlu1 %v831_v12, %s2852_s30  ;;  %840 = vrot.lane.b32.xlu0 %v830_v13, %s2852_s30  ;;  %v3244_v12 = vld [vmem:[%s5260_s0 + $0x130] sm:$0xff] }
  0x9a   :  { %v177_v62 = vadd.f32 %v173_v22, %v167_v43  ;;  %5332 = vst [vmem:[#allocation16_spill] sm:$0xff] %v3244_v12  ;;  %v219_v43 = vmul.f32 %v218_v57, %v2941_v20  ;;  %v185_v44 = vmul.f32 %v3244_v12, %v182_v34  ;;  %v179_v53 = vadd.f32 %v175_v40, %v169_v61 }
  0x9b   :  { %v162_v13 = vpop.permute.xlu1 %161  ;;  %v158_v31 = vpop.permute.xlu0 %157  ;;  %v220_v34 = vmul.f32 %v218_v57, %v2936_v18  ;;  %v222_v12 = vmul.f32 %v218_v57, %v2950_v23  ;;  %v221_v40 = vmul.f32 %v218_v57, %v2955_v24 }
  0x9c   :  { %v170_v22 = vadd.f32 %v162_v13, %v144_v46  ;;  %v168_v30 = vadd.f32 %v158_v31, %v142_v35  ;;  %v187_v13 = vadd.f32 %v183_v6, %v177_v62  ;;  %v921_v62 = vmul.f32 %v3076_v63, %v919_v21 }
  0x9d   :  { %884 = vrot.lane.b32.xlu1 %v875_v52, %s2852_s30  ;;  %882 = vrot.lane.b32.xlu0 %v874_v55, %s2852_s30  ;;  %v3268_v52 = vld [vmem:[%s5260_s0 + $0x61] sm:$0xff]  ;;  %v920_v6 = vmul.f32 %v3081_v5, %v919_v21 }
  0x9e   :  { %v180_v46 = vadd.f32 %v176_v49, %v170_v22  ;;  %v178_v35 = vadd.f32 %v174_v2, %v168_v30  ;;  %5334 = vst [vmem:[#allocation18_spill] sm:$0xff] %v3268_v52  ;;  %v264_v2 = vstv %s3226_s18  ;;  %v230_v22 = vmul.f32 %v3263_v28, %v228_v48  ;;  %s3349_s18 = sld [smem:[#allocation2 + $0x10]] }
  0x9f   :  { %v204_v55 = vpop.permute.xlu1 %203  ;;  %v202_v31 = vpop.permute.xlu0 %201  ;;  %v229_v30 = vmul.f32 %v3268_v52, %v228_v48  ;;  %v266_v52 = vmul.f32 %v2964_v27, %v264_v2  ;;  %v274_v27 = vstv %s3258_s22  ;;  %s3486_s22 = sld [smem:[#allocation2 + $0x19]] }
  0xa0   :  { %v188_v49 = vadd.f32 %v184_v17, %v178_v35  ;;  %v213_v61 = vadd.f32 %v202_v31, %v187_v13  ;;  %v190_v17 = vadd.f32 %v186_v39, %v180_v46  ;;  %v189_v35 = vadd.f32 %v185_v44, %v179_v53  ;;  %v3285_v13 = vld [vmem:[%s5260_s0 + $0x79] sm:$0x7f] }
  0xa1   :  { %888 = vrot.lane.b32.xlu1 %v877_v58, %s2852_s30  ;;  %886 = vrot.lane.b32.xlu0 %v876_v37, %s2852_s30  ;;  %v3290_v37 = vld [vmem:[%s5260_s0 + $0x71] sm:$0xff]  ;;  %v923_v46 = vmul.f32 %v3090_v8, %v919_v21 }
  0xa2   :  { %v214_v7 = vadd.f32 %v204_v55, %v188_v49  ;;  %v223_v57 = vadd.f32 %v219_v43, %v213_v61  ;;  %v265_v55 = vmul.f32 %v2969_v29, %v264_v2  ;;  %v965_v43 = vstv %s3248_s21  ;;  %s3370_s21 = sld [smem:[#allocation2 + $0x12]] }
  0xa3   :  { %v208_v58 = vpop.permute.xlu1 %207  ;;  %v206_v31 = vpop.permute.xlu0 %205  ;;  %v922_v49 = vmul.f32 %v3095_v10, %v919_v21  ;;  %v232_v61 = vmul.f32 %v3285_v13, %v228_v48  ;;  %v231_v28 = vmul.f32 %v3290_v37, %v228_v48  ;;  %v3314_v21 = vld [vmem:[%s5260_s0 + $0x80] sm:$0xff] }
  0xa4   :  { %v224_v39 = vadd.f32 %v220_v34, %v214_v7  ;;  %v216_v44 = vadd.f32 %v208_v58, %v190_v17  ;;  %v215_v53 = vadd.f32 %v206_v31, %v189_v35  ;;  %v233_v35 = vadd.f32 %v229_v30, %v223_v57  ;;  %5336 = vst [vmem:[#allocation20_spill] sm:$0xff] %v3314_v21 }
  0xa5   :  { %930 = vrot.lane.b32.xlu1 %v921_v62, %s2852_s30  ;;  %928 = vrot.lane.b32.xlu0 %v920_v6, %s2852_s30  ;;  %v3309_v62 = vld [vmem:[%s5260_s0 + $0x88] sm:$0xff]  ;;  %v268_v58 = vmul.f32 %v2978_v32, %v264_v2  ;;  %v966_v30 = vmul.f32 %v3109_v19, %v965_v43 }
  0xa6   :  { %v226_v7 = vadd.f32 %v222_v12, %v216_v44  ;;  %v225_v34 = vadd.f32 %v221_v40, %v215_v53  ;;  %v234_v17 = vadd.f32 %v230_v22, %v224_v39  ;;  %5335 = vst [vmem:[#allocation19_spill] sm:$0xff] %v3309_v62  ;;  %v267_v40 = vmul.f32 %v2983_v33, %v264_v2  ;;  %v3330_v2 = vld [vmem:[%s5260_s0 + $0x98] sm:$0x7f] }
  0xa7   :  { %v250_v6 = vpop.permute.xlu1 %249  ;;  %v248_v48 = vpop.permute.xlu0 %247  ;;  %v967_v22 = vmul.f32 %v3104_v16, %v965_v43  ;;  %v276_v57 = vmul.f32 %v3309_v62, %v274_v27  ;;  %v310_v39 = vstv %s3280_s27  ;;  %v275_v44 = vmul.f32 %v3314_v21, %v274_v27  ;;  %5337 = vst [vmem:[#allocation21_spill] sm:$0xff] %v3330_v2  ;;  %s3394_s27 = sld [smem:[#allocation2 + $0x13]] }
  0xa8   :  { %v260_v31 = vadd.f32 %v250_v6, %v234_v17  ;;  %v259_v12 = vadd.f32 %v248_v48, %v233_v35  ;;  %v236_v35 = vadd.f32 %v232_v61, %v226_v7  ;;  %v235_v6 = vadd.f32 %v231_v28, %v225_v34 }
  0xa9   :  { %934 = vrot.lane.b32.xlu1 %v923_v46, %s2852_s30  ;;  %932 = vrot.lane.b32.xlu0 %v922_v49, %s2852_s30  ;;  %v3335_v46 = vld [vmem:[%s5260_s0 + $0x90] sm:$0xff]  ;;  %v969_v21 = vmul.f32 %v3118_v25, %v965_v43  ;;  %v312_v61 = vmul.f32 %v2992_v36, %v310_v39  ;;  %v311_v7 = vmul.f32 %v2997_v38, %v310_v39  ;;  %v320_v62 = vstv %s3304_s7  ;;  %s3761_s7 = sld [smem:[#allocation2 + $0x27]] }
  0xaa   :  { %v270_v53 = vadd.f32 %v266_v52, %v260_v31  ;;  %v269_v17 = vadd.f32 %v265_v55, %v259_v12  ;;  %5338 = vst [vmem:[#allocation22_spill] sm:$0xff] %v3335_v46  ;;  %v968_v52 = vmul.f32 %v3123_v26, %v965_v43  ;;  %v278_v34 = vmul.f32 %v3330_v2, %v274_v27 }
  0xab   :  { %v254_v49 = vpop.permute.xlu1 %253  ;;  %v252_v48 = vpop.permute.xlu0 %251  ;;  %v277_v31 = vmul.f32 %v3335_v46, %v274_v27  ;;  %v1047_v12 = vstv %s3296_s6  ;;  %v314_v46 = vmul.f32 %v3006_v41, %v310_v39  ;;  %v313_v2 = vmul.f32 %v3011_v42, %v310_v39  ;;  %s3409_s6 = sld [smem:[#allocation2 + $0x15]] }
  0xac   :  { %v262_v55 = vadd.f32 %v254_v49, %v236_v35  ;;  %v261_v28 = vadd.f32 %v252_v48, %v235_v6  ;;  %v280_v6 = vadd.f32 %v276_v57, %v270_v53  ;;  %v279_v49 = vadd.f32 %v275_v44, %v269_v17  ;;  %v3354_v48 = vld [vmem:[%s5260_s0 + $0x148] sm:$0xff] }
  0xad   :  { %976 = vrot.lane.b32.xlu1 %v967_v22, %s2852_s30  ;;  %974 = vrot.lane.b32.xlu0 %v966_v30, %s2852_s30  ;;  %v3359_v22 = vld [vmem:[%s5260_s0 + $0x140] sm:$0xff]  ;;  %v1049_v57 = vmul.f32 %v1047_v12, %v2897_v4  ;;  %v356_v44 = vstv %s3319_s12  ;;  %v1048_v53 = vmul.f32 %v1047_v12, %v2887_v1  ;;  %v322_v17 = vmul.f32 %v3354_v48, %v320_v62  ;;  %s3439_s12 = sld [smem:[#allocation2 + $0x41]] }
  0xae   :  { %v272_v43 = vadd.f32 %v268_v58, %v262_v55  ;;  %v271_v35 = vadd.f32 %v267_v40, %v261_v28  ;;  %v321_v55 = vmul.f32 %v3359_v22, %v320_v62  ;;  %v3375_v4 = vld [vmem:[%s5260_s0 + $0x158] sm:$0x7f]  ;;  %v3380_v1 = vld [vmem:[%s5260_s0 + $0x150] sm:$0xff] }
  0xaf   :  { %v296_v27 = vpop.permute.xlu1 %295  ;;  %v294_v30 = vpop.permute.xlu0 %293 }
  0xb0   :  { %v306_v58 = vadd.f32 %v296_v27, %v280_v6  ;;  %v305_v40 = vadd.f32 %v294_v30, %v279_v49  ;;  %v282_v6 = vadd.f32 %v278_v34, %v272_v43  ;;  %v281_v49 = vadd.f32 %v277_v31, %v271_v35 }
  0xb1   :  { %980 = vrot.lane.b32.xlu1 %v969_v21, %s2852_s30  ;;  %978 = vrot.lane.b32.xlu0 %v968_v52, %s2852_s30  ;;  %v358_v27 = vmul.f32 %v3020_v45, %v356_v44  ;;  %v1051_v31 = vmul.f32 %v1047_v12, %v2892_v3  ;;  %v1093_v43 = vstv %s3341_s17  ;;  %v1050_v35 = vmul.f32 %v1047_v12, %v2882_v0  ;;  %v3404_v0 = vld [vmem:[%s5260_s0 + $0x81] sm:$0xff]  ;;  %s3455_s17 = sld [smem:[#allocation2 + $0x18]] }
  0xb2   :  { %v316_v28 = vadd.f32 %v312_v61, %v306_v58  ;;  %v315_v39 = vadd.f32 %v311_v7, %v305_v40  ;;  %v357_v61 = vmul.f32 %v3025_v47, %v356_v44  ;;  %v324_v30 = vmul.f32 %v3375_v4, %v320_v62 }
  0xb3   :  { %v300_v21 = vpop.permute.xlu1 %299  ;;  %v298_v52 = vpop.permute.xlu0 %297  ;;  %v323_v58 = vmul.f32 %v3380_v1, %v320_v62  ;;  %v366_v40 = vstv %s3349_s18  ;;  %s4048_s18 = sld [smem:[#allocation2 + $0x3a]] }
  0xb4   :  { %v308_v7 = vadd.f32 %v300_v21, %v282_v6  ;;  %v307_v34 = vadd.f32 %v298_v52, %v281_v49  ;;  %v326_v21 = vadd.f32 %v322_v17, %v316_v28  ;;  %v325_v3 = vadd.f32 %v321_v55, %v315_v39 }
  0xb5   :  { %1058 = vrot.lane.b32.xlu1 %v1049_v57, %s2852_s30  ;;  %1056 = vrot.lane.b32.xlu0 %v1048_v53, %s2852_s30  ;;  %v3399_v57 = vld [vmem:[%s5260_s0 + $0x89] sm:$0xff]  ;;  %v360_v53 = vmul.f32 %v3034_v50, %v356_v44  ;;  %v1095_v17 = vmul.f32 %v2908_v9, %v1093_v43  ;;  %v1094_v55 = vmul.f32 %v2913_v11, %v1093_v43  ;;  %v402_v39 = vstv %s3370_s21  ;;  %s3478_s21 = sld [smem:[#allocation2 + $0x1b]] }
  0xb6   :  { %v318_v6 = vadd.f32 %v314_v46, %v308_v7  ;;  %v317_v49 = vadd.f32 %v313_v2, %v307_v34  ;;  %v359_v2 = vmul.f32 %v3039_v51, %v356_v44  ;;  %v368_v28 = vmul.f32 %v3399_v57, %v366_v40  ;;  %v3420_v9 = vld [vmem:[%s5260_s0 + $0x99] sm:$0x7f]  ;;  %v3425_v11 = vld [vmem:[%s5260_s0 + $0x91] sm:$0xff] }
  0xb7   :  { %v342_v12 = vpop.permute.xlu1 %341  ;;  %v340_v62 = vpop.permute.xlu0 %339  ;;  %v367_v7 = vmul.f32 %v3404_v0, %v366_v40 }
  0xb8   :  { %v352_v52 = vadd.f32 %v342_v12, %v326_v21  ;;  %v351_v46 = vadd.f32 %v340_v62, %v325_v3  ;;  %v328_v3 = vadd.f32 %v324_v30, %v318_v6  ;;  %v327_v51 = vadd.f32 %v323_v58, %v317_v49 }
  0xb9   :  { %1062 = vrot.lane.b32.xlu1 %v1051_v31, %s2852_s30  ;;  %1060 = vrot.lane.b32.xlu0 %v1050_v35, %s2852_s30  ;;  %v1097_v35 = vmul.f32 %v2922_v14, %v1093_v43  ;;  %v404_v58 = vmul.f32 %v3048_v54, %v402_v39  ;;  %v1139_v6 = vstv %s3386_s26  ;;  %v403_v49 = vmul.f32 %v3053_v56, %v402_v39  ;;  %v3449_v56 = vld [vmem:[%s5260_s0 + $0xa0] sm:$0xff]  ;;  %s4911_s26 = sld [smem:[#allocation2 + $0x7b]] }
  0xba   :  { %v362_v34 = vadd.f32 %v358_v27, %v352_v52  ;;  %v361_v21 = vadd.f32 %v357_v61, %v351_v46  ;;  %v1096_v27 = vmul.f32 %v2927_v15, %v1093_v43  ;;  %v370_v12 = vmul.f32 %v3420_v9, %v366_v40  ;;  %v3444_v46 = vld [vmem:[%s5260_s0 + $0xa8] sm:$0xff] }
  0xbb   :  { %v346_v44 = vpop.permute.xlu1 %345  ;;  %v344_v31 = vpop.permute.xlu0 %343  ;;  %v369_v62 = vmul.f32 %v3425_v11, %v366_v40  ;;  %v412_v14 = vstv %s3394_s27  ;;  %s3500_s27 = sld [smem:[#allocation2 + $0x47]] }
  0xbc   :  { %v354_v61 = vadd.f32 %v346_v44, %v328_v3  ;;  %v353_v30 = vadd.f32 %v344_v31, %v327_v51  ;;  %v372_v54 = vadd.f32 %v368_v28, %v362_v34  ;;  %v371_v52 = vadd.f32 %v367_v7, %v361_v21  ;;  %v3470_v31 = vld [vmem:[%s5260_s0 + $0xb0] sm:$0xff] }
  0xbd   :  { %1104 = vrot.lane.b32.xlu1 %v1095_v17, %s2852_s30  ;;  %1102 = vrot.lane.b32.xlu0 %v1094_v55, %s2852_s30  ;;  %v406_v55 = vmul.f32 %v3062_v59, %v402_v39  ;;  %v405_v3 = vmul.f32 %v3067_v60, %v402_v39  ;;  %v1141_v28 = vmul.f32 %v1139_v6, %v2936_v18  ;;  %v448_v7 = vstv %s3409_s6  ;;  %v3465_v18 = vld [vmem:[%s5260_s0 + $0xb8] sm:$0x7f]  ;;  %s3970_s6 = sld [smem:[#allocation2 + $0x34]] }
  0xbe   :  { %v364_v15 = vadd.f32 %v360_v53, %v354_v61  ;;  %v363_v43 = vadd.f32 %v359_v2, %v353_v30  ;;  %v1140_v34 = vmul.f32 %v1139_v6, %v2941_v20  ;;  %v414_v21 = vmul.f32 %v3444_v46, %v412_v14 }
  0xbf   :  { %v388_v17 = vpop.permute.xlu1 %387  ;;  %v386_v40 = vpop.permute.xlu0 %385  ;;  %v413_v51 = vmul.f32 %v3449_v56, %v412_v14  ;;  %v1143_v61 = vmul.f32 %v1139_v6, %v2950_v23  ;;  %v458_v23 = vstv %s3431_s11  ;;  %s4004_s11 = sld [smem:[#allocation2 + $0x74]] }
  0xc0   :  { %v398_v53 = vadd.f32 %v388_v17, %v372_v54  ;;  %v397_v2 = vadd.f32 %v386_v40, %v371_v52  ;;  %v374_v60 = vadd.f32 %v370_v12, %v364_v15  ;;  %v373_v39 = vadd.f32 %v369_v62, %v363_v43 }
  0xc1   :  { %1108 = vrot.lane.b32.xlu1 %v1097_v35, %s2852_s30  ;;  %1106 = vrot.lane.b32.xlu0 %v1096_v27, %s2852_s30  ;;  %v450_v27 = vmul.f32 %v3076_v63, %v448_v7  ;;  %v1142_v12 = vmul.f32 %v1139_v6, %v2955_v24  ;;  %v416_v62 = vmul.f32 %v3465_v18, %v412_v14  ;;  %v1185_v15 = vstv %s3439_s12  ;;  %v3491_v24 = vld [vmem:[%s5260_s0 + $0x168] sm:$0xff]  ;;  %s3548_s12 = sld [smem:[#allocation2 + $0x1e]] }
  0xc2   :  { %v408_v59 = vadd.f32 %v404_v58, %v398_v53  ;;  %v407_v44 = vadd.f32 %v403_v49, %v397_v2  ;;  %v449_v49 = vmul.f32 %v3081_v5, %v448_v7  ;;  %v415_v63 = vmul.f32 %v3470_v31, %v412_v14  ;;  %5339 = vst [vmem:[#allocation23_spill] sm:$0xff] %v3491_v24  ;;  %v3496_v6 = vld [vmem:[%s5260_s0 + $0x160] sm:$0xff] }
  0xc3   :  { %v392_v20 = vpop.permute.xlu1 %391  ;;  %v390_v35 = vpop.permute.xlu0 %389  ;;  %5340 = vst [vmem:[#allocation24_spill] sm:$0xff] %v3496_v6  ;;  %v452_v40 = vmul.f32 %v3090_v8, %v448_v7  ;;  %v451_v53 = vmul.f32 %v3095_v10, %v448_v7  ;;  %v5341_v2 = vld [vmem:[#allocation8_spill] sm:$0xff]  ;;  %v459_v8 = vmul.f32 %v3496_v6, %v458_v23 }
  0xc4   :  { %v400_v30 = vadd.f32 %v392_v20, %v374_v60  ;;  %v399_v58 = vadd.f32 %v390_v35, %v373_v39  ;;  %v418_v5 = vadd.f32 %v414_v21, %v408_v59  ;;  %v417_v52 = vadd.f32 %v413_v51, %v407_v44  ;;  %v3516_v60 = vld [vmem:[%s5260_s0 + $0x178] sm:$0x7f] }
  0xc5   :  { %1150 = vrot.lane.b32.xlu1 %v1141_v28, %s2852_s30  ;;  %1148 = vrot.lane.b32.xlu0 %v1140_v34, %s2852_s30  ;;  %v1187_v28 = vmul.f32 %v5341_v2, %v1185_v15  ;;  %v494_v34 = vstv %s3455_s17  ;;  %v1186_v21 = vmul.f32 %v2969_v29, %v1185_v15  ;;  %v460_v51 = vmul.f32 %v3491_v24, %v458_v23  ;;  %v3521_v29 = vld [vmem:[%s5260_s0 + $0x170] sm:$0xff]  ;;  %s3691_s17 = sld [smem:[#allocation2 + $0x25]] }
  0xc6   :  { %v410_v43 = vadd.f32 %v406_v55, %v400_v30  ;;  %v409_v54 = vadd.f32 %v405_v3, %v399_v58  ;;  %5342 = vst [vmem:[#allocation8_spill] sm:$0xff] %v3516_v60  ;;  %5343 = vst [vmem:[#allocation25_spill] sm:$0xff] %v3521_v29  ;;  %v496_v35 = vmul.f32 %v3104_v16, %v494_v34  ;;  %v3790_v24 = vld [vmem:[%s5260_s0 + $0x20] sm:$0xff] }
  0xc7   :  { %v434_v14 = vpop.permute.xlu1 %433  ;;  %v432_v17 = vpop.permute.xlu0 %431  ;;  %v1188_v30 = vmul.f32 %v2983_v33, %v1185_v15  ;;  %v461_v16 = vmul.f32 %v3521_v29, %v458_v23  ;;  %v504_v33 = vstv %s3486_s22  ;;  %s4083_s22 = sld [smem:[#allocation2 + $0x77]] }
  0xc8   :  { %v444_v55 = vadd.f32 %v434_v14, %v418_v5  ;;  %v443_v3 = vadd.f32 %v432_v17, %v417_v52  ;;  %v420_v59 = vadd.f32 %v416_v62, %v410_v43  ;;  %v419_v44 = vadd.f32 %v415_v63, %v409_v54  ;;  %v3543_v52 = vld [vmem:[%s5260_s0 + $0xa1] sm:$0xff] }
  0xc9   :  { %1154 = vrot.lane.b32.xlu1 %v1143_v61, %s2852_s30  ;;  %1152 = vrot.lane.b32.xlu0 %v1142_v12, %s2852_s30  ;;  %v1189_v61 = vmul.f32 %v2978_v32, %v1185_v15  ;;  %v1231_v12 = vstv %s3474_s2  ;;  %v577_v62 = vstv %s3478_s21  ;;  %v462_v63 = vmul.f32 %v3516_v60, %v458_v23  ;;  %5345 = vst [vmem:[#allocation27_spill] sm:$0xff] %v3543_v52  ;;  %s4859_s2 = sld [smem:[#allocation2 + $0x60]] }
  0xca   :  { %v454_v10 = vadd.f32 %v450_v27, %v444_v55  ;;  %v453_v7 = vadd.f32 %v449_v49, %v443_v3  ;;  %v495_v27 = vmul.f32 %v3109_v19, %v494_v34  ;;  %v498_v43 = vmul.f32 %v3118_v25, %v494_v34  ;;  %v3537_v32 = vld [vmem:[%s5260_s0 + $0xa9] sm:$0xff] }
  0xcb   :  { %v438_v39 = vpop.permute.xlu1 %437  ;;  %v436_v20 = vpop.permute.xlu0 %435  ;;  %5344 = vst [vmem:[#allocation26_spill] sm:$0xff] %v3537_v32  ;;  %v497_v23 = vmul.f32 %v3123_v26, %v494_v34  ;;  %v1233_v17 = vmul.f32 %v2992_v36, %v1231_v12  ;;  %v1232_v55 = vmul.f32 %v2997_v38, %v1231_v12  ;;  %v3560_v26 = vld [vmem:[%s5260_s0 + $0xb9] sm:$0x7f]  ;;  %v574_v36 = vstv %s3504_s28  ;;  %s3633_s28 = sld [smem:[#allocation2 + $0x22]] }
  0xcc   :  { %v446_v58 = vadd.f32 %v438_v39, %v420_v59  ;;  %v445_v49 = vadd.f32 %v436_v20, %v419_v44  ;;  %v464_v54 = vadd.f32 %v460_v51, %v454_v10  ;;  %v463_v5 = vadd.f32 %v459_v8, %v453_v7  ;;  %5346 = vst [vmem:[#allocation28_spill] sm:$0xff] %v3560_v26  ;;  %v3574_v44 = vld [vmem:[%s5260_s0 + $0xb1] sm:$0xff] }
  0xcd   :  { %1196 = vrot.lane.b32.xlu1 %v1187_v28, %s2852_s30  ;;  %1194 = vrot.lane.b32.xlu0 %v1186_v21, %s2852_s30  ;;  %v506_v28 = vmul.f32 %v3537_v32, %v504_v33  ;;  %v505_v38 = vmul.f32 %v3543_v52, %v504_v33  ;;  %v1235_v34 = vmul.f32 %v3006_v41, %v1231_v12  ;;  %v3568_v21 = vstv %s3500_s27  ;;  %v3581_v41 = vld [vmem:[%s5260_s0] sm:$0xff]  ;;  %v5359_v32 = vld [vmem:[#allocation18_spill] sm:$0xff]  ;;  %s3839_s27 = sld [smem:[#allocation2 + $0x2b]] }
  0xce   :  { %v456_v19 = vadd.f32 %v452_v40, %v446_v58  ;;  %v455_v15 = vadd.f32 %v451_v53, %v445_v49  ;;  %v3553_v40 = vld [vmem:[%s5260_s0 + $0x8] sm:$0xff]  ;;  %v587_v51 = vstv %s3511_s29  ;;  %5347 = vst [vmem:[#allocation29_spill] sm:$0xff] %v3574_v44  ;;  %s3639_s29 = sld [smem:[#allocation2 + $0x4d]] }
  0xcf   :  { %v480_v14 = vpop.permute.xlu1 %479  ;;  %v478_v25 = vpop.permute.xlu0 %477  ;;  %v579_v53 = vmul.f32 %v3553_v40, %v577_v62 }
  0xd0   :  { %v490_v3 = vadd.f32 %v480_v14, %v464_v54  ;;  %v489_v2 = vadd.f32 %v478_v25, %v463_v5  ;;  %v466_v7 = vadd.f32 %v462_v63, %v456_v19  ;;  %v465_v59 = vadd.f32 %v461_v16, %v455_v15  ;;  %v5348_v63 = vld [vmem:[#allocation12_spill] sm:$0xff]  ;;  %v3601_v54 = vld [vmem:[%s5260_s0 + $0x10] sm:$0xff] }
  0xd1   :  { %1200 = vrot.lane.b32.xlu1 %v1189_v61, %s2852_s30  ;;  %1198 = vrot.lane.b32.xlu0 %v1188_v30, %s2852_s30  ;;  %v1234_v61 = vmul.f32 %v3011_v42, %v1231_v12  ;;  %v508_v30 = vmul.f32 %v3560_v26, %v504_v33  ;;  %v583_v58 = vadd.f32 %v579_v53, %v574_v36  ;;  %v3590_v42 = vld [vmem:[%s5260_s0 + $0x18] sm:$0x7f]  ;;  %v3731_v26 = vld [vmem:[%s5260_s0 + $0x108] sm:$0xff] }
  0xd2   :  { %v500_v8 = vadd.f32 %v496_v35, %v490_v3  ;;  %v499_v10 = vadd.f32 %v495_v27, %v489_v2  ;;  %v578_v35 = vmul.f32 %v3581_v41, %v577_v62  ;;  %v589_v16 = vmul.f32 %v5348_v63, %v587_v51 }
  0xd3   :  { %v484_v39 = vpop.permute.xlu1 %483  ;;  %v482_v20 = vpop.permute.xlu0 %481  ;;  %v581_v12 = vmul.f32 %v3590_v42, %v577_v62  ;;  %v507_v19 = vmul.f32 %v3574_v44, %v504_v33  ;;  %v1279_v15 = vmul.f32 %v3020_v45, %v3568_v21  ;;  %v580_v5 = vmul.f32 %v3601_v54, %v577_v62 }
  0xd4   :  { %v492_v27 = vadd.f32 %v484_v39, %v466_v7  ;;  %v491_v49 = vadd.f32 %v482_v20, %v465_v59  ;;  %v510_v53 = vadd.f32 %v506_v28, %v500_v8  ;;  %v1278_v33 = vmul.f32 %v3025_v47, %v3568_v21  ;;  %v5349_v7 = vld [vmem:[#allocation9_spill] sm:$0xff] }
  0xd5   :  { %1242 = vrot.lane.b32.xlu1 %v1233_v17, %s2852_s30  ;;  %1240 = vrot.lane.b32.xlu0 %v1232_v55, %s2852_s30  ;;  %v509_v17 = vadd.f32 %v505_v38, %v499_v10  ;;  %v623_v2 = vstv %s3548_s12  ;;  %v582_v45 = vadd.f32 %v578_v35, %v574_v36  ;;  %v588_v59 = vmul.f32 %v5349_v7, %v587_v51  ;;  %v5351_v38 = vld [vmem:[#allocation10_spill] sm:$0xff]  ;;  %s4020_s12 = sld [smem:[#allocation2 + $0x39]] }
  0xd6   :  { %v502_v14 = vadd.f32 %v498_v43, %v492_v27  ;;  %v501_v25 = vadd.f32 %v497_v23, %v491_v49  ;;  %v593_v62 = vadd.f32 %v589_v16, %v583_v58  ;;  %v585_v63 = vadd.f32 %v581_v12, %v574_v36  ;;  %v5350_v43 = vld [vmem:[#allocation11_spill] sm:$0xff] }
  0xd7   :  { %v526_v3 = vpop.permute.xlu1 %525  ;;  %v524_v55 = vpop.permute.xlu0 %523  ;;  %v591_v23 = vmul.f32 %v5350_v43, %v587_v51  ;;  %v584_v28 = vadd.f32 %v580_v5, %v574_v36  ;;  %v590_v47 = vmul.f32 %v5351_v38, %v587_v51  ;;  %v592_v36 = vadd.f32 %v588_v59, %v582_v45  ;;  %v3662_v59 = vld [vmem:[%s5260_s0 + $0xd8] sm:$0x7f] }
  0xd8   :  { %v3610_v39 = vadd.f32 %v526_v3, %v510_v53  ;;  %v3612_v20 = vadd.f32 %v524_v55, %v509_v17  ;;  %v512_v35 = vadd.f32 %v508_v30, %v502_v14  ;;  %v511_v27 = vadd.f32 %v507_v19, %v501_v25  ;;  %v3652_v25 = vld [vmem:[%s5260_s0 + $0x31] sm:$0xff] }
  0xd9   :  { %1246 = vrot.lane.b32.xlu1 %v1235_v34, %s2852_s30  ;;  %1244 = vrot.lane.b32.xlu0 %v1234_v61, %s2852_s30  ;;  %v3625_v34 = vld [vmem:[%s5260_s0 + $0xc8] sm:$0xff]  ;;  %v1281_v51 = vmul.f32 %v3034_v50, %v3568_v21  ;;  %v3631_v16 = vstv %s3584_s1  ;;  %v1280_v53 = vmul.f32 %v3652_v25, %v3568_v21  ;;  %v595_v17 = vadd.f32 %v591_v23, %v585_v63  ;;  %s4568_s1 = sld [smem:[#allocation2 + $0x6f]] }
  0xda   :  { %v540_v8 = vsub.f32 0.0, %v3610_v39  ;;  %v539_v10 = vsub.f32 0.0, %v3612_v20  ;;  %v625_v61 = vmul.f32 %v3625_v34, %v623_v2  ;;  %v3646_v50 = vld [vmem:[%s5260_s0 + $0xc0] sm:$0xff]  ;;  %v633_v3 = vstv %s3604_s24  ;;  %v3668_v21 = vld [vmem:[%s5260_s0 + $0x48] sm:$0xff]  ;;  %s3826_s24 = sld [smem:[#allocation2 + $0x2a]] }
  0xdb   :  { %v530_v58 = vpop.permute.xlu1 %529  ;;  %v528_v49 = vpop.permute.xlu0 %527  ;;  %v624_v14 = vmul.f32 %v3646_v50, %v623_v2  ;;  %v627_v43 = vmul.f32 %v3662_v59, %v623_v2  ;;  %v1325_v63 = vmul.f32 %v3668_v21, %v3631_v16  ;;  %v3675_v23 = vld [vmem:[%s5260_s0 + $0x40] sm:$0xff] }
  0xdc   :  { %v545_v30 = vmul.f32 1.442695, %v540_v8  ;;  %v543_v12 = vmul.f32 1.442695, %v539_v10  ;;  %v3635_v19 = vadd.f32 %v530_v58, %v512_v35  ;;  %v3637_v5 = vadd.f32 %v528_v49, %v511_v27  ;;  %v3686_v35 = vld [vmem:[%s5260_s0 + $0xd0] sm:$0xff] }
  0xdd   :  { %1288 = vrot.lane.b32.xlu1 %v1279_v15, %s2852_s30  ;;  %1286 = vrot.lane.b32.xlu0 %v1278_v33, %s2852_s30  ;;  %v594_v33 = vadd.f32 %v590_v47, %v584_v28  ;;  %v1324_v28 = vmul.f32 %v3675_v23, %v3631_v16  ;;  %v626_v27 = vmul.f32 %v3686_v35, %v623_v2  ;;  %v5352_v58 = vld [vmem:[#allocation14_spill] sm:$0xff] }
  0xde   :  { %2600 = vpow2.f32 %v545_v30  ;;  %v542_v15 = vsub.f32 0.0, %v3635_v19  ;;  %v541_v55 = vsub.f32 0.0, %v3637_v5  ;;  %v635_v49 = vmul.f32 %v5352_v58, %v633_v3  ;;  %v5353_v30 = vld [vmem:[#allocation13_spill] sm:$0xff]  ;;  %v5355_v58 = vld [vmem:[#allocation16_spill] sm:$0xff] }
  0xdf   :  { %2602 = vpow2.f32 %v543_v12  ;;  %v609_v45 = vpop.permute.xlu1 %608  ;;  %v607_v7 = vpop.permute.xlu0 %606  ;;  %v634_v12 = vmul.f32 %v5353_v30, %v633_v3  ;;  %v636_v30 = vmul.f32 %v5355_v58, %v633_v3  ;;  %5363 = vst [vmem:[#allocation13_spill] sm:$0xff] %v3790_v24 }
  0xe0   :  { %v549_v38 = vmul.f32 1.442695, %v542_v15  ;;  %v547_v47 = vmul.f32 1.442695, %v541_v55  ;;  %v619_v8 = vadd.f32 %v609_v45, %v593_v62  ;;  %v618_v10 = vadd.f32 %v607_v7, %v592_v36  ;;  %v3697_v55 = vld [vmem:[%s5260_s0 + $0x58] sm:$0x7f] }
  0xe1   :  { %1292 = vrot.lane.b32.xlu1 %v1281_v51, %s2852_s30  ;;  %1290 = vrot.lane.b32.xlu0 %v1280_v53, %s2852_s30  ;;  %v669_v51 = vstv %s3620_s25  ;;  %v1327_v2 = vmul.f32 %v3697_v55, %v3631_v16  ;;  %v5354_v45 = vld [vmem:[#allocation15_spill] sm:$0xff]  ;;  %s4602_s25 = sld [smem:[#allocation2 + $0x55]] }
  0xe2   :  { %2604 = vpow2.f32 %v549_v38  ;;  %v629_v62 = vadd.f32 %v625_v61, %v619_v8  ;;  %v628_v36 = vadd.f32 %v624_v14, %v618_v10  ;;  %v637_v7 = vmul.f32 %v5354_v45, %v633_v3 }
  0xe3   :  { %2606 = vpow2.f32 %v547_v47  ;;  %v613_v53 = vpop.permute.xlu1 %612  ;;  %v611_v15 = vpop.permute.xlu0 %610  ;;  %v1369_v61 = vstv %s3639_s29  ;;  %v679_v14 = vstv %s3633_s28  ;;  %v3712_v47 = vld [vmem:[%s5260_s0 + $0x9] sm:$0xff]  ;;  %s3949_s29 = sld [smem:[#allocation2 + $0x31]] }
  0xe4   :  { %v621_v44 = vadd.f32 %v613_v53, %v595_v17  ;;  %v620_v38 = vadd.f32 %v611_v15, %v594_v33  ;;  %5356 = vst [vmem:[#allocation12_spill] sm:$0xff] %v3712_v47  ;;  %v671_v8 = vmul.f32 %v3712_v47, %v669_v51  ;;  %v3718_v17 = vld [vmem:[%s5260_s0 + $0x1] sm:$0xff]  ;;  %v3724_v33 = vld [vmem:[%s5260_s0 + $0x50] sm:$0xff]  ;;  %v639_v53 = vadd.f32 %v635_v49, %v629_v62  ;;  %v3748_v49 = vld [vmem:[%s5260_s0 + $0x19] sm:$0x7f]  ;;  %s4218_s28 = sld [smem:[#allocation2 + $0x46]] }
  0xe5   :  { %1334 = vrot.lane.b32.xlu1 %v1325_v63, %s2852_s30  ;;  %1332 = vrot.lane.b32.xlu0 %v1324_v28, %s2852_s30  ;;  %5357 = vst [vmem:[#allocation9_spill] sm:$0xff] %v3718_v17  ;;  %v670_v3 = vmul.f32 %v3718_v17, %v669_v51  ;;  %v1326_v63 = vmul.f32 %v3724_v33, %v3631_v16  ;;  %v5358_v47 = vld [vmem:[#allocation17_spill] sm:$0xff]  ;;  %5360 = vst [vmem:[#allocation11_spill] sm:$0xff] %v3748_v49 }
  0xe6   :  { %v631_v28 = vadd.f32 %v627_v43, %v621_v44  ;;  %v630_v10 = vadd.f32 %v626_v27, %v620_v38  ;;  %v638_v15 = vadd.f32 %v634_v12, %v628_v36  ;;  %v1371_v17 = vmul.f32 %v3731_v26, %v1369_v61  ;;  %v3739_v44 = vld [vmem:[%s5260_s0 + $0x100] sm:$0xff]  ;;  %v3754_v12 = vld [vmem:[%s5260_s0 + $0x11] sm:$0xff] }
  0xe7   :  { %v655_v45 = vpop.permute.xlu1 %654  ;;  %v653_v58 = vpop.permute.xlu0 %652  ;;  %v681_v52 = vmul.f32 %v5358_v47, %v679_v14  ;;  %v680_v29 = vmul.f32 %v5359_v32, %v679_v14  ;;  %v1370_v43 = vmul.f32 %v3739_v44, %v1369_v61  ;;  %v715_v27 = vstv %s3679_s14  ;;  %5361 = vst [vmem:[#allocation10_spill] sm:$0xff] %v3754_v12  ;;  %s3783_s14 = sld [smem:[#allocation2 + $0x28]] }
  0xe8   :  { %v665_v60 = vadd.f32 %v655_v45, %v639_v53  ;;  %v664_v16 = vadd.f32 %v653_v58, %v638_v15  ;;  %v673_v32 = vmul.f32 %v3748_v49, %v669_v51  ;;  %v672_v62 = vmul.f32 %v3754_v12, %v669_v51  ;;  %v3766_v49 = vld [vmem:[%s5260_s0 + $0x28] sm:$0xff] }
  0xe9   :  { %1338 = vrot.lane.b32.xlu1 %v1327_v2, %s2852_s30  ;;  %1336 = vrot.lane.b32.xlu0 %v1326_v63, %s2852_s30  ;;  %v683_v36 = vmul.f32 %v3285_v13, %v679_v14  ;;  %v3759_v38 = vstv %s3691_s17  ;;  %v641_v63 = vadd.f32 %v637_v7, %v631_v28  ;;  %v640_v53 = vadd.f32 %v636_v30, %v630_v10  ;;  %v3772_v13 = vld [vmem:[%s5260_s0 + $0x118] sm:$0x7f]  ;;  %s3795_s17 = sld [smem:[#allocation2 + $0x53]] }
  0xea   :  { %v675_v2 = vadd.f32 %v671_v8, %v665_v60  ;;  %v674_v47 = vadd.f32 %v670_v3, %v664_v16  ;;  %5362 = vst [vmem:[#allocation14_spill] sm:$0xff] %v3766_v49  ;;  %v717_v51 = vmul.f32 %v3766_v49, %v715_v27  ;;  %v1373_v60 = vmul.f32 %v3772_v13, %v1369_v61  ;;  %v3778_v7 = vld [vmem:[%s5260_s0 + $0x110] sm:$0xff] }
  0xeb   :  { %v2601_v15 = vpop.eup %2600  ;;  %v659_v45 = vpop.permute.xlu1 %658  ;;  %v1372_v30 = vmul.f32 %v3778_v7, %v1369_v61  ;;  %v682_v8 = vmul.f32 %v3290_v37, %v679_v14  ;;  %v1415_v49 = vstv %s3705_s20  ;;  %v716_v37 = vmul.f32 %v3790_v24, %v715_v27  ;;  %v5364_v61 = vld [vmem:[#allocation19_spill] sm:$0xff] }
  0xec   :  { %v657_v58 = vpop.permute.xlu0 %656  ;;  %v2603_v3 = vpop.eup %2602  ;;  %v552_v28 = vadd.f32 1.0, %v2601_v15  ;;  %v667_v10 = vadd.f32 %v659_v45, %v641_v63  ;;  %v685_v6 = vadd.f32 %v681_v52, %v675_v2  ;;  %v727_v14 = vmul.f32 %v5364_v61, %v3759_v38  ;;  %v3800_v2 = vld [vmem:[%s5260_s0 + $0x49] sm:$0xff] }
  0xed   :  { %v666_v16 = vadd.f32 %v657_v58, %v640_v53  ;;  %v551_v12 = vadd.f32 1.0, %v2603_v3  ;;  %1380 = vrot.lane.b32.xlu1 %v1371_v17, %s2852_s30  ;;  %1378 = vrot.lane.b32.xlu0 %v1370_v43, %s2852_s30  ;;  %v684_v15 = vadd.f32 %v680_v29, %v674_v47  ;;  %v1417_v45 = vmul.f32 %v3800_v2, %v1415_v49  ;;  %v3806_v58 = vld [vmem:[%s5260_s0 + $0x41] sm:$0xff] }
  0xee   :  { %2608 = vrcp.f32 %v552_v28  ;;  %v677_v63 = vadd.f32 %v673_v32, %v667_v10  ;;  %5365 = vst [vmem:[#allocation15_spill] sm:$0xff] %v3806_v58  ;;  %v1416_v32 = vmul.f32 %v3806_v58, %v1415_v49  ;;  %v5366_v29 = vld [vmem:[#allocation20_spill] sm:$0xff]  ;;  %v3814_v10 = vld [vmem:[%s5260_s0 + $0x38] sm:$0x7f] }
  0xef   :  { %v676_v53 = vadd.f32 %v672_v62, %v666_v16  ;;  %v2605_v17 = vpop.eup %2604  ;;  %2610 = vrcp.f32 %v551_v12  ;;  %v701_v43 = vpop.permute.xlu1 %700  ;;  %v726_v12 = vmul.f32 %v5366_v29, %v3759_v38  ;;  %5367 = vst [vmem:[#allocation16_spill] sm:$0xff] %v3814_v10  ;;  %v719_v16 = vmul.f32 %v3814_v10, %v715_v27  ;;  %v3822_v29 = vld [vmem:[%s5260_s0 + $0x30] sm:$0xff] }
  0xf0   :  { %v699_v52 = vpop.permute.xlu0 %698  ;;  %v2607_v62 = vpop.eup %2606  ;;  %v554_v47 = vadd.f32 1.0, %v2605_v17  ;;  %v711_v3 = vadd.f32 %v701_v43, %v685_v6  ;;  %v687_v24 = vadd.f32 %v683_v36, %v677_v63  ;;  %5368 = vst [vmem:[#allocation17_spill] sm:$0xff] %v3822_v29  ;;  %v718_v6 = vmul.f32 %v3822_v29, %v715_v27  ;;  %v5369_v36 = vld [vmem:[#allocation21_spill] sm:$0xff]  ;;  %v5370_v63 = vld [vmem:[#allocation22_spill] sm:$0xff]  ;;  %v3835_v29 = vld [vmem:[%s5260_s0 + $0x59] sm:$0x7f] }
  0xf1   :  { %v710_v28 = vadd.f32 %v699_v52, %v684_v15  ;;  %v553_v61 = vadd.f32 1.0, %v2607_v62  ;;  %1384 = vrot.lane.b32.xlu1 %v1373_v60, %s2852_s30  ;;  %1382 = vrot.lane.b32.xlu0 %v1372_v30, %s2852_s30  ;;  %v761_v15 = vstv %s3761_s7  ;;  %v686_v52 = vadd.f32 %v682_v8, %v676_v53  ;;  %5371 = vst [vmem:[#allocation18_spill] sm:$0xff] %v3835_v29  ;;  %s3976_s7 = sld [smem:[#allocation2 + $0x36]] }
  0xf2   :  { %2612 = vrcp.f32 %v554_v47  ;;  %v721_v17 = vadd.f32 %v717_v51, %v711_v3  ;;  %v729_v30 = vmul.f32 %v5369_v36, %v3759_v38  ;;  %v728_v10 = vmul.f32 %v5370_v63, %v3759_v38  ;;  %v3846_v38 = vld [vmem:[%s5260_s0 + $0xe8] sm:$0xff] }
  0xf3   :  { %v720_v43 = vadd.f32 %v716_v37, %v710_v28  ;;  %2614 = vrcp.f32 %v553_v61  ;;  %v705_v60 = vpop.permute.xlu1 %704  ;;  %v1419_v51 = vmul.f32 %v3835_v29, %v1415_v49  ;;  %v771_v8 = vstv %s3783_s14  ;;  %5372 = vst [vmem:[#allocation19_spill] sm:$0xff] %v3846_v38  ;;  %v3852_v37 = vld [vmem:[%s5260_s0 + $0xe0] sm:$0xff]  ;;  %s3891_s14 = sld [smem:[#allocation2 + $0x2e]] }
  0xf4   :  { %v703_v62 = vpop.permute.xlu0 %702  ;;  %v713_v58 = vadd.f32 %v705_v60, %v687_v24  ;;  %v763_v24 = vmul.f32 %v3846_v38, %v761_v15  ;;  %5373 = vst [vmem:[#allocation20_spill] sm:$0xff] %v3852_v37  ;;  %v762_v53 = vmul.f32 %v3852_v37, %v761_v15  ;;  %v1497_v47 = vstv %s3795_s17  ;;  %s4046_s17 = sld [smem:[#allocation2 + $0x5c]] }
  0xf5   :  { %v712_v27 = vadd.f32 %v703_v62, %v686_v52  ;;  %1426 = vrot.lane.b32.xlu1 %v1417_v45, %s2852_s30  ;;  %1424 = vrot.lane.b32.xlu0 %v1416_v32, %s2852_s30  ;;  %v3858_v45 = vld [vmem:[%s5260_s0 + $0x51] sm:$0xff]  ;;  %v731_v61 = vadd.f32 %v727_v14, %v721_v17  ;;  %v730_v52 = vadd.f32 %v726_v12, %v720_v43  ;;  %v807_v12 = vstv %s3826_s24  ;;  %s3935_s24 = sld [smem:[#allocation2 + $0x30]] }
  0xf6   :  { %v1418_v32 = vmul.f32 %v3858_v45, %v1415_v49  ;;  %v723_v3 = vadd.f32 %v719_v16, %v713_v58  ;;  %v773_v36 = vmul.f32 %v3354_v48, %v771_v8  ;;  %v1499_v38 = vmul.f32 %v3553_v40, %v1497_v47  ;;  %v3872_v49 = vld [vmem:[%s5260_s0 + $0xf8] sm:$0x7f]  ;;  %v3878_v48 = vld [vmem:[%s5260_s0 + $0xf0] sm:$0xff] }
  0xf7   :  { %v722_v28 = vadd.f32 %v718_v6, %v712_v27  ;;  %v747_v60 = vpop.permute.xlu1 %746  ;;  %v772_v29 = vmul.f32 %v3359_v22, %v771_v8  ;;  %5374 = vst [vmem:[#allocation21_spill] sm:$0xff] %v3872_v49  ;;  %v765_v14 = vmul.f32 %v3872_v49, %v761_v15  ;;  %5375 = vst [vmem:[#allocation22_spill] sm:$0xff] %v3878_v48 }
  0xf8   :  { %v745_v62 = vpop.permute.xlu0 %744  ;;  %v757_v63 = vadd.f32 %v747_v60, %v731_v61  ;;  %v764_v58 = vmul.f32 %v3878_v48, %v761_v15  ;;  %v1498_v22 = vmul.f32 %v3581_v41, %v1497_v47  ;;  %v733_v17 = vadd.f32 %v729_v30, %v723_v3 }
  0xf9   :  { %v756_v37 = vadd.f32 %v745_v62, %v730_v52  ;;  %1430 = vrot.lane.b32.xlu1 %v1419_v51, %s2852_s30  ;;  %1428 = vrot.lane.b32.xlu0 %v1418_v32, %s2852_s30  ;;  %v732_v43 = vadd.f32 %v728_v10, %v722_v28  ;;  %v1501_v61 = vmul.f32 %v3590_v42, %v1497_v47 }
  0xfa   :  { %v767_v16 = vadd.f32 %v763_v24, %v757_v63  ;;  %v1500_v52 = vmul.f32 %v3601_v54, %v1497_v47  ;;  %v775_v15 = vmul.f32 %v3375_v4, %v771_v8  ;;  %v774_v60 = vmul.f32 %v3380_v1, %v771_v8  ;;  %v3899_v4 = vld [vmem:[%s5260_s0 + $0x29] sm:$0xff] }
  0xfb   :  { %v766_v6 = vadd.f32 %v762_v53, %v756_v37  ;;  %v2609_v27 = vpop.eup %2608  ;;  %v751_v51 = vpop.permute.xlu1 %750  ;;  %v817_v37 = vstv %s3839_s27  ;;  %v809_v1 = vmul.f32 %v3899_v4, %v807_v12  ;;  %v1947_v8 = vstv %s3862_s8  ;;  %s3984_s8 = sld [smem:[#allocation2 + $0x59]] }
  0xfc   :  { %v749_v32 = vpop.permute.xlu0 %748  ;;  %v2611_v62 = vpop.eup %2610  ;;  %v564_v48 = vmul.f32 %v2609_v27, %v3610_v39  ;;  %v759_v49 = vadd.f32 %v751_v51, %v733_v17  ;;  %v3905_v39 = vld [vmem:[%s5260_s0 + $0x21] sm:$0xff]  ;;  %v777_v53 = vadd.f32 %v773_v36, %v767_v16  ;;  %v819_v36 = vmul.f32 %v3399_v57, %v817_v37  ;;  %s4210_s27 = sld [smem:[#allocation2 + $0x62]] }
  0xfd   :  { %v758_v24 = vadd.f32 %v749_v32, %v732_v43  ;;  %v563_v10 = vmul.f32 %v2611_v62, %v3612_v20  ;;  %1508 = vrot.lane.b32.xlu1 %v1499_v38, %s2852_s30  ;;  %1506 = vrot.lane.b32.xlu0 %v1498_v22, %s2852_s30  ;;  %v808_v30 = vmul.f32 %v3905_v39, %v807_v12  ;;  %v3922_v22 = vld [vmem:[%s5260_s0 + $0x39] sm:$0x7f]  ;;  %v853_v57 = vstv %s3883_s13  ;;  %s4265_s13 = sld [smem:[#allocation2 + $0x7d]] }
  0xfe   :  { %569 = vst.msk [vmem:[%s5263_s3 + $0x8] sm:$0xff] %vm567_vm0, %v564_v48  ;;  %v769_v20 = vadd.f32 %v765_v14, %v759_v49  ;;  %v776_v47 = vadd.f32 %v772_v29, %v766_v6  ;;  %v811_v49 = vmul.f32 %v3922_v22, %v807_v12  ;;  %v818_v29 = vmul.f32 %v3404_v0, %v817_v37 }
  0xff   :  { %v768_v38 = vadd.f32 %v764_v58, %v758_v24  ;;  %v2613_v3 = vpop.eup %2612  ;;  %568 = vst.msk [vmem:[%s5263_s3] sm:$0xff] %vm567_vm0, %v563_v10  ;;  %v793_v28 = vpop.permute.xlu1 %792  ;;  %v1949_v6 = vmul.f32 %v3553_v40, %v1947_v8  ;;  %v810_v43 = vmul.f32 %v3652_v25, %v807_v12  ;;  %v1948_v27 = vmul.f32 %v3581_v41, %v1947_v8 }
 0x100   :  { %v791_v63 = vpop.permute.xlu0 %790  ;;  %v2615_v14 = vpop.eup %2614  ;;  %v566_v48 = vmul.f32 %v2613_v3, %v3635_v19  ;;  %v803_v58 = vadd.f32 %v793_v28, %v777_v53  ;;  %v779_v51 = vadd.f32 %v775_v15, %v769_v20  ;;  %v821_v32 = vmul.f32 %v3420_v9, %v817_v37 }
 0x101   :  { %v802_v16 = vadd.f32 %v791_v63, %v776_v47  ;;  %v565_v17 = vmul.f32 %v2615_v14, %v3637_v5  ;;  %1512 = vrot.lane.b32.xlu1 %v1501_v61, %s2852_s30  ;;  %1510 = vrot.lane.b32.xlu0 %v1500_v52, %s2852_s30  ;;  %v778_v5 = vadd.f32 %v774_v60, %v768_v38  ;;  %v863_v9 = vstv %s3891_s14  ;;  %s4428_s14 = sld [smem:[#allocation2 + $0x52]] }
 0x102   :  { %572 = vst.msk [vmem:[%s5263_s3 + $0x18] sm:$0x7f] %vm571_vm1, %v566_v48  ;;  %v813_v0 = vadd.f32 %v809_v1, %v803_v58  ;;  %v820_v61 = vmul.f32 %v3425_v11, %v817_v37  ;;  %v1951_v24 = vmul.f32 %v3590_v42, %v1947_v8  ;;  %v1950_v15 = vmul.f32 %v3601_v54, %v1947_v8 }
 0x103   :  { %v812_v19 = vadd.f32 %v808_v30, %v802_v16  ;;  %570 = vst.msk [vmem:[%s5263_s3 + $0x10] sm:$0xff] %vm567_vm0, %v565_v17  ;;  %v797_v25 = vpop.permute.xlu1 %796  ;;  %v855_v60 = vmul.f32 %v3668_v21, %v853_v57  ;;  %v854_v10 = vmul.f32 %v3675_v23, %v853_v57  ;;  %v1543_v1 = vstv %s3909_s19  ;;  %s4053_s19 = sld [smem:[#allocation2 + $0x3c]] }
 0x104   :  { %v795_v12 = vpop.permute.xlu0 %794  ;;  %v805_v52 = vadd.f32 %v797_v25, %v779_v51  ;;  %v823_v30 = vadd.f32 %v819_v36, %v813_v0  ;;  %v857_v53 = vmul.f32 %v3697_v55, %v853_v57  ;;  %v865_v28 = vmul.f32 %v3444_v46, %v863_v9 }
 0x105   :  { %v804_v62 = vadd.f32 %v795_v12, %v778_v5  ;;  %1958 = vrot.lane.b32.xlu1 %v1949_v6, %s2852_s30  ;;  %1956 = vrot.lane.b32.xlu0 %v1948_v27, %s2852_s30  ;;  %v822_v20 = vadd.f32 %v818_v29, %v812_v19  ;;  %v864_v21 = vmul.f32 %v3449_v56, %v863_v9  ;;  %v899_v55 = vstv %s3935_s24  ;;  %s4097_s24 = sld [smem:[#allocation2 + $0x3f]] }
 0x106   :  { %v815_v11 = vadd.f32 %v811_v49, %v805_v52  ;;  %v856_v23 = vmul.f32 %v3724_v33, %v853_v57  ;;  %v1545_v63 = vmul.f32 %v3625_v34, %v1543_v1  ;;  %v1544_v49 = vmul.f32 %v3646_v50, %v1543_v1 }
 0x107   :  { %v814_v37 = vadd.f32 %v810_v43, %v804_v62  ;;  %v839_v8 = vpop.permute.xlu1 %838  ;;  %v867_v58 = vmul.f32 %v3465_v18, %v863_v9  ;;  %v866_v16 = vmul.f32 %v3470_v31, %v863_v9  ;;  %v1547_v17 = vmul.f32 %v3662_v59, %v1543_v1 }
 0x108   :  { %v837_v38 = vpop.permute.xlu0 %836  ;;  %v849_v47 = vadd.f32 %v839_v8, %v823_v30  ;;  %v825_v29 = vadd.f32 %v821_v32, %v815_v11  ;;  %v909_v43 = vstv %s3949_s29  ;;  %v901_v27 = vmul.f32 %v3731_v26, %v899_v55  ;;  %s4119_s29 = sld [smem:[#allocation2 + $0x5f]] }
 0x109   :  { %v848_v3 = vadd.f32 %v837_v38, %v822_v20  ;;  %1962 = vrot.lane.b32.xlu1 %v1951_v24, %s2852_s30  ;;  %1960 = vrot.lane.b32.xlu0 %v1950_v15, %s2852_s30  ;;  %v824_v56 = vadd.f32 %v820_v61, %v814_v37  ;;  %v900_v57 = vmul.f32 %v3739_v44, %v899_v55  ;;  %v1993_v0 = vstv %s3957_s4  ;;  %v5376_v61 = vld [vmem:[#allocation23_spill] sm:$0xff]  ;;  %v5377_v24 = vld [vmem:[#allocation24_spill] sm:$0xff]  ;;  %s4770_s4 = sld [smem:[#allocation2 + $0x5e]] }
 0x10a   :  { %v859_v36 = vadd.f32 %v855_v60, %v849_v47  ;;  %v1546_v18 = vmul.f32 %v3686_v35, %v1543_v1  ;;  %v903_v32 = vmul.f32 %v3772_v13, %v899_v55  ;;  %v911_v52 = vmul.f32 %v5376_v61, %v909_v43  ;;  %v5378_v47 = vld [vmem:[#allocation8_spill] sm:$0xff] }
 0x10b   :  { %v858_v46 = vadd.f32 %v854_v10, %v848_v3  ;;  %v843_v14 = vpop.permute.xlu1 %842  ;;  %v945_v62 = vstv %s3962_s5  ;;  %v910_v15 = vmul.f32 %v5377_v24, %v909_v43  ;;  %v902_v60 = vmul.f32 %v3778_v7, %v899_v55  ;;  %v5379_v7 = vld [vmem:[#allocation25_spill] sm:$0xff]  ;;  %v5386_v61 = vld [vmem:[#allocation28_spill] sm:$0xff]  ;;  %s4325_s5 = sld [smem:[#allocation2 + $0x4c]] }
 0x10c   :  { %v841_v48 = vpop.permute.xlu0 %840  ;;  %v851_v33 = vadd.f32 %v843_v14, %v825_v29  ;;  %v869_v51 = vadd.f32 %v865_v28, %v859_v36  ;;  %v1995_v10 = vmul.f32 %v3625_v34, %v1993_v0  ;;  %v1994_v13 = vmul.f32 %v3646_v50, %v1993_v0 }
 0x10d   :  { %v850_v6 = vadd.f32 %v841_v48, %v824_v56  ;;  %1554 = vrot.lane.b32.xlu1 %v1545_v63, %s2852_s30  ;;  %1552 = vrot.lane.b32.xlu0 %v1544_v49, %s2852_s30  ;;  %v868_v5 = vadd.f32 %v864_v21, %v858_v46  ;;  %v955_v1 = vstv %s3970_s6  ;;  %v947_v38 = vmul.f32 %v3800_v2, %v945_v62  ;;  %v5380_v63 = vld [vmem:[#allocation15_spill] sm:$0xff]  ;;  %v5381_v2 = vld [vmem:[#allocation18_spill] sm:$0xff]  ;;  %s5179_s6 = sld [smem:[#allocation2 + $0x85]] }
 0x10e   :  { %v861_v31 = vadd.f32 %v857_v53, %v851_v33  ;;  %v1997_v53 = vmul.f32 %v3662_v59, %v1993_v0  ;;  %v913_v3 = vmul.f32 %v5378_v47, %v909_v43  ;;  %v912_v28 = vmul.f32 %v5379_v7, %v909_v43  ;;  %v5382_v56 = vld [vmem:[#allocation26_spill] sm:$0xff] }
 0x10f   :  { %v860_v19 = vadd.f32 %v856_v23, %v850_v6  ;;  %v885_v25 = vpop.permute.xlu1 %884  ;;  %v946_v49 = vmul.f32 %v5380_v63, %v945_v62  ;;  %v1027_v55 = vstv %s3976_s7  ;;  %v1996_v36 = vmul.f32 %v3686_v35, %v1993_v0  ;;  %v5389_v47 = vld [vmem:[#allocation10_spill] sm:$0xff]  ;;  %s4239_s7 = sld [smem:[#allocation2 + $0x48]] }
 0x110   :  { %v883_v12 = vpop.permute.xlu0 %882  ;;  %v895_v26 = vadd.f32 %v885_v25, %v869_v51  ;;  %v871_v37 = vadd.f32 %v867_v58, %v861_v31  ;;  %v949_v46 = vmul.f32 %v5381_v2, %v945_v62  ;;  %v1589_v29 = vstv %s3984_s8  ;;  %v5384_v25 = vld [vmem:[#allocation12_spill] sm:$0xff]  ;;  %s4137_s8 = sld [smem:[#allocation2 + $0x40]] }
 0x111   :  { %v894_v44 = vadd.f32 %v883_v12, %v868_v5  ;;  %1558 = vrot.lane.b32.xlu1 %v1547_v17, %s2852_s30  ;;  %1556 = vrot.lane.b32.xlu0 %v1546_v18, %s2852_s30  ;;  %v870_v30 = vadd.f32 %v866_v16, %v860_v19  ;;  %v957_v14 = vmul.f32 %v5382_v56, %v955_v1  ;;  %v1024_v51 = vstv %s3988_s9  ;;  %s4963_s9 = sld [smem:[#allocation2 + $0x63]] }
 0x112   :  { %v905_v9 = vadd.f32 %v901_v27, %v895_v26  ;;  %v948_v43 = vmul.f32 %v3858_v45, %v945_v62  ;;  %v5383_v27 = vld [vmem:[#allocation27_spill] sm:$0xff]  ;;  %v1029_v18 = vmul.f32 %v3553_v40, %v1027_v55  ;;  %v1028_v0 = vmul.f32 %v3581_v41, %v1027_v55  ;;  %v5385_v45 = vld [vmem:[#allocation9_spill] sm:$0xff] }
 0x113   :  { %v904_v11 = vadd.f32 %v900_v57, %v894_v44  ;;  %v889_v20 = vpop.permute.xlu1 %888  ;;  %v956_v57 = vmul.f32 %v5383_v27, %v955_v1  ;;  %v1037_v5 = vstv %s3992_s10  ;;  %v1591_v12 = vmul.f32 %v5384_v25, %v1589_v29  ;;  %s4343_s10 = sld [smem:[#allocation2 + $0x65]] }
 0x114   :  { %v887_v8 = vpop.permute.xlu0 %886  ;;  %v897_v21 = vadd.f32 %v889_v20, %v871_v37  ;;  %v915_v16 = vadd.f32 %v911_v52, %v905_v9  ;;  %v959_v52 = vmul.f32 %v5386_v61, %v955_v1  ;;  %v4032_v9 = vld [vmem:[%s5260_s0 + $0x68] sm:$0xff]  ;;  %v1032_v20 = vadd.f32 %v1028_v0, %v1024_v51 }
 0x115   :  { %v896_v23 = vadd.f32 %v887_v8, %v870_v30  ;;  %2004 = vrot.lane.b32.xlu1 %v1995_v10, %s2852_s30  ;;  %2002 = vrot.lane.b32.xlu0 %v1994_v13, %s2852_s30  ;;  %v914_v33 = vadd.f32 %v910_v15, %v904_v11  ;;  %v5387_v15 = vld [vmem:[#allocation29_spill] sm:$0xff]  ;;  %v2039_v10 = vstv %s4004_s11  ;;  %v1033_v13 = vadd.f32 %v1029_v18, %v1024_v51  ;;  %v4038_v8 = vld [vmem:[%s5260_s0 + $0x60] sm:$0xff]  ;;  %s4512_s11 = sld [smem:[#allocation2 + $0x6c]] }
 0x116   :  { %v907_v48 = vadd.f32 %v903_v32, %v897_v21  ;;  %v1590_v32 = vmul.f32 %v5385_v45, %v1589_v29  ;;  %v1039_v11 = vmul.f32 %v4032_v9, %v1037_v5  ;;  %v1031_v7 = vmul.f32 %v3590_v42, %v1027_v55 }
 0x117   :  { %v906_v58 = vadd.f32 %v902_v60, %v896_v23  ;;  %v931_v6 = vpop.permute.xlu1 %930  ;;  %v958_v60 = vmul.f32 %v5387_v15, %v955_v1  ;;  %v5388_v1 = vld [vmem:[#allocation11_spill] sm:$0xff]  ;;  %v2041_v2 = vmul.f32 %v5384_v25, %v2039_v10  ;;  %v2040_v56 = vmul.f32 %v5385_v45, %v2039_v10 }
 0x118   :  { %v929_v17 = vpop.permute.xlu0 %928  ;;  %v941_v31 = vadd.f32 %v931_v6, %v915_v16  ;;  %v917_v41 = vadd.f32 %v913_v3, %v907_v48  ;;  %v1592_v3 = vmul.f32 %v5389_v47, %v1589_v29  ;;  %v1043_v48 = vadd.f32 %v1039_v11, %v1033_v13  ;;  %v4066_v6 = vld [vmem:[%s5260_s0 + $0x78] sm:$0x7f] }
 0x119   :  { %v940_v19 = vadd.f32 %v929_v17, %v914_v33  ;;  %2008 = vrot.lane.b32.xlu1 %v1997_v53, %s2852_s30  ;;  %2006 = vrot.lane.b32.xlu0 %v1996_v36, %s2852_s30  ;;  %v916_v44 = vadd.f32 %v912_v28, %v906_v58  ;;  %v1593_v53 = vmul.f32 %v5388_v1, %v1589_v29  ;;  %v1119_v11 = vstv %s4053_s19  ;;  %s4174_s19 = sld [smem:[#allocation2 + $0x7a]] }
 0x11a   :  { %v951_v40 = vadd.f32 %v947_v38, %v941_v31  ;;  %v1038_v38 = vmul.f32 %v4038_v8, %v1037_v5  ;;  %v1030_v29 = vmul.f32 %v3601_v54, %v1027_v55  ;;  %v2043_v16 = vmul.f32 %v5388_v1, %v2039_v10 }
 0x11b   :  { %v950_v26 = vadd.f32 %v946_v49, %v940_v19  ;;  %v935_v62 = vpop.permute.xlu1 %934  ;;  %v1035_v33 = vadd.f32 %v1031_v7, %v1024_v51  ;;  %v1041_v54 = vmul.f32 %v4066_v6, %v1037_v5 }
 0x11c   :  { %v933_v24 = vpop.permute.xlu0 %932  ;;  %v943_v37 = vadd.f32 %v935_v62, %v917_v41  ;;  %v961_v23 = vadd.f32 %v957_v14, %v951_v40  ;;  %v1042_v14 = vadd.f32 %v1038_v38, %v1032_v20  ;;  %v1034_v19 = vadd.f32 %v1030_v29, %v1024_v51  ;;  %v5390_v20 = vld [vmem:[#allocation14_spill] sm:$0xff] }
 0x11d   :  { %v942_v30 = vadd.f32 %v933_v24, %v916_v44  ;;  %1600 = vrot.lane.b32.xlu1 %v1591_v12, %s2852_s30  ;;  %1598 = vrot.lane.b32.xlu0 %v1590_v32, %s2852_s30  ;;  %v960_v63 = vadd.f32 %v956_v57, %v950_v26  ;;  %v4076_v12 = vld [vmem:[%s5260_s0 + $0x70] sm:$0xff]  ;;  %v1083_v62 = vstv %s4048_s18  ;;  %s4168_s18 = sld [smem:[#allocation2 + $0x43]] }
 0x11e   :  { %v953_v28 = vadd.f32 %v949_v46, %v943_v37  ;;  %v1073_v46 = vstv %s4020_s12  ;;  %v1040_v32 = vmul.f32 %v4076_v12, %v1037_v5  ;;  %v1635_v5 = vstv %s4046_s17  ;;  %s4161_s17 = sld [smem:[#allocation2 + $0x42]] }
 0x11f   :  { %v952_v21 = vadd.f32 %v948_v43, %v942_v30  ;;  %v977_v49 = vpop.permute.xlu1 %976  ;;  %v1075_v0 = vmul.f32 %v3625_v34, %v1073_v46  ;;  %v1074_v31 = vmul.f32 %v3646_v50, %v1073_v46  ;;  %v2042_v34 = vmul.f32 %v5389_v47, %v2039_v10  ;;  %s4257_s12 = sld [smem:[#allocation2 + $0x49]] }
 0x120   :  { %v975_v36 = vpop.permute.xlu0 %974  ;;  %v4055_v42 = vadd.f32 %v977_v49, %v961_v23  ;;  %v963_v43 = vadd.f32 %v959_v52, %v953_v28  ;;  %v1045_v50 = vadd.f32 %v1041_v54, %v1035_v33  ;;  %v1077_v51 = vmul.f32 %v3662_v59, %v1073_v46  ;;  %v4112_v23 = vld [vmem:[%s5260_s0 + $0x120] sm:$0xff]  ;;  %v5393_v33 = vld [vmem:[#allocation17_spill] sm:$0xff] }
 0x121   :  { %v4057_v58 = vadd.f32 %v975_v36, %v960_v63  ;;  %1604 = vrot.lane.b32.xlu1 %v1593_v53, %s2852_s30  ;;  %1602 = vrot.lane.b32.xlu0 %v1592_v3, %s2852_s30  ;;  %v962_v27 = vadd.f32 %v958_v60, %v952_v21  ;;  %v1044_v60 = vadd.f32 %v1040_v32, %v1034_v19  ;;  %v5391_v53 = vld [vmem:[#allocation13_spill] sm:$0xff] }
 0x122   :  { %v991_v55 = vsub.f32 0.0, %v4055_v42  ;;  %v1076_v13 = vmul.f32 %v3686_v35, %v1073_v46  ;;  %v1637_v38 = vmul.f32 %v5390_v20, %v1635_v5  ;;  %v1636_v3 = vmul.f32 %v5391_v53, %v1635_v5  ;;  %v4106_v35 = vld [vmem:[%s5260_s0 + $0x128] sm:$0xff]  ;;  %v5392_v46 = vld [vmem:[#allocation16_spill] sm:$0xff] }
 0x123   :  { %v990_v17 = vsub.f32 0.0, %v4057_v58  ;;  %v981_v57 = vpop.permute.xlu1 %980  ;;  %v1085_v7 = vmul.f32 %v4106_v35, %v1083_v62  ;;  %v1084_v63 = vmul.f32 %v4112_v23, %v1083_v62  ;;  %v1638_v54 = vmul.f32 %v5393_v33, %v1635_v5 }
 0x124   :  { %v979_v18 = vpop.permute.xlu0 %978  ;;  %v996_v61 = vmul.f32 1.442695, %v991_v55  ;;  %v4079_v52 = vadd.f32 %v981_v57, %v963_v43  ;;  %v4127_v55 = vld [vmem:[%s5260_s0 + $0x138] sm:$0x7f]  ;;  %v1129_v43 = vstv %s4090_s23  ;;  %v1123_v32 = vmul.f32 %v5388_v1, %v1119_v11  ;;  %v4152_v1 = vld [vmem:[%s5260_s0 + $0x61] sm:$0xff]  ;;  %s4383_s23 = sld [smem:[#allocation2 + $0x51]] }
 0x125   :  { %v994_v40 = vmul.f32 1.442695, %v990_v17  ;;  %v4081_v26 = vadd.f32 %v979_v18, %v962_v27  ;;  %2050 = vrot.lane.b32.xlu1 %v2041_v2, %s2852_s30  ;;  %2048 = vrot.lane.b32.xlu0 %v2040_v56, %s2852_s30  ;;  %v1121_v2 = vmul.f32 %v5384_v25, %v1119_v11  ;;  %v1120_v56 = vmul.f32 %v5385_v45, %v1119_v11  ;;  %v4133_v45 = vld [vmem:[%s5260_s0 + $0x130] sm:$0xff] }
 0x126   :  { %2616 = vpow2.f32 %v996_v61  ;;  %v993_v41 = vsub.f32 0.0, %v4079_v52  ;;  %v1087_v25 = vmul.f32 %v4127_v55, %v1083_v62  ;;  %v1086_v17 = vmul.f32 %v4133_v45, %v1083_v62  ;;  %v2726_v62 = vld [vmem:[%s5260_s0 + $0x79] sm:$0x7f] }
 0x127   :  { %v992_v44 = vsub.f32 0.0, %v4081_v26  ;;  %2618 = vpow2.f32 %v994_v40  ;;  %v1059_v24 = vpop.permute.xlu1 %1058  ;;  %v1122_v61 = vmul.f32 %v5389_v47, %v1119_v11  ;;  %v1130_v47 = vmul.f32 %v4152_v1, %v1129_v43 }
 0x128   :  { %v1057_v15 = vpop.permute.xlu0 %1056  ;;  %v1000_v10 = vmul.f32 1.442695, %v993_v41  ;;  %v1069_v30 = vadd.f32 %v1059_v24, %v1043_v48  ;;  %v2724_v41 = vld [vmem:[%s5260_s0 + $0x69] sm:$0xff]  ;;  %v1133_v24 = vmul.f32 %v2726_v62, %v1129_v43 }
 0x129   :  { %v998_v37 = vmul.f32 1.442695, %v992_v44  ;;  %v1068_v59 = vadd.f32 %v1057_v15, %v1042_v14  ;;  %2054 = vrot.lane.b32.xlu1 %v2043_v16, %s2852_s30  ;;  %2052 = vrot.lane.b32.xlu0 %v2042_v34, %s2852_s30  ;;  %v1639_v14 = vmul.f32 %v5392_v46, %v1635_v5  ;;  %v2085_v16 = vstv %s4083_s22  ;;  %v2727_v15 = vld [vmem:[%s5260_s0 + $0x71] sm:$0xff]  ;;  %s4194_s22 = sld [smem:[#allocation2 + $0x45]] }
 0x12a   :  { %2620 = vpow2.f32 %v1000_v10  ;;  %v1079_v28 = vadd.f32 %v1075_v0, %v1069_v30  ;;  %v2087_v40 = vmul.f32 %v5390_v20, %v2085_v16  ;;  %v2086_v34 = vmul.f32 %v5391_v53, %v2085_v16 }
 0x12b   :  { %v1078_v21 = vadd.f32 %v1074_v31, %v1068_v59  ;;  %2622 = vpow2.f32 %v998_v37  ;;  %v1063_v49 = vpop.permute.xlu1 %1062  ;;  %v1165_v44 = vstv %s4097_s24  ;;  %s4594_s24 = sld [smem:[#allocation2 + $0x6b]] }
 0x12c   :  { %v1061_v36 = vpop.permute.xlu0 %1060  ;;  %v1071_v48 = vadd.f32 %v1063_v49, %v1045_v50  ;;  %v1089_v18 = vadd.f32 %v1085_v7, %v1079_v28  ;;  %v1166_v7 = vmul.f32 %v5391_v53, %v1165_v44  ;;  %v2089_v28 = vmul.f32 %v5392_v46, %v2085_v16 }
 0x12d   :  { %v1070_v29 = vadd.f32 %v1061_v36, %v1044_v60  ;;  %1646 = vrot.lane.b32.xlu1 %v1637_v38, %s2852_s30  ;;  %1644 = vrot.lane.b32.xlu0 %v1636_v3, %s2852_s30  ;;  %v1088_v0 = vadd.f32 %v1084_v63, %v1078_v21  ;;  %v1132_v60 = vmul.f32 %v2727_v15, %v1129_v43  ;;  %v1175_v53 = vstv %s4137_s8  ;;  %s5094_s8 = sld [smem:[#allocation2 + $0x67]] }
 0x12e   :  { %v1081_v27 = vadd.f32 %v1077_v51, %v1071_v48  ;;  %v1131_v51 = vmul.f32 %v2724_v41, %v1129_v43  ;;  %v1167_v3 = vmul.f32 %v5390_v20, %v1165_v44  ;;  %v2088_v21 = vmul.f32 %v5393_v33, %v2085_v16  ;;  %v4191_v41 = vld [vmem:[%s5260_s0 + $0x80] sm:$0xff] }
 0x12f   :  { %v1080_v57 = vadd.f32 %v1076_v13, %v1070_v29  ;;  %v1105_v31 = vpop.permute.xlu1 %1104  ;;  %v1169_v20 = vmul.f32 %v5392_v46, %v1165_v44 }
 0x130   :  { %v1103_v19 = vpop.permute.xlu0 %1102  ;;  %v1115_v50 = vadd.f32 %v1105_v31, %v1089_v18  ;;  %v1091_v10 = vadd.f32 %v1087_v25, %v1081_v27  ;;  %v1168_v27 = vmul.f32 %v5393_v33, %v1165_v44 }
 0x131   :  { %v1114_v5 = vadd.f32 %v1103_v19, %v1088_v0  ;;  %1650 = vrot.lane.b32.xlu1 %v1639_v14, %s2852_s30  ;;  %1648 = vrot.lane.b32.xlu0 %v1638_v54, %s2852_s30  ;;  %v1090_v37 = vadd.f32 %v1086_v17, %v1080_v57  ;;  %v5394_v57 = vld [vmem:[#allocation19_spill] sm:$0xff]  ;;  %v5395_v0 = vld [vmem:[#allocation20_spill] sm:$0xff] }
 0x132   :  { %v1125_v13 = vadd.f32 %v1121_v2, %v1115_v50  ;;  %v1681_v2 = vstv %s4119_s29  ;;  %s4619_s29 = sld [smem:[#allocation2 + $0x86]] }
 0x133   :  { %v1124_v11 = vadd.f32 %v1120_v56, %v1114_v5  ;;  %v2617_v30 = vpop.eup %2616  ;;  %v1109_v59 = vpop.permute.xlu1 %1108  ;;  %v1683_v18 = vmul.f32 %v5394_v57, %v1681_v2  ;;  %v1682_v31 = vmul.f32 %v5395_v0, %v1681_v2  ;;  %v1211_v5 = vstv %s4161_s17  ;;  %s4438_s17 = sld [smem:[#allocation2 + $0x68]] }
 0x134   :  { %v1107_v38 = vpop.permute.xlu0 %1106  ;;  %v2619_v63 = vpop.eup %2618  ;;  %v1003_v49 = vadd.f32 1.0, %v2617_v30  ;;  %v1117_v36 = vadd.f32 %v1109_v59, %v1091_v10  ;;  %v1135_v29 = vadd.f32 %v1131_v51, %v1125_v13  ;;  %v1176_v51 = vmul.f32 %v4191_v41, %v1175_v53  ;;  %v4205_v10 = vld [vmem:[%s5260_s0 + $0x90] sm:$0xff]  ;;  %v5396_v59 = vld [vmem:[#allocation21_spill] sm:$0xff] }
 0x135   :  { %v1116_v48 = vadd.f32 %v1107_v38, %v1090_v37  ;;  %v1002_v56 = vadd.f32 1.0, %v2619_v63  ;;  %2096 = vrot.lane.b32.xlu1 %v2087_v40, %s2852_s30  ;;  %2094 = vrot.lane.b32.xlu0 %v2086_v34, %s2852_s30  ;;  %v1134_v54 = vadd.f32 %v1130_v47, %v1124_v11  ;;  %v1178_v37 = vmul.f32 %v4205_v10, %v1175_v53 }
 0x136   :  { %2624 = vrcp.f32 %v1003_v49  ;;  %v1127_v14 = vadd.f32 %v1123_v32, %v1117_v36  ;;  %v4182_v32 = vld [vmem:[%s5260_s0 + $0x88] sm:$0xff]  ;;  %v1685_v38 = vmul.f32 %v5396_v59, %v1681_v2  ;;  %v2131_v63 = vstv %s4174_s19  ;;  %s4368_s19 = sld [smem:[#allocation2 + $0x4e]] }
 0x137   :  { %v1126_v16 = vadd.f32 %v1122_v61, %v1116_v48  ;;  %v2621_v25 = vpop.eup %2620  ;;  %2626 = vrcp.f32 %v1002_v56  ;;  %v1151_v17 = vpop.permute.xlu1 %1150  ;;  %v1177_v61 = vmul.f32 %v4182_v32, %v1175_v53  ;;  %v1221_v49 = vstv %s4168_s18  ;;  %s4444_s18 = sld [smem:[#allocation2 + $0x54]] }
 0x138   :  { %v1149_v43 = vpop.permute.xlu0 %1148  ;;  %v2623_v19 = vpop.eup %2622  ;;  %v1005_v46 = vadd.f32 1.0, %v2621_v25  ;;  %v1161_v40 = vadd.f32 %v1151_v17, %v1135_v29  ;;  %v1137_v33 = vadd.f32 %v1133_v24, %v1127_v14  ;;  %v4199_v24 = vld [vmem:[%s5260_s0 + $0x98] sm:$0x7f]  ;;  %v1215_v14 = vmul.f32 %v5396_v59, %v1211_v5 }
 0x139   :  { %v1160_v34 = vadd.f32 %v1149_v43, %v1134_v54  ;;  %v1004_v50 = vadd.f32 1.0, %v2623_v19  ;;  %2100 = vrot.lane.b32.xlu1 %v2089_v28, %s2852_s30  ;;  %2098 = vrot.lane.b32.xlu0 %v2088_v21, %s2852_s30  ;;  %v1136_v62 = vadd.f32 %v1132_v60, %v1126_v16  ;;  %v1179_v11 = vmul.f32 %v4199_v24, %v1175_v53  ;;  %v4229_v43 = vld [vmem:[%s5260_s0 + $0x148] sm:$0xff] }
 0x13a   :  { %2628 = vrcp.f32 %v1005_v46  ;;  %v1171_v44 = vadd.f32 %v1167_v3, %v1161_v40  ;;  %v5397_v3 = vld [vmem:[#allocation22_spill] sm:$0xff]  ;;  %v1213_v28 = vmul.f32 %v5394_v57, %v1211_v5  ;;  %v1212_v21 = vmul.f32 %v5395_v0, %v1211_v5 }
 0x13b   :  { %v1170_v47 = vadd.f32 %v1166_v7, %v1160_v34  ;;  %2630 = vrcp.f32 %v1004_v50  ;;  %v1155_v15 = vpop.permute.xlu1 %1154  ;;  %v1684_v7 = vmul.f32 %v5397_v3, %v1681_v2  ;;  %v1214_v25 = vmul.f32 %v5397_v3, %v1211_v5 }
 0x13c   :  { %v1153_v13 = vpop.permute.xlu0 %1152  ;;  %v1163_v60 = vadd.f32 %v1155_v15, %v1137_v33  ;;  %v1181_v56 = vadd.f32 %v1177_v61, %v1171_v44  ;;  %v2133_v17 = vmul.f32 %v5394_v57, %v2131_v63  ;;  %v2135_v33 = vmul.f32 %v5396_v59, %v2131_v63 }
 0x13d   :  { %v1162_v30 = vadd.f32 %v1153_v13, %v1136_v62  ;;  %1692 = vrot.lane.b32.xlu1 %v1683_v18, %s2852_s30  ;;  %1690 = vrot.lane.b32.xlu0 %v1682_v31, %s2852_s30  ;;  %v1180_v29 = vadd.f32 %v1176_v51, %v1170_v47  ;;  %v1257_v18 = vstv %s4194_s22  ;;  %v4236_v31 = vld [vmem:[%s5260_s0 + $0x140] sm:$0xff]  ;;  %v2134_v5 = vmul.f32 %v5397_v3, %v2131_v63  ;;  %s4301_s22 = sld [smem:[#allocation2 + $0x4b]] }
 0x13e   :  { %v1173_v36 = vadd.f32 %v1169_v20, %v1163_v60  ;;  %v2132_v20 = vmul.f32 %v5395_v0, %v2131_v63  ;;  %5398 = vst [vmem:[#allocation23_spill] sm:$0xff] %v4236_v31  ;;  %v1222_v57 = vmul.f32 %v4236_v31, %v1221_v49  ;;  %v4246_v51 = vld [vmem:[%s5260_s0 + $0x158] sm:$0x7f]  ;;  %v4252_v47 = vld [vmem:[%s5260_s0 + $0x150] sm:$0xff]  ;;  %v1727_v60 = vstv %s4210_s27  ;;  %s5065_s27 = sld [smem:[#allocation2 + $0x66]] }
 0x13f   :  { %v1172_v48 = vadd.f32 %v1168_v27, %v1162_v30  ;;  %v1197_v2 = vpop.permute.xlu1 %1196  ;;  %v1223_v27 = vmul.f32 %v4229_v43, %v1221_v49  ;;  %5399 = vst [vmem:[#allocation24_spill] sm:$0xff] %v4246_v51  ;;  %v1225_v44 = vmul.f32 %v4246_v51, %v1221_v49  ;;  %5400 = vst [vmem:[#allocation8_spill] sm:$0xff] %v4252_v47  ;;  %v1267_v3 = vstv %s4218_s28  ;;  %s4401_s28 = sld [smem:[#allocation2 + $0x4f]] }
 0x140   :  { %v1195_v53 = vpop.permute.xlu0 %1194  ;;  %v1207_v16 = vadd.f32 %v1197_v2, %v1181_v56  ;;  %v1183_v0 = vadd.f32 %v1179_v11, %v1173_v36  ;;  %v1224_v62 = vmul.f32 %v4252_v47, %v1221_v49  ;;  %v1259_v59 = vmul.f32 %v3899_v4, %v1257_v18 }
 0x141   :  { %v1206_v54 = vadd.f32 %v1195_v53, %v1180_v29  ;;  %1696 = vrot.lane.b32.xlu1 %v1685_v38, %s2852_s30  ;;  %1694 = vrot.lane.b32.xlu0 %v1684_v7, %s2852_s30  ;;  %v1182_v40 = vadd.f32 %v1178_v37, %v1172_v48  ;;  %v1258_v38 = vmul.f32 %v3905_v39, %v1257_v18  ;;  %v4279_v48 = vld [vmem:[%s5260_s0 + $0x31] sm:$0xff] }
 0x142   :  { %v1217_v19 = vadd.f32 %v1213_v28, %v1207_v16  ;;  %v1261_v36 = vmul.f32 %v3922_v22, %v1257_v18  ;;  %5401 = vst [vmem:[#allocation25_spill] sm:$0xff] %v4279_v48  ;;  %v1260_v56 = vmul.f32 %v4279_v48, %v1257_v18  ;;  %v1729_v29 = vmul.f32 %v3899_v4, %v1727_v60 }
 0x143   :  { %v1216_v46 = vadd.f32 %v1212_v21, %v1206_v54  ;;  %v2625_v34 = vpop.eup %2624  ;;  %v1201_v61 = vpop.permute.xlu1 %1200  ;;  %v1728_v54 = vmul.f32 %v3905_v39, %v1727_v60 }
 0x144   :  { %v1199_v50 = vpop.permute.xlu0 %1198  ;;  %v2627_v15 = vpop.eup %2626  ;;  %v1015_v13 = vmul.f32 %v2625_v34, %v4055_v42  ;;  %v1209_v11 = vadd.f32 %v1201_v61, %v1183_v0  ;;  %v1227_v28 = vadd.f32 %v1223_v27, %v1217_v19  ;;  %v1303_v27 = vstv %s4239_s7  ;;  %v4314_v34 = vld [vmem:[%s5260_s0 + $0x99] sm:$0x7f]  ;;  %s4416_s7 = sld [smem:[#allocation4 + $0x3]] }
 0x145   :  { %v1208_v37 = vadd.f32 %v1199_v50, %v1182_v40  ;;  %v1014_v30 = vmul.f32 %v2627_v15, %v4057_v58  ;;  %2142 = vrot.lane.b32.xlu1 %v2133_v17, %s2852_s30  ;;  %2140 = vrot.lane.b32.xlu0 %v2132_v20, %s2852_s30  ;;  %v1226_v58 = vadd.f32 %v1222_v57, %v1216_v46  ;;  %v4291_v17 = vld [vmem:[%s5260_s0 + $0x89] sm:$0xff]  ;;  %v4320_v50 = vld [vmem:[%s5260_s0 + $0x91] sm:$0xff] }
 0x146   :  { %2498 = vst.msk [vmem:[%s5263_s3 + $0x28] sm:$0xff] %vm567_vm0, %v1015_v13  ;;  %v1219_v42 = vadd.f32 %v1215_v14, %v1209_v11  ;;  %5402 = vst [vmem:[#allocation15_spill] sm:$0xff] %v4291_v17  ;;  %v1269_v20 = vmul.f32 %v4291_v17, %v1267_v3  ;;  %v1271_v61 = vmul.f32 %v4314_v34, %v1267_v3  ;;  %v4332_v13 = vld [vmem:[%s5260_s0 + $0x48] sm:$0xff] }
 0x147   :  { %v1218_v7 = vadd.f32 %v1214_v25, %v1208_v37  ;;  %v2629_v21 = vpop.eup %2628  ;;  %2497 = vst.msk [vmem:[%s5263_s3 + $0x20] sm:$0xff] %vm567_vm0, %v1014_v30  ;;  %v1243_v63 = vpop.permute.xlu1 %1242  ;;  %5404 = vst [vmem:[#allocation26_spill] sm:$0xff] %v4314_v34  ;;  %v1730_v15 = vmul.f32 %v4279_v48, %v1727_v60  ;;  %v1305_v11 = vmul.f32 %v4332_v13, %v1303_v27  ;;  %v4338_v37 = vld [vmem:[%s5260_s0 + $0x40] sm:$0xff]  ;;  %v2177_v30 = vstv %s4265_s13  ;;  %s4527_s13 = sld [smem:[#allocation4 + $0x4]] }
 0x148   :  { %v1241_v49 = vpop.permute.xlu0 %1240  ;;  %v2631_v2 = vpop.eup %2630  ;;  %v1017_v53 = vmul.f32 %v2629_v21, %v4079_v52  ;;  %v1253_v14 = vadd.f32 %v1243_v63, %v1227_v28  ;;  %v4298_v52 = vld [vmem:[%s5260_s0 + $0x81] sm:$0xff]  ;;  %v1229_v19 = vadd.f32 %v1225_v44, %v1219_v42  ;;  %5405 = vst [vmem:[#allocation27_spill] sm:$0xff] %v4320_v50  ;;  %v4348_v21 = vld [vmem:[%s5260_s0 + $0x58] sm:$0x7f]  ;;  %v1819_v34 = vstv %s4438_s17  ;;  %s4731_s17 = sld [smem:[#allocation2 + $0x5b]] }
 0x149   :  { %v1252_v16 = vadd.f32 %v1241_v49, %v1226_v58  ;;  %v1016_v25 = vmul.f32 %v2631_v2, %v4081_v26  ;;  %2146 = vrot.lane.b32.xlu1 %v2135_v33, %s2852_s30  ;;  %2144 = vrot.lane.b32.xlu0 %v2134_v5, %s2852_s30  ;;  %5403 = vst [vmem:[#allocation18_spill] sm:$0xff] %v4298_v52  ;;  %v4354_v2 = vld [vmem:[%s5260_s0 + $0x50] sm:$0xff] }
 0x14a   :  { %v1268_v18 = vmul.f32 %v4298_v52, %v1267_v3  ;;  %2500 = vst.msk [vmem:[%s5263_s3 + $0x38] sm:$0x7f] %vm571_vm1, %v1017_v53  ;;  %v1263_v26 = vadd.f32 %v1259_v59, %v1253_v14  ;;  %v1228_v46 = vadd.f32 %v1224_v62, %v1218_v7  ;;  %v1270_v33 = vmul.f32 %v4320_v50, %v1267_v3  ;;  %v2745_v14 = vld [vmem:[%s5260_s0 + $0xa8] sm:$0xff] }
 0x14b   :  { %v1262_v57 = vadd.f32 %v1258_v38, %v1252_v16  ;;  %2499 = vst.msk [vmem:[%s5263_s3 + $0x30] sm:$0xff] %vm567_vm0, %v1016_v25  ;;  %v1247_v0 = vpop.permute.xlu1 %1246  ;;  %v1731_v62 = vmul.f32 %v3922_v22, %v1727_v60  ;;  %v1304_v60 = vmul.f32 %v4338_v37, %v1303_v27  ;;  %v1313_v59 = vstv %s4257_s12  ;;  %v2746_v25 = vld [vmem:[%s5260_s0 + $0xa0] sm:$0xff]  ;;  %s2543_s12 = sld [smem:[#allocation2 + $0x5a]] }
 0x14c   :  { %v1245_v40 = vpop.permute.xlu0 %1244  ;;  %v1255_v5 = vadd.f32 %v1247_v0, %v1229_v19  ;;  %v1273_v42 = vadd.f32 %v1269_v20, %v1263_v26  ;;  %v1307_v63 = vmul.f32 %v4348_v21, %v1303_v27  ;;  %v2178_v53 = vmul.f32 %v3905_v39, %v2177_v30  ;;  %v4373_v39 = vld [vmem:[%s5260_s0 + $0xb8] sm:$0x7f]  ;;  %v2748_v0 = vld [vmem:[%s5260_s0 + $0xb0] sm:$0xff] }
 0x14d   :  { %v1254_v44 = vadd.f32 %v1245_v40, %v1228_v46  ;;  %1738 = vrot.lane.b32.xlu1 %v1729_v29, %s2852_s30  ;;  %1736 = vrot.lane.b32.xlu0 %v1728_v54, %s2852_s30  ;;  %v1272_v7 = vadd.f32 %v1268_v18, %v1262_v57  ;;  %v1315_v16 = vmul.f32 %v2745_v14, %v1313_v59  ;;  %v1349_v54 = vstv %s4301_s22  ;;  %s4379_s22 = sld [smem:[#allocation2 + $0x80]] }
 0x14e   :  { %v1265_v38 = vadd.f32 %v1261_v36, %v1255_v5  ;;  %v1306_v36 = vmul.f32 %v4354_v2, %v1303_v27  ;;  %v1314_v20 = vmul.f32 %v2746_v25, %v1313_v59  ;;  %5406 = vst [vmem:[#allocation12_spill] sm:$0xff] %v4373_v39  ;;  %v1317_v46 = vmul.f32 %v4373_v39, %v1313_v59 }
 0x14f   :  { %v1264_v3 = vadd.f32 %v1260_v56, %v1254_v44  ;;  %v1289_v28 = vpop.permute.xlu1 %1288  ;;  %v2179_v56 = vmul.f32 %v3899_v4, %v2177_v30  ;;  %v1316_v40 = vmul.f32 %v2748_v0, %v1313_v59  ;;  %v2181_v5 = vmul.f32 %v3922_v22, %v2177_v30 }
 0x150   :  { %v1287_v58 = vpop.permute.xlu0 %1286  ;;  %v1299_v49 = vadd.f32 %v1289_v28, %v1273_v42  ;;  %v1275_v18 = vadd.f32 %v1271_v61, %v1265_v38  ;;  %v2180_v44 = vmul.f32 %v4279_v48, %v2177_v30  ;;  %v1359_v30 = vstv %s4325_s5 }
 0x151   :  { %v1298_v29 = vadd.f32 %v1287_v58, %v1272_v7  ;;  %1742 = vrot.lane.b32.xlu1 %v1731_v62, %s2852_s30  ;;  %1740 = vrot.lane.b32.xlu0 %v1730_v15, %s2852_s30  ;;  %v1274_v26 = vadd.f32 %v1270_v33, %v1264_v3  ;;  %v4390_v62 = vld [vmem:[%s5260_s0 + $0x108] sm:$0xff]  ;;  %v4406_v58 = vld [vmem:[%s5260_s0 + $0x118] sm:$0x7f] }
 0x152   :  { %v1309_v4 = vadd.f32 %v1305_v11, %v1299_v49  ;;  %v1351_v15 = vmul.f32 %v4390_v62, %v1349_v54  ;;  %v4396_v11 = vld [vmem:[%s5260_s0 + $0x100] sm:$0xff]  ;;  %v1353_v49 = vmul.f32 %v4406_v58, %v1349_v54 }
 0x153   :  { %v1308_v27 = vadd.f32 %v1304_v60, %v1298_v29  ;;  %v1293_v57 = vpop.permute.xlu1 %1292  ;;  %v1350_v22 = vmul.f32 %v4396_v11, %v1349_v54  ;;  %v1773_v60 = vstv %s4343_s10  ;;  %s4987_s10 = sld [smem:[#allocation2 + $0x64]] }
 0x154   :  { %v1291_v19 = vpop.permute.xlu0 %1290  ;;  %v1301_v61 = vadd.f32 %v1293_v57, %v1275_v18  ;;  %v1319_v3 = vadd.f32 %v1315_v16, %v1309_v4  ;;  %v1774_v14 = vmul.f32 %v4338_v37, %v1773_v60  ;;  %v2753_v16 = vld [vmem:[%s5260_s0 + $0x168] sm:$0xff] }
 0x155   :  { %v1300_v33 = vadd.f32 %v1291_v19, %v1274_v26  ;;  %2188 = vrot.lane.b32.xlu1 %v2179_v56, %s2852_s30  ;;  %2186 = vrot.lane.b32.xlu0 %v2178_v53, %s2852_s30  ;;  %v1318_v42 = vadd.f32 %v1314_v20, %v1308_v27  ;;  %v4412_v53 = vld [vmem:[%s5260_s0 + $0x110] sm:$0xff]  ;;  %v1361_v25 = vmul.f32 %v2753_v16, %v1359_v30  ;;  %v1395_v20 = vstv %s4368_s19 }
 0x156   :  { %v1311_v59 = vadd.f32 %v1307_v63, %v1301_v61  ;;  %v1352_v63 = vmul.f32 %v4412_v53, %v1349_v54  ;;  %v2754_v54 = vld [vmem:[%s5260_s0 + $0x160] sm:$0xff]  ;;  %v1777_v61 = vmul.f32 %v4348_v21, %v1773_v60 }
 0x157   :  { %v1310_v38 = vadd.f32 %v1306_v36, %v1300_v33  ;;  %v1335_v7 = vpop.permute.xlu1 %1334  ;;  %v1775_v36 = vmul.f32 %v4332_v13, %v1773_v60  ;;  %v1360_v4 = vmul.f32 %v2754_v54, %v1359_v30  ;;  %v1776_v33 = vmul.f32 %v4354_v2, %v1773_v60  ;;  %v4451_v60 = vld [vmem:[%s5260_s0 + $0x49] sm:$0xff] }
 0x158   :  { %v1333_v28 = vpop.permute.xlu0 %1332  ;;  %v1345_v29 = vadd.f32 %v1335_v7, %v1319_v3  ;;  %v1321_v26 = vadd.f32 %v1317_v46, %v1311_v59  ;;  %v2756_v3 = vld [vmem:[%s5260_s0 + $0x170] sm:$0xff]  ;;  %v4442_v59 = vstv %s4383_s23  ;;  %v4463_v7 = vld [vmem:[%s5260_s0 + $0x59] sm:$0x7f]  ;;  %s5159_s23 = sld [smem:[#allocation2 + $0x6a]] }
 0x159   :  { %v1344_v56 = vadd.f32 %v1333_v28, %v1318_v42  ;;  %2192 = vrot.lane.b32.xlu1 %v2181_v5, %s2852_s30  ;;  %2190 = vrot.lane.b32.xlu0 %v2180_v44, %s2852_s30  ;;  %v1320_v57 = vadd.f32 %v1316_v40, %v1310_v38  ;;  %v2755_v5 = vld [vmem:[%s5260_s0 + $0x178] sm:$0x7f]  ;;  %v4457_v38 = vld [vmem:[%s5260_s0 + $0x41] sm:$0xff]  ;;  %v1399_v28 = vmul.f32 %v4463_v7, %v1395_v20 }
 0x15a   :  { %v1355_v27 = vadd.f32 %v1351_v15, %v1345_v29  ;;  %v1363_v44 = vmul.f32 %v2755_v5, %v1359_v30  ;;  %v1362_v15 = vmul.f32 %v2756_v3, %v1359_v30  ;;  %v1397_v30 = vmul.f32 %v4451_v60, %v1395_v20  ;;  %v2764_v3 = vld [vmem:[%s5260_s0 + $0xb9] sm:$0x7f] }
 0x15b   :  { %v1354_v18 = vadd.f32 %v1350_v22, %v1344_v56  ;;  %v1339_v19 = vpop.permute.xlu1 %1338  ;;  %v2223_v22 = vstv %s4379_s22  ;;  %v1396_v42 = vmul.f32 %v4457_v38, %v1395_v20  ;;  %v1405_v29 = vstv %s4401_s28  ;;  %s4615_s28 = sld [smem:[#allocation2 + $0x70]] }
 0x15c   :  { %v1337_v0 = vpop.permute.xlu0 %1336  ;;  %v1347_v46 = vadd.f32 %v1339_v19, %v1321_v26  ;;  %v2224_v5 = vmul.f32 %v4338_v37, %v2223_v22  ;;  %v2227_v39 = vmul.f32 %v4348_v21, %v2223_v22  ;;  %v2226_v21 = vmul.f32 %v4354_v2, %v2223_v22  ;;  %v4534_v2 = vld [vmem:[%s5260_s0 + $0xc8] sm:$0xff] }
 0x15d   :  { %v1346_v40 = vadd.f32 %v1337_v0, %v1320_v57  ;;  %1784 = vrot.lane.b32.xlu1 %v1775_v36, %s2852_s30  ;;  %1782 = vrot.lane.b32.xlu0 %v1774_v14, %s2852_s30  ;;  %v1365_v14 = vadd.f32 %v1361_v25, %v1355_v27  ;;  %v1364_v16 = vadd.f32 %v1360_v4, %v1354_v18  ;;  %v4470_v57 = vld [vmem:[%s5260_s0 + $0x51] sm:$0xff]  ;;  %v2762_v27 = vld [vmem:[%s5260_s0 + $0xa9] sm:$0xff] }
 0x15e   :  { %v1357_v56 = vadd.f32 %v1353_v49, %v1347_v46  ;;  %v1398_v19 = vmul.f32 %v4470_v57, %v1395_v20  ;;  %v2225_v0 = vmul.f32 %v4332_v13, %v2223_v22  ;;  %v4478_v49 = vld [vmem:[%s5260_s0 + $0x8] sm:$0xff]  ;;  %v1407_v20 = vmul.f32 %v2762_v27, %v1405_v29 }
 0x15f   :  { %v1356_v36 = vadd.f32 %v1352_v63, %v1346_v40  ;;  %v1381_v54 = vpop.permute.xlu1 %1380  ;;  %v1479_v63 = vmul.f32 %v4478_v49, %v4442_v59  ;;  %v4486_v18 = vstv %s4416_s7  ;;  %v2763_v13 = vld [vmem:[%s5260_s0 + $0xa1] sm:$0xff]  ;;  %v1409_v46 = vmul.f32 %v2764_v3, %v1405_v29  ;;  %v2766_v3 = vld [vmem:[%s5260_s0 + $0xb1] sm:$0xff] }
 0x160   :  { %v1379_v26 = vpop.permute.xlu0 %1378  ;;  %v1391_v25 = vadd.f32 %v1381_v54, %v1365_v14  ;;  %v1406_v37 = vmul.f32 %v2763_v13, %v1405_v29  ;;  %v4497_v40 = vstv %s4428_s14  ;;  %v4502_v14 = vld [vmem:[%s5260_s0] sm:$0xff]  ;;  %v1367_v54 = vadd.f32 %v1363_v44, %v1357_v56  ;;  %s4525_s14 = sld [smem:[#allocation2 + $0x83]] }
 0x161   :  { %v1390_v4 = vadd.f32 %v1379_v26, %v1364_v16  ;;  %1788 = vrot.lane.b32.xlu1 %v1777_v61, %s2852_s30  ;;  %1786 = vrot.lane.b32.xlu0 %v1776_v33, %s2852_s30  ;;  %v1478_v61 = vmul.f32 %v4502_v14, %v4442_v59  ;;  %v1366_v26 = vadd.f32 %v1362_v15, %v1356_v36  ;;  %v4517_v15 = vstv %s4444_s18  ;;  %s4737_s18 = sld [smem:[#allocation2 + $0x76]] }
 0x162   :  { %v1401_v33 = vadd.f32 %v1397_v30, %v1391_v25  ;;  %v1408_v50 = vmul.f32 %v2766_v3, %v1405_v29  ;;  %v1483_v52 = vadd.f32 %v1479_v63, %v4486_v18  ;;  %v1489_v44 = vmul.f32 %v4032_v9, %v4497_v40 }
 0x163   :  { %v1400_v16 = vadd.f32 %v1396_v42, %v1390_v4  ;;  %v1385_v27 = vpop.permute.xlu1 %1384  ;;  %v1482_v30 = vadd.f32 %v1478_v61, %v4486_v18  ;;  %v1488_v42 = vmul.f32 %v4038_v8, %v4497_v40  ;;  %v4538_v22 = vmul.f32 %v4534_v2, %v4517_v15 }
 0x164   :  { %v1383_v13 = vpop.permute.xlu0 %1382  ;;  %v1393_v17 = vadd.f32 %v1385_v27, %v1367_v54  ;;  %v1411_v36 = vadd.f32 %v1407_v20, %v1401_v33  ;;  %v1823_v61 = vmul.f32 %v4406_v58, %v1819_v34  ;;  %v1822_v3 = vmul.f32 %v4412_v53, %v1819_v34 }
 0x165   :  { %v1392_v48 = vadd.f32 %v1383_v13, %v1366_v26  ;;  %2234 = vrot.lane.b32.xlu1 %v2225_v0, %s2852_s30  ;;  %2232 = vrot.lane.b32.xlu0 %v2224_v5, %s2852_s30  ;;  %v1410_v63 = vadd.f32 %v1406_v37, %v1400_v16  ;;  %v1821_v0 = vmul.f32 %v4390_v62, %v1819_v34 }
 0x166   :  { %v1403_v29 = vadd.f32 %v1399_v28, %v1393_v17  ;;  %v1820_v5 = vmul.f32 %v4396_v11, %v1819_v34  ;;  %v4546_v28 = vadd.f32 %v1489_v44, %v1483_v52  ;;  %v4559_v37 = vadd.f32 %v1488_v42, %v1482_v30  ;;  %v2769_v52 = vld [vmem:[%s5260_s0 + $0x18] sm:$0x7f] }
 0x167   :  { %v1402_v56 = vadd.f32 %v1398_v19, %v1392_v48  ;;  %v1427_v25 = vpop.permute.xlu1 %1426  ;;  %v4551_v19 = vld [vmem:[%s5260_s0 + $0xc0] sm:$0xff]  ;;  %v1481_v33 = vmul.f32 %v2769_v52, %v4442_v59  ;;  %v1491_v44 = vmul.f32 %v4066_v6, %v4497_v40  ;;  %v1927_v42 = vstv %s4512_s11  ;;  %s2540_s11 = sld [smem:[#allocation2 + $0x57]] }
 0x168   :  { %v1425_v4 = vpop.permute.xlu0 %1424  ;;  %v4542_v48 = vadd.f32 %v1427_v25, %v1411_v36  ;;  %v4555_v20 = vmul.f32 %v4551_v19, %v4517_v15  ;;  %v1413_v26 = vadd.f32 %v1409_v46, %v1403_v29  ;;  %v2269_v25 = vstv %s4525_s14  ;;  %s2541_s14 = sld [smem:[#allocation2 + $0x58]] }
 0x169   :  { %v4544_v17 = vadd.f32 %v1425_v4, %v1410_v63  ;;  %2238 = vrot.lane.b32.xlu1 %v2227_v39, %s2852_s30  ;;  %2236 = vrot.lane.b32.xlu0 %v2226_v21, %s2852_s30  ;;  %v1412_v27 = vadd.f32 %v1408_v50, %v1402_v56  ;;  %v2770_v21 = vld [vmem:[%s5260_s0 + $0x10] sm:$0xff]  ;;  %v1485_v34 = vadd.f32 %v1481_v33, %v4486_v18  ;;  %v2771_v56 = vld [vmem:[%s5260_s0 + $0xd8] sm:$0x7f] }
 0x16a   :  { %v1441_v16 = vsub.f32 0.0, %v4542_v48  ;;  %v1480_v30 = vmul.f32 %v2770_v21, %v4442_v59  ;;  %v4589_v59 = vmul.f32 %v2771_v56, %v4517_v15  ;;  %v1490_v63 = vmul.f32 %v4076_v12, %v4497_v40 }
 0x16b   :  { %v1440_v54 = vsub.f32 0.0, %v4544_v17  ;;  %v1431_v39 = vpop.permute.xlu1 %1430  ;;  %v1930_v51 = vmul.f32 %v2770_v21, %v1927_v42  ;;  %v2272_v21 = vmul.f32 %v4412_v53, %v2269_v25 }
 0x16c   :  { %v1429_v13 = vpop.permute.xlu0 %1428  ;;  %v1446_v36 = vmul.f32 1.442695, %v1441_v16  ;;  %v4578_v50 = vadd.f32 %v1431_v39, %v1413_v26  ;;  %v1924_v26 = vstv %s4527_s13  ;;  %s2572_s13 = sld [smem:[#allocation2 + $0x72]] }
 0x16d   :  { %v1444_v46 = vmul.f32 1.442695, %v1440_v54  ;;  %v4580_v29 = vadd.f32 %v1429_v13, %v1412_v27  ;;  %1830 = vrot.lane.b32.xlu1 %v1821_v0, %s2852_s30  ;;  %1828 = vrot.lane.b32.xlu0 %v1820_v5, %s2852_s30  ;;  %v1929_v5 = vmul.f32 %v4478_v49, %v1927_v42  ;;  %v1484_v54 = vadd.f32 %v1480_v30, %v4486_v18  ;;  %v2772_v49 = vld [vmem:[%s5260_s0 + $0xd0] sm:$0xff] }
 0x16e   :  { %2632 = vpow2.f32 %v1446_v36  ;;  %v1443_v4 = vsub.f32 0.0, %v4578_v50  ;;  %v1937_v27 = vstv %s4540_s16  ;;  %v1928_v13 = vmul.f32 %v4502_v14, %v1927_v42  ;;  %s4729_s16 = sld [smem:[#allocation2 + $0x75]] }
 0x16f   :  { %v1442_v0 = vsub.f32 0.0, %v4580_v29  ;;  %2634 = vpow2.f32 %v1444_v46  ;;  %v1509_v33 = vpop.permute.xlu1 %1508  ;;  %v1931_v36 = vmul.f32 %v2769_v52, %v1927_v42  ;;  %v1526_v18 = vmul.f32 %v2772_v49, %v4517_v15 }
 0x170   :  { %v1507_v16 = vpop.permute.xlu0 %1506  ;;  %v1450_v40 = vmul.f32 1.442695, %v1443_v4  ;;  %v2271_v30 = vmul.f32 %v4390_v62, %v2269_v25  ;;  %v2270_v46 = vmul.f32 %v4396_v11, %v2269_v25  ;;  %v1933_v4 = vadd.f32 %v1929_v5, %v1924_v26 }
 0x171   :  { %v1448_v39 = vmul.f32 1.442695, %v1442_v0  ;;  %1834 = vrot.lane.b32.xlu1 %v1823_v61, %s2852_s30  ;;  %1832 = vrot.lane.b32.xlu0 %v1822_v3, %s2852_s30  ;;  %v1939_v0 = vmul.f32 %v4032_v9, %v1937_v27  ;;  %v1973_v14 = vstv %s4568_s1  ;;  %v1495_v52 = vadd.f32 %v1491_v44, %v1485_v34 }
 0x172   :  { %2636 = vpow2.f32 %v1450_v40  ;;  %v1494_v3 = vadd.f32 %v1490_v63, %v1484_v54  ;;  %v1932_v31 = vadd.f32 %v1928_v13, %v1924_v26  ;;  %v1938_v15 = vmul.f32 %v4038_v8, %v1937_v27 }
 0x173   :  { %2638 = vpow2.f32 %v1448_v39  ;;  %v1513_v61 = vpop.permute.xlu1 %1512  ;;  %v1935_v62 = vadd.f32 %v1931_v36, %v1924_v26  ;;  %v1941_v11 = vmul.f32 %v4066_v6, %v1937_v27  ;;  %v1975_v9 = vmul.f32 %v4534_v2, %v1973_v14 }
 0x174   :  { %v1511_v47 = vpop.permute.xlu0 %1510  ;;  %v2273_v44 = vmul.f32 %v4406_v58, %v2269_v25  ;;  %v1865_v42 = vstv %s4594_s24  ;;  %v1519_v34 = vadd.f32 %v1509_v33, %v4546_v28  ;;  %v1518_v8 = vadd.f32 %v1507_v16, %v4559_v37 }
 0x175   :  { %2280 = vrot.lane.b32.xlu1 %v2271_v30, %s2852_s30  ;;  %2278 = vrot.lane.b32.xlu0 %v2270_v46, %s2852_s30  ;;  %v1943_v63 = vadd.f32 %v1939_v0, %v1933_v4  ;;  %v1974_v6 = vmul.f32 %v4551_v19, %v1973_v14  ;;  %v4630_v40 = vmul.f32 %v2771_v56, %v1973_v14  ;;  %v1533_v2 = vstv %s4602_s25  ;;  %s4755_s25 = sld [smem:[#allocation2 + $0x5d]] }
 0x176   :  { %v1934_v39 = vadd.f32 %v1930_v51, %v1924_v26  ;;  %v1940_v13 = vmul.f32 %v4076_v12, %v1937_v27  ;;  %v1942_v36 = vadd.f32 %v1938_v15, %v1932_v31  ;;  %v1945_v58 = vadd.f32 %v1941_v11, %v1935_v62 }
 0x177   :  { %v1959_v5 = vpop.permute.xlu1 %1958  ;;  %v4634_v30 = vmul.f32 %v2772_v49, %v1973_v14  ;;  %v1867_v53 = vmul.f32 %v4451_v60, %v1865_v42  ;;  %v1521_v28 = vadd.f32 %v1513_v61, %v1495_v52  ;;  %v1520_v25 = vadd.f32 %v1511_v47, %v1494_v3 }
 0x178   :  { %v1957_v54 = vpop.permute.xlu0 %1956  ;;  %v1866_v19 = vmul.f32 %v4457_v38, %v1865_v42  ;;  %v1529_v51 = vadd.f32 %v4538_v22, %v1519_v34  ;;  %v1528_v12 = vadd.f32 %v4555_v20, %v1518_v8  ;;  %v1535_v31 = vmul.f32 %v4106_v35, %v1533_v2 }
 0x179   :  { %2284 = vrot.lane.b32.xlu1 %v2273_v44, %s2852_s30  ;;  %2282 = vrot.lane.b32.xlu0 %v2272_v21, %s2852_s30  ;;  %v1534_v37 = vmul.f32 %v4112_v23, %v1533_v2  ;;  %v1944_v16 = vadd.f32 %v1940_v13, %v1934_v39  ;;  %v1869_v26 = vmul.f32 %v4463_v7, %v1865_v42  ;;  %v2315_v0 = vstv %s4619_s29  ;;  %s4943_s29 = sld [smem:[#allocation2 + $0x7c]] }
 0x17a   :  { %v1868_v27 = vmul.f32 %v4470_v57, %v1865_v42  ;;  %v1537_v49 = vmul.f32 %v4127_v55, %v1533_v2  ;;  %v1536_v22 = vmul.f32 %v4133_v45, %v1533_v2  ;;  %v1983_v20 = vstv %s4615_s28 }
 0x17b   :  { %v2633_v56 = vpop.eup %2632  ;;  %v1963_v33 = vpop.permute.xlu1 %1962  ;;  %v1531_v52 = vadd.f32 %v4589_v59, %v1521_v28  ;;  %v1530_v61 = vadd.f32 %v1526_v18, %v1520_v25  ;;  %v1969_v3 = vadd.f32 %v1959_v5, %v1943_v63  ;;  %v1968_v15 = vadd.f32 %v1957_v54, %v1942_v36 }
 0x17c   :  { %v1961_v47 = vpop.permute.xlu0 %1960  ;;  %v2635_v46 = vpop.eup %2634  ;;  %v1453_v4 = vadd.f32 1.0, %v2633_v56  ;;  %v1539_v62 = vadd.f32 %v1535_v31, %v1529_v51  ;;  %v1538_v11 = vadd.f32 %v1534_v37, %v1528_v12  ;;  %v2317_v34 = vmul.f32 %v4451_v60, %v2315_v0 }
 0x17d   :  { %v1452_v14 = vadd.f32 1.0, %v2635_v46  ;;  %1876 = vrot.lane.b32.xlu1 %v1867_v53, %s2852_s30  ;;  %1874 = vrot.lane.b32.xlu0 %v1866_v19, %s2852_s30  ;;  %v2316_v8 = vmul.f32 %v4457_v38, %v2315_v0  ;;  %v1985_v59 = vmul.f32 %v4106_v35, %v1983_v20  ;;  %v1984_v54 = vmul.f32 %v4112_v23, %v1983_v20 }
 0x17e   :  { %2640 = vrcp.f32 %v1453_v4  ;;  %v1979_v2 = vadd.f32 %v1975_v9, %v1969_v3  ;;  %v1541_v36 = vadd.f32 %v1537_v49, %v1531_v52  ;;  %v1540_v60 = vadd.f32 %v1536_v22, %v1530_v61 }
 0x17f   :  { %v2637_v44 = vpop.eup %2636  ;;  %2642 = vrcp.f32 %v1452_v14  ;;  %v1555_v21 = vpop.permute.xlu1 %1554  ;;  %v1978_v38 = vadd.f32 %v1974_v6, %v1968_v15  ;;  %v1971_v53 = vadd.f32 %v1963_v33, %v1945_v58  ;;  %v1970_v35 = vadd.f32 %v1961_v47, %v1944_v16 }
 0x180   :  { %v1553_v42 = vpop.permute.xlu0 %1552  ;;  %v2639_v18 = vpop.eup %2638  ;;  %v1455_v63 = vadd.f32 1.0, %v2637_v44  ;;  %v4656_v5 = vadd.f32 %v1555_v21, %v1539_v62  ;;  %v2319_v23 = vmul.f32 %v4463_v7, %v2315_v0  ;;  %v2318_v9 = vmul.f32 %v4470_v57, %v2315_v0 }
 0x181   :  { %v4658_v39 = vadd.f32 %v1553_v42, %v1538_v11  ;;  %v1454_v13 = vadd.f32 1.0, %v2639_v18  ;;  %1880 = vrot.lane.b32.xlu1 %v1869_v26, %s2852_s30  ;;  %1878 = vrot.lane.b32.xlu0 %v1868_v27, %s2852_s30  ;;  %v1987_v12 = vmul.f32 %v4127_v55, %v1983_v20  ;;  %v1986_v6 = vmul.f32 %v4133_v45, %v1983_v20 }
 0x182   :  { %2644 = vrcp.f32 %v1455_v63  ;;  %v1981_v58 = vadd.f32 %v4630_v40, %v1971_v53  ;;  %v1980_v31 = vadd.f32 %v4634_v30, %v1970_v35  ;;  %v1989_v37 = vadd.f32 %v1985_v59, %v1979_v2  ;;  %v2774_v2 = vld [vmem:[%s5260_s0 + $0x1] sm:$0xff]  ;;  %v2776_v53 = vld [vmem:[%s5260_s0 + $0x11] sm:$0xff] }
 0x183   :  { %2646 = vrcp.f32 %v1454_v13  ;;  %v1559_v28 = vpop.permute.xlu1 %1558  ;;  %v1988_v56 = vadd.f32 %v1984_v54, %v1978_v38  ;;  %v1569_v42 = vstv %s2540_s11  ;;  %v2019_v59 = vstv %s2572_s13  ;;  %v2773_v54 = vld [vmem:[%s5260_s0 + $0x9] sm:$0xff]  ;;  %s5009_s11 = sld [smem:[#allocation2 + $0x7e]] }
 0x184   :  { %v1557_v25 = vpop.permute.xlu0 %1556  ;;  %v4663_v19 = vadd.f32 %v1559_v28, %v1541_v36  ;;  %v1991_v57 = vadd.f32 %v1987_v12, %v1981_v58  ;;  %v1990_v55 = vadd.f32 %v1986_v6, %v1980_v31  ;;  %v1579_v18 = vstv %s2541_s14  ;;  %v2777_v58 = vld [vmem:[%s5260_s0 + $0x69] sm:$0xff]  ;;  %s5128_s13 = sld [smem:[#allocation2 + $0x82]] }
 0x185   :  { %v4665_v51 = vadd.f32 %v1557_v25, %v1540_v60  ;;  %2326 = vrot.lane.b32.xlu1 %v2317_v34, %s2852_s30  ;;  %2324 = vrot.lane.b32.xlu0 %v2316_v8, %s2852_s30  ;;  %v1615_v63 = vstv %s2543_s12  ;;  %v1571_v13 = vmul.f32 %v2773_v54, %v1569_v42  ;;  %v1570_v36 = vmul.f32 %v2774_v2, %v1569_v42  ;;  %v2775_v60 = vld [vmem:[%s5260_s0 + $0x19] sm:$0x7f] }
 0x186   :  { %v1573_v38 = vmul.f32 %v2775_v60, %v1569_v42  ;;  %v1572_v35 = vmul.f32 %v2776_v53, %v1569_v42  ;;  %v2021_v28 = vmul.f32 %v2773_v54, %v2019_v59  ;;  %v2020_v25 = vmul.f32 %v2774_v2, %v2019_v59 }
 0x187   :  { %v2005_v33 = vpop.permute.xlu1 %2004  ;;  %v1581_v31 = vmul.f32 %v2777_v58, %v1579_v18 }
 0x188   :  { %v2003_v16 = vpop.permute.xlu0 %2002  ;;  %v4675_v47 = vadd.f32 %v2005_v33, %v1989_v37  ;;  %v2778_v37 = vld [vmem:[%s5260_s0 + $0x28] sm:$0xff]  ;;  %v1580_v33 = vmul.f32 %v4152_v1, %v1579_v18  ;;  %v2065_v1 = vstv %s4729_s16  ;;  %s4813_s16 = sld [smem:[#allocation2 + $0x78]] }
 0x189   :  { %v4677_v7 = vadd.f32 %v2003_v16, %v1988_v56  ;;  %2330 = vrot.lane.b32.xlu1 %v2319_v23, %s2852_s30  ;;  %2328 = vrot.lane.b32.xlu0 %v2318_v9, %s2852_s30  ;;  %v4751_v23 = vmul.f32 %v2775_v60, %v2019_v59  ;;  %v4753_v9 = vmul.f32 %v2776_v53, %v2019_v59  ;;  %v2029_v16 = vstv %s2573_s15 }
 0x18a   :  { %v4767_v56 = vmul.f32 %v2778_v37, %v1615_v63  ;;  %v2031_v59 = vmul.f32 %v2777_v58, %v2029_v16  ;;  %v1577_v53 = vadd.f32 %v1573_v38, %v4663_v19 }
 0x18b   :  { %v2641_v26 = vpop.eup %2640  ;;  %v2009_v45 = vpop.permute.xlu1 %2008 }
 0x18c   :  { %v2007_v27 = vpop.permute.xlu0 %2006  ;;  %v2643_v40 = vpop.eup %2642  ;;  %v1465_v30 = vmul.f32 %v2641_v26, %v4542_v48  ;;  %v4682_v49 = vadd.f32 %v2009_v45, %v1991_v57  ;;  %v2779_v57 = vld [vmem:[%s5260_s0 + $0x20] sm:$0xff]  ;;  %v2780_v26 = vld [vmem:[%s5260_s0 + $0x79] sm:$0x7f] }
 0x18d   :  { %v4684_v46 = vadd.f32 %v2007_v27, %v1990_v55  ;;  %v1464_v4 = vmul.f32 %v2643_v40, %v4544_v17  ;;  %v4775_v55 = vmul.f32 %v2779_v57, %v1615_v63  ;;  %v1583_v45 = vmul.f32 %v2780_v26, %v1579_v18  ;;  %v2781_v27 = vld [vmem:[%s5260_s0 + $0x38] sm:$0x7f] }
 0x18e   :  { %2530 = vst.msk [vmem:[%s5263_s3 + $0x48] sm:$0xff] %vm567_vm0, %v1465_v30  ;;  %v4783_v40 = vmul.f32 %v2781_v27, %v1615_v63  ;;  %v1575_v30 = vadd.f32 %v1571_v13, %v4656_v5  ;;  %v2784_v5 = vld [vmem:[%s5260_s0 + $0x61] sm:$0xff]  ;;  %v4800_v13 = vmul.f32 %v2780_v26, %v2029_v16  ;;  %v4816_v58 = vmul.f32 %v2781_v27, %v2065_v1 }
 0x18f   :  { %v2645_v22 = vpop.eup %2644  ;;  %2529 = vst.msk [vmem:[%s5263_s3 + $0x40] sm:$0xff] %vm567_vm0, %v1464_v4  ;;  %v4695_v0 = vpop.permute.xlu1 %1600  ;;  %v1574_v4 = vadd.f32 %v1570_v36, %v4658_v39  ;;  %v2030_v54 = vmul.f32 %v2784_v5, %v2029_v16  ;;  %v4808_v36 = vmul.f32 %v2779_v57, %v2065_v1 }
 0x190   :  { %v4697_v48 = vpop.permute.xlu0 %1598  ;;  %v2647_v20 = vpop.eup %2646  ;;  %v1467_v14 = vmul.f32 %v2645_v22, %v4578_v50  ;;  %v2782_v22 = vld [vmem:[%s5260_s0 + $0x71] sm:$0xff] }
 0x191   :  { %v1466_v17 = vmul.f32 %v2647_v20, %v4580_v29  ;;  %v1582_v20 = vmul.f32 %v2782_v22, %v1579_v18  ;;  %v4806_v18 = vmul.f32 %v2778_v37, %v2065_v1  ;;  %v4810_v60 = vmul.f32 %v2782_v22, %v2029_v16 }
 0x192   :  { %2532 = vst.msk [vmem:[%s5263_s3 + $0x58] sm:$0x7f] %vm571_vm1, %v1467_v14  ;;  %v1625_v14 = vstv %s4731_s17  ;;  %v1585_v37 = vadd.f32 %v1581_v31, %v1575_v30  ;;  %s4824_s17 = sld [smem:[#allocation2 + $0x79]]  ;;  %v1661_v22 = vstv %s4755_s25  ;;  %v2024_v30 = vadd.f32 %v2020_v25, %v4677_v7  ;;  %v2787_v7 = vld [vmem:[%s5260_s0 + $0xf8] sm:$0x7f] }
 0x193   :  { %2531 = vst.msk [vmem:[%s5263_s3 + $0x50] sm:$0xff] %vm567_vm0, %v1466_v17  ;;  %v4709_v52 = vpop.permute.xlu1 %1604  ;;  %v2783_v17 = vld [vmem:[%s5260_s0 + $0x30] sm:$0xff]  ;;  %v1627_v26 = vmul.f32 %v4182_v32, %v1625_v14  ;;  %v1626_v5 = vmul.f32 %v4191_v41, %v1625_v14  ;;  %v4822_v57 = vmul.f32 %v4199_v24, %v1625_v14  ;;  %v4830_v19 = vmul.f32 %v4205_v10, %v1625_v14  ;;  %s4888_s25 = sld [smem:[#allocation2 + $0x61]] }
 0x194   :  { %v4711_v61 = vpop.permute.xlu0 %1602  ;;  %v4795_v42 = vmul.f32 %v2783_v17, %v1615_v63  ;;  %v2075_v63 = vstv %s4737_s18  ;;  %v4826_v16 = vmul.f32 %v2783_v17, %v2065_v1  ;;  %v2025_v1 = vadd.f32 %v2021_v28, %v4675_v47  ;;  %v2785_v17 = vld [vmem:[%s5260_s0 + $0xe8] sm:$0xff]  ;;  %v2788_v25 = vld [vmem:[%s5260_s0 + $0xf0] sm:$0xff] }
 0x195   :  { %v4833_v38 = vmul.f32 %v4182_v32, %v2075_v63  ;;  %v4842_v31 = vmul.f32 %v4191_v41, %v2075_v63  ;;  %v4848_v32 = vmul.f32 %v4199_v24, %v2075_v63  ;;  %v2786_v41 = vld [vmem:[%s5260_s0 + $0xe0] sm:$0xff]  ;;  %v4857_v47 = vmul.f32 %v4205_v10, %v2075_v63 }
 0x196   :  { %v4865_v28 = vmul.f32 %v2787_v7, %v1661_v22 }
 0x197   :  { %v4713_v3 = vpop.permute.xlu1 %2050 }
 0x198   :  { %v4715_v15 = vpop.permute.xlu0 %2048 }
 0x19b   :  { %v4717_v50 = vpop.permute.xlu1 %2054 }
 0x19c   :  { %v4719_v29 = vpop.permute.xlu0 %2052 }
 0x19f   :  { %v4721_v62 = vpop.permute.xlu1 %1646 }
 0x1a0   :  { %v4723_v11 = vpop.permute.xlu0 %1644 }
 0x1a3   :  { %v4725_v44 = vpop.permute.xlu1 %1650 }
 0x1a4   :  { %v4727_v21 = vpop.permute.xlu0 %1648 }
 0x1a7   :  { %v4733_v34 = vpop.permute.xlu1 %2096 }
 0x1a8   :  { %v4735_v8 = vpop.permute.xlu0 %2094 }
 0x1ab   :  { %v4757_v12 = vpop.permute.xlu1 %2100 }
 0x1ac   :  { %5407 = vst [vmem:[#allocation9_spill] sm:$0xff] %v4757_v12  ;;  %v4759_v6 = vpop.permute.xlu0 %2098  ;;  %v1584_v12 = vadd.f32 %v1580_v33, %v1574_v4  ;;  %v1671_v33 = vstv %s4770_s4  ;;  %v1587_v4 = vadd.f32 %v1583_v45, %v1577_v53  ;;  %v2111_v53 = vstv %s4813_s16  ;;  %s5133_s16 = sld [smem:[#allocation2 + $0x69]] }
 0x1ad   :  { %5408 = vst [vmem:[#allocation28_spill] sm:$0xff] %v4759_v6  ;;  %v1576_v6 = vadd.f32 %v1572_v35, %v4665_v51  ;;  %v1611_v51 = vadd.f32 %v4695_v0, %v1585_v37  ;;  %v1663_v0 = vmul.f32 %v2785_v17, %v1661_v22  ;;  %v4873_v10 = vmul.f32 %v4229_v43, %v1671_v33  ;;  %s5173_s4 = sld [smem:[#allocation2 + $0x84]] }
 0x1ae   :  { %v1610_v35 = vadd.f32 %v4697_v48, %v1584_v12  ;;  %v1662_v48 = vmul.f32 %v2786_v41, %v1661_v22  ;;  %v1613_v24 = vadd.f32 %v4709_v52, %v1587_v4  ;;  %v4870_v12 = vmul.f32 %v2788_v25, %v1661_v22 }
 0x1af   :  { %v4802_v39 = vpop.permute.xlu1 %1692  ;;  %v1586_v14 = vadd.f32 %v1582_v20, %v1576_v6  ;;  %v1621_v52 = vadd.f32 %v4767_v56, %v1611_v51  ;;  %v2027_v37 = vadd.f32 %v4751_v23, %v4682_v49  ;;  %v2035_v22 = vadd.f32 %v2031_v59, %v2025_v1 }
 0x1b0   :  { %v4804_v2 = vpop.permute.xlu0 %1690  ;;  %v1620_v20 = vadd.f32 %v4775_v55, %v1610_v35  ;;  %v2034_v4 = vadd.f32 %v2030_v54, %v2024_v30  ;;  %v5416_v55 = vld [vmem:[#allocation8_spill] sm:$0xff]  ;;  %v1623_v35 = vadd.f32 %v4783_v40, %v1613_v24  ;;  %v4902_v59 = vmul.f32 %v2785_v17, %v2111_v53 }
 0x1b1   :  { %5409 = vst [vmem:[#allocation29_spill] sm:$0xff] %v4804_v2  ;;  %v1612_v63 = vadd.f32 %v4711_v61, %v1586_v14  ;;  %v4896_v51 = vmul.f32 %v5416_v55, %v1671_v33  ;;  %v2121_v61 = vstv %s4824_s17  ;;  %v2061_v49 = vadd.f32 %v4713_v3, %v2035_v22  ;;  %v2792_v22 = vld [vmem:[%s5260_s0 + $0x39] sm:$0x7f] }
 0x1b2   :  { %v2060_v23 = vadd.f32 %v4715_v15, %v2034_v4  ;;  %v1630_v1 = vadd.f32 %v1626_v5, %v1620_v20  ;;  %v2037_v40 = vadd.f32 %v4800_v13, %v2027_v37  ;;  %v4914_v3 = vmul.f32 %v2787_v7, %v2111_v53 }
 0x1b3   :  { %v4835_v27 = vpop.permute.xlu1 %1696  ;;  %v4916_v15 = vmul.f32 %v2788_v25, %v2111_v53  ;;  %v4919_v30 = vmul.f32 %v4229_v43, %v2121_v61  ;;  %v2071_v5 = vadd.f32 %v4806_v18, %v2061_v49  ;;  %v1633_v24 = vadd.f32 %v4822_v57, %v1623_v35  ;;  %v2790_v57 = vld [vmem:[%s5260_s0 + $0x29] sm:$0xff] }
 0x1b4   :  { %5410 = vst [vmem:[#allocation11_spill] sm:$0xff] %v4835_v27  ;;  %v4837_v2 = vpop.permute.xlu0 %1694  ;;  %v2063_v13 = vadd.f32 %v4717_v50, %v2037_v40  ;;  %v1717_v25 = vstv %s4888_s25 }
 0x1b5   :  { %5411 = vst [vmem:[#allocation10_spill] sm:$0xff] %v4837_v2  ;;  %v5414_v2 = vld [vmem:[#allocation23_spill] sm:$0xff]  ;;  %v1659_v50 = vadd.f32 %v4725_v44, %v1633_v24  ;;  %v2167_v24 = vstv %s4943_s29 }
 0x1b6   :  { %v4886_v27 = vmul.f32 %v5414_v2, %v1671_v33  ;;  %v2073_v44 = vadd.f32 %v4816_v58, %v2063_v13  ;;  %v2157_v58 = vstv %s4911_s26 }
 0x1b7   :  { %v4875_v6 = vpop.permute.xlu1 %2142 }
 0x1b8   :  { %5412 = vst [vmem:[#allocation14_spill] sm:$0xff] %v4875_v6  ;;  %v4877_v45 = vpop.permute.xlu0 %2140  ;;  %v5415_v6 = vld [vmem:[#allocation24_spill] sm:$0xff] }
 0x1b9   :  { %5413 = vst [vmem:[#allocation13_spill] sm:$0xff] %v4877_v45  ;;  %v2026_v45 = vadd.f32 %v4753_v9, %v4684_v46  ;;  %v4893_v56 = vmul.f32 %v5415_v6, %v1671_v33  ;;  %v1622_v46 = vadd.f32 %v4795_v42, %v1612_v63  ;;  %v1631_v9 = vadd.f32 %v1627_v26, %v1621_v52 }
 0x1ba   :  { %v4909_v33 = vmul.f32 %v2786_v41, %v2111_v53  ;;  %v1656_v42 = vadd.f32 %v4723_v11, %v1630_v1  ;;  %v1707_v26 = vstv %s4859_s2  ;;  %v2070_v41 = vadd.f32 %v4808_v36, %v2060_v23  ;;  %v2789_v11 = vld [vmem:[%s5260_s0 + $0x140] sm:$0xff]  ;;  %s5050_s2 = sld [smem:[#allocation2 + $0x7f]] }
 0x1bb   :  { %v4904_v54 = vpop.permute.xlu1 %2146  ;;  %v2036_v14 = vadd.f32 %v4810_v60, %v2026_v45  ;;  %v1657_v17 = vadd.f32 %v4721_v62, %v1631_v9  ;;  %v1632_v62 = vadd.f32 %v4830_v19, %v1622_v46  ;;  %v4938_v18 = vmul.f32 %v2789_v11, %v2121_v61  ;;  %v5419_v46 = vld [vmem:[#allocation18_spill] sm:$0xff] }
 0x1bc   :  { %v4906_v2 = vpop.permute.xlu0 %2144  ;;  %v4941_v36 = vmul.f32 %v5415_v6, %v2121_v61  ;;  %v4950_v19 = vmul.f32 %v5416_v55, %v2121_v61  ;;  %v1666_v52 = vadd.f32 %v1662_v48, %v1656_v42  ;;  %v2791_v6 = vld [vmem:[%s5260_s0 + $0x21] sm:$0xff]  ;;  %v2081_v53 = vadd.f32 %v4833_v38, %v2071_v5  ;;  %v5418_v38 = vld [vmem:[#allocation15_spill] sm:$0xff] }
 0x1bd   :  { %v2062_v60 = vadd.f32 %v4719_v29, %v2036_v14  ;;  %v1709_v29 = vmul.f32 %v2790_v57, %v1707_v26  ;;  %v1667_v45 = vadd.f32 %v1663_v0, %v1657_v17  ;;  %v1658_v20 = vadd.f32 %v4727_v21, %v1632_v62  ;;  %v5417_v55 = vld [vmem:[#allocation25_spill] sm:$0xff]  ;;  %v5420_v14 = vld [vmem:[#allocation26_spill] sm:$0xff] }
 0x1be   :  { %v1708_v63 = vmul.f32 %v2791_v6, %v1707_v26  ;;  %v2080_v37 = vadd.f32 %v4842_v31, %v2070_v41  ;;  %v1711_v4 = vmul.f32 %v2792_v22, %v1707_v26  ;;  %v4971_v61 = vmul.f32 %v5417_v55, %v1707_v26  ;;  %v5422_v41 = vld [vmem:[#allocation29_spill] sm:$0xff]  ;;  %v5426_v55 = vld [vmem:[#allocation10_spill] sm:$0xff] }
 0x1bf   :  { %v4929_v7 = vpop.permute.xlu1 %1738  ;;  %v2072_v48 = vadd.f32 %v4826_v16, %v2062_v60  ;;  %v4975_v35 = vmul.f32 %v5418_v38, %v1717_v25  ;;  %v1669_v31 = vadd.f32 %v4865_v28, %v1659_v50  ;;  %v2107_v49 = vadd.f32 %v4733_v34, %v2081_v53  ;;  %v5423_v62 = vld [vmem:[#allocation9_spill] sm:$0xff]  ;;  %v2796_v38 = vld [vmem:[%s5260_s0 + $0x99] sm:$0x7f] }
 0x1c0   :  { %v4931_v43 = vpop.permute.xlu0 %1736  ;;  %v2106_v23 = vadd.f32 %v4735_v8, %v2080_v37  ;;  %v1718_v9 = vmul.f32 %v5419_v46, %v1717_v25  ;;  %v1668_v1 = vadd.f32 %v4870_v12, %v1658_v20  ;;  %v1677_v16 = vadd.f32 %v4873_v10, %v1667_v45  ;;  %v5421_v8 = vld [vmem:[#allocation27_spill] sm:$0xff] }
 0x1c1   :  { %v1676_v40 = vadd.f32 %v4886_v27, %v1666_v52  ;;  %v4985_v17 = vmul.f32 %v5420_v14, %v1717_v25  ;;  %v2083_v28 = vadd.f32 %v4848_v32, %v2073_v44  ;;  %v4990_v42 = vmul.f32 %v2790_v57, %v2157_v58  ;;  %v5424_v57 = vld [vmem:[#allocation28_spill] sm:$0xff] }
 0x1c2   :  { %v4992_v34 = vmul.f32 %v2791_v6, %v2157_v58  ;;  %v4995_v26 = vmul.f32 %v5421_v8, %v1717_v25  ;;  %v2082_v27 = vadd.f32 %v4857_v47, %v2072_v48  ;;  %v1703_v10 = vadd.f32 %v4802_v39, %v1677_v16  ;;  %v2793_v39 = vld [vmem:[%s5260_s0 + $0x31] sm:$0xff]  ;;  %v2798_v16 = vld [vmem:[%s5260_s0 + $0x48] sm:$0xff] }
 0x1c3   :  { %v4965_v0 = vpop.permute.xlu1 %1742  ;;  %v1702_v13 = vadd.f32 %v5422_v41, %v1676_v40  ;;  %v2117_v32 = vadd.f32 %v4902_v59, %v2107_v49  ;;  %v2116_v60 = vadd.f32 %v4909_v33, %v2106_v23  ;;  %v2109_v11 = vadd.f32 %v5423_v62, %v2083_v28  ;;  %v5425_v59 = vld [vmem:[#allocation11_spill] sm:$0xff]  ;;  %v5427_v28 = vld [vmem:[#allocation14_spill] sm:$0xff] }
 0x1c4   :  { %v4967_v21 = vpop.permute.xlu0 %1740  ;;  %v1679_v50 = vadd.f32 %v4893_v56, %v1669_v31  ;;  %v2108_v25 = vadd.f32 %v5424_v57, %v2082_v27  ;;  %v1678_v45 = vadd.f32 %v4896_v51, %v1668_v1  ;;  %v5013_v47 = vmul.f32 %v2792_v22, %v2157_v58  ;;  %v2794_v56 = vld [vmem:[%s5260_s0 + $0x89] sm:$0xff]  ;;  %v2795_v51 = vld [vmem:[%s5260_s0 + $0x81] sm:$0xff] }
 0x1c5   :  { %v5018_v52 = vmul.f32 %v2793_v39, %v2157_v58  ;;  %v1753_v20 = vstv %s4963_s9  ;;  %v5025_v6 = vmul.f32 %v2794_v56, %v2167_v24  ;;  %v5030_v44 = vmul.f32 %v2795_v51, %v2167_v24  ;;  %v5428_v27 = vld [vmem:[#allocation13_spill] sm:$0xff]  ;;  %v2801_v62 = vld [vmem:[%s5260_s0 + $0x50] sm:$0xff] }
 0x1c6   :  { %v1705_v33 = vadd.f32 %v5425_v59, %v1679_v50  ;;  %v1713_v22 = vadd.f32 %v1709_v29, %v1703_v10  ;;  %v1712_v48 = vadd.f32 %v1708_v63, %v1702_v13  ;;  %v1704_v58 = vadd.f32 %v5426_v55, %v1678_v45  ;;  %v2797_v29 = vld [vmem:[%s5260_s0 + $0x91] sm:$0xff] }
 0x1c7   :  { %v4997_v5 = vpop.permute.xlu1 %2188  ;;  %v5040_v31 = vmul.f32 %v2796_v38, %v2167_v24  ;;  %v2119_v49 = vadd.f32 %v4914_v3, %v2109_v11  ;;  %v2127_v23 = vadd.f32 %v4919_v30, %v2117_v32  ;;  %v2126_v46 = vadd.f32 %v4938_v18, %v2116_v60  ;;  %v2799_v3 = vld [vmem:[%s5260_s0 + $0x40] sm:$0xff] }
 0x1c8   :  { %v4999_v12 = vpop.permute.xlu0 %2186  ;;  %v5048_v1 = vmul.f32 %v2797_v29, %v2167_v24  ;;  %v2118_v63 = vadd.f32 %v4916_v15, %v2108_v25  ;;  %v1755_v40 = vmul.f32 %v2798_v16, %v1753_v20  ;;  %v1754_v30 = vmul.f32 %v2799_v3, %v1753_v20  ;;  %v2800_v15 = vld [vmem:[%s5260_s0 + $0x58] sm:$0x7f]  ;;  %v2802_v25 = vld [vmem:[%s5260_s0 + $0xa8] sm:$0xff] }
 0x1c9   :  { %v1763_v18 = vstv %s4987_s10  ;;  %v1715_v14 = vadd.f32 %v1711_v4, %v1705_v33  ;;  %v2153_v8 = vadd.f32 %v5427_v28, %v2127_v23  ;;  %v2152_v10 = vadd.f32 %v5428_v27, %v2126_v46  ;;  %v5429_v33 = vld [vmem:[#allocation12_spill] sm:$0xff]  ;;  %s5101_s10 = sld [smem:[#allocation2 + $0x81]]  ;;  %v2806_v27 = vld [vmem:[%s5260_s0 + $0x108] sm:$0xff] }
 0x1ca   :  { %v1757_v41 = vmul.f32 %v2800_v15, %v1753_v20  ;;  %v1714_v32 = vadd.f32 %v4971_v61, %v1704_v58  ;;  %v1723_v60 = vadd.f32 %v4975_v35, %v1713_v22  ;;  %v1722_v4 = vadd.f32 %v1718_v9, %v1712_v48  ;;  %v2803_v61 = vld [vmem:[%s5260_s0 + $0xa0] sm:$0xff] }
 0x1cb   :  { %v5032_v53 = vpop.permute.xlu1 %2192  ;;  %v1756_v11 = vmul.f32 %v2801_v62, %v1753_v20  ;;  %v2129_v50 = vadd.f32 %v4941_v36, %v2119_v49  ;;  %v2203_v57 = vstv %s5009_s11  ;;  %v1765_v45 = vmul.f32 %v2802_v25, %v1763_v18 }
 0x1cc   :  { %v5034_v37 = vpop.permute.xlu0 %2190  ;;  %v1764_v39 = vmul.f32 %v2803_v61, %v1763_v18  ;;  %v2128_v35 = vadd.f32 %v4950_v19, %v2118_v63  ;;  %v1749_v9 = vadd.f32 %v4929_v7, %v1723_v60  ;;  %v1748_v59 = vadd.f32 %v4931_v43, %v1722_v4 }
 0x1cd   :  { %v1767_v20 = vmul.f32 %v5429_v33, %v1763_v18  ;;  %v2163_v36 = vadd.f32 %v4990_v42, %v2153_v8  ;;  %v2162_v56 = vadd.f32 %v4992_v34, %v2152_v10  ;;  %v2155_v51 = vadd.f32 %v4904_v54, %v2129_v50  ;;  %v2804_v42 = vld [vmem:[%s5260_s0 + $0xb0] sm:$0xff] }
 0x1ce   :  { %v1725_v22 = vadd.f32 %v4985_v17, %v1715_v14  ;;  %v2154_v7 = vadd.f32 %v4906_v2, %v2128_v35  ;;  %v1724_v43 = vadd.f32 %v4995_v26, %v1714_v32  ;;  %v2205_v19 = vmul.f32 %v2798_v16, %v2203_v57  ;;  %v2808_v32 = vld [vmem:[%s5260_s0 + $0x118] sm:$0x7f]  ;;  %v2809_v33 = vld [vmem:[%s5260_s0 + $0x110] sm:$0xff] }
 0x1cf   :  { %v5067_v13 = vpop.permute.xlu1 %1784  ;;  %v1766_v34 = vmul.f32 %v2804_v42, %v1763_v18  ;;  %v2204_v17 = vmul.f32 %v2799_v3, %v2203_v57  ;;  %v5104_v58 = vmul.f32 %v2800_v15, %v2203_v57  ;;  %v2213_v38 = vstv %s5050_s2 }
 0x1d0   :  { %v5069_v24 = vpop.permute.xlu0 %1782  ;;  %v1751_v54 = vadd.f32 %v4965_v0, %v1725_v22  ;;  %v1759_v49 = vadd.f32 %v1755_v40, %v1749_v9  ;;  %v1758_v23 = vadd.f32 %v1754_v30, %v1748_v59  ;;  %v1750_v2 = vadd.f32 %v4967_v21, %v1724_v43  ;;  %v2805_v21 = vld [vmem:[%s5260_s0 + $0xb8] sm:$0x7f] }
 0x1d1   :  { %v5108_v26 = vmul.f32 %v2801_v62, %v2203_v57  ;;  %v2165_v46 = vadd.f32 %v5013_v47, %v2155_v51  ;;  %v2173_v29 = vadd.f32 %v5025_v6, %v2163_v36  ;;  %v2172_v63 = vadd.f32 %v5030_v44, %v2162_v56  ;;  %v2812_v51 = vld [vmem:[%s5260_s0 + $0x178] sm:$0x7f] }
 0x1d2   :  { %v1799_v16 = vstv %s5065_s27  ;;  %v2164_v3 = vadd.f32 %v5018_v52, %v2154_v7  ;;  %v2215_v14 = vmul.f32 %v2802_v25, %v2213_v38  ;;  %v2214_v40 = vmul.f32 %v2803_v61, %v2213_v38  ;;  %v2813_v7 = vld [vmem:[%s5260_s0 + $0x170] sm:$0xff] }
 0x1d3   :  { %v1789_v48 = vpop.permute.xlu1 %1788  ;;  %v5122_v30 = vmul.f32 %v2805_v21, %v2213_v38  ;;  %v1761_v47 = vadd.f32 %v1757_v41, %v1751_v54  ;;  %v2199_v6 = vadd.f32 %v4997_v5, %v2173_v29  ;;  %v2198_v44 = vadd.f32 %v4999_v12, %v2172_v63  ;;  %v2807_v12 = vld [vmem:[%s5260_s0 + $0x100] sm:$0xff] }
 0x1d4   :  { %v5092_v55 = vpop.permute.xlu0 %1786  ;;  %v5126_v28 = vmul.f32 %v2804_v42, %v2213_v38  ;;  %v1760_v8 = vadd.f32 %v1756_v11, %v1750_v2  ;;  %v1769_v52 = vadd.f32 %v1765_v45, %v1759_v49  ;;  %v1801_v10 = vmul.f32 %v2806_v27, %v1799_v16 }
 0x1d5   :  { %v1768_v15 = vadd.f32 %v1764_v39, %v1758_v23  ;;  %v2175_v5 = vadd.f32 %v5040_v31, %v2165_v46  ;;  %v1800_v41 = vmul.f32 %v2807_v12, %v1799_v16  ;;  %v1803_v60 = vmul.f32 %v2808_v32, %v1799_v16 }
 0x1d6   :  { %v1809_v11 = vstv %s5094_s8  ;;  %v2174_v50 = vadd.f32 %v5048_v1, %v2164_v3  ;;  %v1795_v57 = vadd.f32 %v5067_v13, %v1769_v52  ;;  %v2249_v25 = vstv %s5101_s10  ;;  %v2810_v1 = vld [vmem:[%s5260_s0 + $0x168] sm:$0xff] }
 0x1d7   :  { %v5114_v18 = vpop.permute.xlu1 %2234  ;;  %v1794_v31 = vadd.f32 %v5069_v24, %v1768_v15  ;;  %v2209_v45 = vadd.f32 %v2205_v19, %v2199_v6  ;;  %v2208_v61 = vadd.f32 %v2204_v17, %v2198_v44  ;;  %v2201_v39 = vadd.f32 %v5032_v53, %v2175_v5  ;;  %v2811_v53 = vld [vmem:[%s5260_s0 + $0x160] sm:$0xff]  ;;  %v2814_v44 = vld [vmem:[%s5260_s0 + $0x49] sm:$0xff] }
 0x1d8   :  { %v5116_v0 = vpop.permute.xlu0 %2232  ;;  %v1771_v35 = vadd.f32 %v1767_v20, %v1761_v47  ;;  %v2200_v9 = vadd.f32 %v5034_v37, %v2174_v50  ;;  %v1770_v59 = vadd.f32 %v1766_v34, %v1760_v8  ;;  %v1802_v36 = vmul.f32 %v2809_v33, %v1799_v16 }
 0x1d9   :  { %v1811_v13 = vmul.f32 %v2810_v1, %v1809_v11  ;;  %v1810_v37 = vmul.f32 %v2811_v53, %v1809_v11  ;;  %v1813_v22 = vmul.f32 %v2812_v51, %v1809_v11  ;;  %v1812_v43 = vmul.f32 %v2813_v7, %v1809_v11 }
 0x1da   :  { %v1797_v24 = vadd.f32 %v1789_v48, %v1771_v35  ;;  %v1805_v48 = vadd.f32 %v1801_v10, %v1795_v57  ;;  %v1804_v19 = vadd.f32 %v1800_v41, %v1794_v31  ;;  %v1796_v42 = vadd.f32 %v5092_v55, %v1770_v59  ;;  %v2816_v57 = vld [vmem:[%s5260_s0 + $0x59] sm:$0x7f] }
 0x1db   :  { %v5142_v4 = vpop.permute.xlu1 %2238  ;;  %v2251_v34 = vmul.f32 %v2806_v27, %v2249_v25  ;;  %v2211_v54 = vadd.f32 %v5104_v58, %v2201_v39  ;;  %v2219_v17 = vadd.f32 %v2215_v14, %v2209_v45  ;;  %v2218_v38 = vadd.f32 %v2214_v40, %v2208_v61  ;;  %v2817_v61 = vld [vmem:[%s5260_s0 + $0x51] sm:$0xff] }
 0x1dc   :  { %v5144_v62 = vpop.permute.xlu0 %2236  ;;  %v2259_v49 = vstv %s5128_s13  ;;  %v2210_v23 = vadd.f32 %v5108_v26, %v2200_v9  ;;  %v2250_v2 = vmul.f32 %v2807_v12, %v2249_v25  ;;  %v2253_v46 = vmul.f32 %v2808_v32, %v2249_v25 }
 0x1dd   :  { %v1845_v29 = vstv %s5133_s16  ;;  %v1807_v63 = vadd.f32 %v1803_v60, %v1797_v24  ;;  %v2245_v16 = vadd.f32 %v5114_v18, %v2219_v17  ;;  %v2244_v3 = vadd.f32 %v5116_v0, %v2218_v38  ;;  %v2815_v18 = vld [vmem:[%s5260_s0 + $0x41] sm:$0xff] }
 0x1de   :  { %v2252_v21 = vmul.f32 %v2809_v33, %v2249_v25  ;;  %v1806_v58 = vadd.f32 %v1802_v36, %v1796_v42  ;;  %v1815_v14 = vadd.f32 %v1811_v13, %v1805_v48  ;;  %v1814_v40 = vadd.f32 %v1810_v37, %v1804_v19  ;;  %v2819_v36 = vld [vmem:[%s5260_s0 + $0xa1] sm:$0xff] }
 0x1df   :  { %v1831_v56 = vpop.permute.xlu1 %1830  ;;  %v2261_v6 = vmul.f32 %v2810_v1, %v2259_v49  ;;  %v2221_v26 = vadd.f32 %v5122_v30, %v2211_v54  ;;  %v1847_v8 = vmul.f32 %v2814_v44, %v1845_v29  ;;  %v1846_v0 = vmul.f32 %v2815_v18, %v1845_v29 }
 0x1e0   :  { %v1829_v20 = vpop.permute.xlu0 %1828  ;;  %v2260_v52 = vmul.f32 %v2811_v53, %v2259_v49  ;;  %v2220_v27 = vadd.f32 %v5126_v28, %v2210_v23  ;;  %v1841_v10 = vadd.f32 %v1831_v56, %v1815_v14  ;;  %v1855_v5 = vstv %s5159_s23 }
 0x1e1   :  { %v1840_v15 = vadd.f32 %v1829_v20, %v1814_v40  ;;  %v2255_v12 = vadd.f32 %v2251_v34, %v2245_v16  ;;  %v2254_v41 = vadd.f32 %v2250_v2, %v2244_v3  ;;  %v2247_v30 = vadd.f32 %v5142_v4, %v2221_v26  ;;  %v2818_v4 = vld [vmem:[%s5260_s0 + $0xa9] sm:$0xff] }
 0x1e2   :  { %v1817_v32 = vadd.f32 %v1813_v22, %v1807_v63  ;;  %v2246_v50 = vadd.f32 %v5144_v62, %v2220_v27  ;;  %v1849_v31 = vmul.f32 %v2816_v57, %v1845_v29  ;;  %v1816_v25 = vadd.f32 %v1812_v43, %v1806_v58  ;;  %v2820_v43 = vld [vmem:[%s5260_s0 + $0xb9] sm:$0x7f] }
 0x1e3   :  { %v1835_v55 = vpop.permute.xlu1 %1834  ;;  %v2263_v28 = vmul.f32 %v2812_v51, %v2259_v49  ;;  %v1848_v39 = vmul.f32 %v2817_v61, %v1845_v29  ;;  %v2295_v35 = vstv %s5173_s4  ;;  %v1857_v9 = vmul.f32 %v2818_v4, %v1855_v5 }
 0x1e4   :  { %v1833_v47 = vpop.permute.xlu0 %1832  ;;  %v1843_v45 = vadd.f32 %v1835_v55, %v1817_v32  ;;  %v1851_v62 = vadd.f32 %v1847_v8, %v1841_v10  ;;  %v1850_v59 = vadd.f32 %v1846_v0, %v1840_v15  ;;  %v1856_v1 = vmul.f32 %v2819_v36, %v1855_v5 }
 0x1e5   :  { %v1842_v33 = vadd.f32 %v1833_v47, %v1816_v25  ;;  %v2257_v13 = vadd.f32 %v2253_v46, %v2247_v30  ;;  %v2265_v24 = vadd.f32 %v2261_v6, %v2255_v12  ;;  %v2264_v56 = vadd.f32 %v2260_v52, %v2254_v41 }
 0x1e6   :  { %v2262_v37 = vmul.f32 %v2813_v7, %v2259_v49  ;;  %v2256_v51 = vadd.f32 %v2252_v21, %v2246_v50  ;;  %v2297_v22 = vmul.f32 %v2814_v44, %v2295_v35  ;;  %v1859_v48 = vmul.f32 %v2820_v43, %v1855_v5  ;;  %v2821_v7 = vld [vmem:[%s5260_s0 + $0xb1] sm:$0xff] }
 0x1e7   :  { %v2281_v60 = vpop.permute.xlu1 %2280  ;;  %v2305_v19 = vstv %s5179_s6  ;;  %v1853_v42 = vadd.f32 %v1849_v31, %v1843_v45  ;;  %v2296_v54 = vmul.f32 %v2815_v18, %v2295_v35  ;;  %v1852_v38 = vadd.f32 %v1848_v39, %v1842_v33 }
 0x1e8   :  { %v2279_v11 = vpop.permute.xlu0 %2278  ;;  %v2291_v34 = vadd.f32 %v2281_v60, %v2265_v24  ;;  %v1861_v23 = vadd.f32 %v1857_v9, %v1851_v62  ;;  %v1860_v2 = vadd.f32 %v1856_v1, %v1850_v59  ;;  %v1858_v49 = vmul.f32 %v2821_v7, %v1855_v5 }
 0x1e9   :  { %v2290_v17 = vadd.f32 %v2279_v11, %v2264_v56  ;;  %v2267_v46 = vadd.f32 %v2263_v28, %v2257_v13  ;;  %v2299_v29 = vmul.f32 %v2816_v57, %v2295_v35  ;;  %v2298_v63 = vmul.f32 %v2817_v61, %v2295_v35 }
 0x1ea   :  { %v2307_v21 = vmul.f32 %v2818_v4, %v2305_v19  ;;  %v2266_v55 = vadd.f32 %v2262_v37, %v2256_v51  ;;  %v2306_v14 = vmul.f32 %v2819_v36, %v2305_v19  ;;  %v2301_v40 = vadd.f32 %v2297_v22, %v2291_v34 }
 0x1eb   :  { %v2285_v53 = vpop.permute.xlu1 %2284  ;;  %v2300_v6 = vadd.f32 %v2296_v54, %v2290_v17  ;;  %v1863_v44 = vadd.f32 %v1859_v48, %v1853_v42  ;;  %v1862_v52 = vadd.f32 %v1858_v49, %v1852_v38  ;;  %v2309_v15 = vmul.f32 %v2820_v43, %v2305_v19 }
 0x1ec   :  { %v2283_v20 = vpop.permute.xlu0 %2282  ;;  %v2293_v26 = vadd.f32 %v2285_v53, %v2267_v46  ;;  %v2311_v60 = vadd.f32 %v2307_v21, %v2301_v40  ;;  %v2308_v50 = vmul.f32 %v2821_v7, %v2305_v19 }
 0x1ed   :  { %v2292_v8 = vadd.f32 %v2283_v20, %v2266_v55  ;;  %v2310_v11 = vadd.f32 %v2306_v14, %v2300_v6 }
 0x1ee   :  { %v2303_v32 = vadd.f32 %v2299_v29, %v2293_v26 }
 0x1ef   :  { %v1877_v16 = vpop.permute.xlu1 %1876  ;;  %v2302_v57 = vadd.f32 %v2298_v63, %v2292_v8 }
 0x1f0   :  { %v1875_v3 = vpop.permute.xlu0 %1874  ;;  %v5212_v47 = vadd.f32 %v1877_v16, %v1861_v23  ;;  %v2313_v9 = vadd.f32 %v2309_v15, %v2303_v32 }
 0x1f1   :  { %v5214_v58 = vadd.f32 %v1875_v3, %v1860_v2  ;;  %v2312_v33 = vadd.f32 %v2308_v50, %v2302_v57 }
 0x1f2   :  { %v1891_v18 = vsub.f32 0.0, %v5212_v47 }
 0x1f3   :  { %v1890_v0 = vsub.f32 0.0, %v5214_v58  ;;  %v1881_v27 = vpop.permute.xlu1 %1880 }
 0x1f4   :  { %v1879_v10 = vpop.permute.xlu0 %1878  ;;  %v1896_v5 = vmul.f32 1.442695, %v1891_v18  ;;  %v5218_v41 = vadd.f32 %v1881_v27, %v1863_v44 }
 0x1f5   :  { %v1894_v12 = vmul.f32 1.442695, %v1890_v0  ;;  %v5220_v30 = vadd.f32 %v1879_v10, %v1862_v52 }
 0x1f6   :  { %2648 = vpow2.f32 %v1896_v5  ;;  %v1893_v31 = vsub.f32 0.0, %v5218_v41 }
 0x1f7   :  { %v1892_v25 = vsub.f32 0.0, %v5220_v30  ;;  %2650 = vpow2.f32 %v1894_v12  ;;  %v2327_v28 = vpop.permute.xlu1 %2326 }
 0x1f8   :  { %v2325_v45 = vpop.permute.xlu0 %2324  ;;  %v1900_v61 = vmul.f32 1.442695, %v1893_v31  ;;  %v2337_v35 = vadd.f32 %v2327_v28, %v2311_v60 }
 0x1f9   :  { %v1898_v39 = vmul.f32 1.442695, %v1892_v25  ;;  %v2336_v4 = vadd.f32 %v2325_v45, %v2310_v11 }
 0x1fa   :  { %2652 = vpow2.f32 %v1900_v61  ;;  %v2341_v62 = vsub.f32 0.0, %v2337_v35 }
 0x1fb   :  { %v2340_v59 = vsub.f32 0.0, %v2336_v4  ;;  %2654 = vpow2.f32 %v1898_v39  ;;  %v2331_v36 = vpop.permute.xlu1 %2330 }
 0x1fc   :  { %v2329_v1 = vpop.permute.xlu0 %2328  ;;  %v2346_v13 = vmul.f32 1.442695, %v2341_v62  ;;  %v2339_v56 = vadd.f32 %v2331_v36, %v2313_v9 }
 0x1fd   :  { %v2344_v24 = vmul.f32 1.442695, %v2340_v59  ;;  %v2338_v53 = vadd.f32 %v2329_v1, %v2312_v33 }
 0x1fe   :  { %2656 = vpow2.f32 %v2346_v13  ;;  %v2343_v37 = vsub.f32 0.0, %v2339_v56 }
 0x1ff   :  { %v2342_v20 = vsub.f32 0.0, %v2338_v53  ;;  %2658 = vpow2.f32 %v2344_v24 }
 0x200   :  { %v2350_v51 = vmul.f32 1.442695, %v2343_v37 }
 0x201   :  { %v2348_v22 = vmul.f32 1.442695, %v2342_v20 }
 0x202   :  { %2660 = vpow2.f32 %v2350_v51 }
 0x203   :  { %v2649_v43 = vpop.eup %2648  ;;  %2662 = vpow2.f32 %v2348_v22 }
 0x204   :  { %v2651_v48 = vpop.eup %2650  ;;  %v1903_v19 = vadd.f32 1.0, %v2649_v43 }
 0x205   :  { %v1902_v42 = vadd.f32 1.0, %v2651_v48 }
 0x206   :  { %2664 = vrcp.f32 %v1903_v19 }
 0x207   :  { %v2653_v34 = vpop.eup %2652  ;;  %2666 = vrcp.f32 %v1902_v42 }
 0x208   :  { %v2655_v54 = vpop.eup %2654  ;;  %v1905_v17 = vadd.f32 1.0, %v2653_v34 }
 0x209   :  { %v1904_v38 = vadd.f32 1.0, %v2655_v54 }
 0x20a   :  { %2668 = vrcp.f32 %v1905_v17 }
 0x20b   :  { %v2657_v23 = vpop.eup %2656  ;;  %2670 = vrcp.f32 %v1904_v38 }
 0x20c   :  { %v2659_v2 = vpop.eup %2658  ;;  %v2353_v7 = vadd.f32 1.0, %v2657_v23 }
 0x20d   :  { %v2352_v49 = vadd.f32 1.0, %v2659_v2 }
 0x20e   :  { %2672 = vrcp.f32 %v2353_v7 }
 0x20f   :  { %v2661_v46 = vpop.eup %2660  ;;  %2674 = vrcp.f32 %v2352_v49 }
 0x210   :  { %v2663_v29 = vpop.eup %2662  ;;  %v2355_v63 = vadd.f32 1.0, %v2661_v46 }
 0x211   :  { %v2354_v16 = vadd.f32 1.0, %v2663_v29 }
 0x212   :  { %2676 = vrcp.f32 %v2355_v63 }
 0x213   :  { %v2665_v3 = vpop.eup %2664  ;;  %2678 = vrcp.f32 %v2354_v16 }
 0x214   :  { %v2667_v21 = vpop.eup %2666  ;;  %v1915_v55 = vmul.f32 %v2665_v3, %v5212_v47 }
 0x215   :  { %v1914_v14 = vmul.f32 %v2667_v21, %v5214_v58 }
 0x216   :  { %2562 = vst.msk [vmem:[%s5263_s3 + $0x68] sm:$0xff] %vm567_vm0, %v1915_v55 }
 0x217   :  { %v2669_v40 = vpop.eup %2668  ;;  %2561 = vst.msk [vmem:[%s5263_s3 + $0x60] sm:$0xff] %vm567_vm0, %v1914_v14 }
 0x218   :  { %v2671_v6 = vpop.eup %2670  ;;  %v1917_v26 = vmul.f32 %v2669_v40, %v5218_v41 }
 0x219   :  { %v1916_v44 = vmul.f32 %v2671_v6, %v5220_v30 }
 0x21a   :  { %2564 = vst.msk [vmem:[%s5263_s3 + $0x78] sm:$0x7f] %vm571_vm1, %v1917_v26 }
 0x21b   :  { %v2673_v47 = vpop.eup %2672  ;;  %2563 = vst.msk [vmem:[%s5263_s3 + $0x70] sm:$0xff] %vm567_vm0, %v1916_v44 }
 0x21c   :  { %v2675_v58 = vpop.eup %2674  ;;  %v2365_v8 = vmul.f32 %v2673_v47, %v2337_v35 }
 0x21d   :  { %v2364_v18 = vmul.f32 %v2675_v58, %v2336_v4 }
 0x21e   :  { %2594 = vst.msk [vmem:[%s5263_s3 + $0x88] sm:$0xff] %vm567_vm0, %v2365_v8 }
 0x21f   :  { %v2677_v0 = vpop.eup %2676  ;;  %2593 = vst.msk [vmem:[%s5263_s3 + $0x80] sm:$0xff] %vm567_vm0, %v2364_v18 }
 0x220   :  { %v2679_v52 = vpop.eup %2678  ;;  %v2367_v27 = vmul.f32 %v2677_v0, %v2339_v56 }
 0x221   :  { %v2366_v10 = vmul.f32 %v2679_v52, %v2338_v53 }
 0x222   :  { %2596 = vst.msk [vmem:[%s5263_s3 + $0x98] sm:$0x7f] %vm571_vm1, %v2367_v27 }
 0x223   :  { %2595 = vst.msk [vmem:[%s5263_s3 + $0x90] sm:$0xff] %vm567_vm0, %v2366_v10 }
 0x224   :  { %2377 = vsyncpa [#allocation3], 1 }
 0x225   :  { %2378 = vsyncpa [#allocation5], 1 }

</bundles_post_ra>
